<compile_context>
chip_gen: v6e
topology: v6e:2x2x1
jax: 0.10.0
libtpu: 0.0.40
codegen_flags: <defaults>
</compile_context>

<pallas_src>
import math
from functools import partial

import jax
import jax.numpy as jnp
from jax.experimental import pallas as pl
from jax.experimental.pallas import tpu as pltpu

# ----------------------------- configuration --------------------------------
WIDTH      = 32            # model dim D
IMAGE_SIZE = (16, 16)
PATCH_SIZE = (4, 4)
N_CHANNELS = 4
N_LAYERS   = 2
N_HEADS    = 4
EMB_DIM    = 16
BATCH      = 2

N_PATCHES = (IMAGE_SIZE[0] * IMAGE_SIZE[1]) // (PATCH_SIZE[0] * PATCH_SIZE[1])  # 16
MAX_SEQ   = N_PATCHES + 1                                                       # 17
HEAD_DIM  = WIDTH // N_HEADS
MLP_DIM   = 4 * WIDTH
PATCH_DIM = N_CHANNELS * PATCH_SIZE[0] * PATCH_SIZE[1]                          # 64
LANE      = 128                                                                  # packed small-param buffer width
SMALL_ROWS_PER_LAYER = 8


# ------------------------------ fused Pallas kernel --------------------------
def _layer_norm(v, g, b, eps=1e-5):
    mu = jnp.mean(v, axis=-1, keepdims=True)
    var = jnp.mean(jnp.square(v - mu), axis=-1, keepdims=True)
    return (v - mu) * jax.lax.rsqrt(var + eps) * g + b


def encoder_kernel(patch_ref, smalls_ref, cw_ref, wqkv_ref, wo_ref, w1_ref, w2_ref,
                   proj_ref, o_ref, *, n_heads, n_layers, batch, n_patches):
    D = cw_ref.shape[1]
    hd = D // n_heads
    S = n_patches + 1
    MLP = w1_ref.shape[2]

    # ---- hoisted parameter loads (each read exactly once) ----
    cw = cw_ref[...]                                   # (P, D)
    # rows 0..N-1: conv_b + pe[1:];  row N (cls slot, last index): cls_token + pe[0]
    seq_add = smalls_ref[0:S, 0:D]                     # (S, D)

    # ---- patch embedding + sequence assembly (cls token at LAST index) ----
    # patch_ref[b] has a zero row appended at index S-1, so the matmul yields 0
    # there and seq_add supplies cls_token + pe[0]. No concat, no scratch.
    xs = []
    for b in range(batch):                             # static unroll (B=2)
        xs.append(jnp.dot(patch_ref[b], cw, preferred_element_type=jnp.float32)
                  + seq_add)                           # (S, D)

    # ---- transformer stack (pre-norm), statically unrolled over layers ----
    for l in range(n_layers):
        base = S + SMALL_ROWS_PER_LAYER * l
        ln1_g = smalls_ref[base + 0:base + 1, 0:D]
        ln1_b = smalls_ref[base + 1:base + 2, 0:D]
        bqkv  = smalls_ref[base + 2:base + 3, 0:3 * D]
        bo    = smalls_ref[base + 3:base + 4, 0:D]
        ln2_g = smalls_ref[base + 4:base + 5, 0:D]
        ln2_b = smalls_ref[base + 5:base + 6, 0:D]
        b1    = smalls_ref[base + 6:base + 7, 0:MLP]
        b2    = smalls_ref[base + 7:base + 8, 0:D]
        wqkv = wqkv_ref[l]                             # (D, 3D), Q cols pre-scaled by 1/sqrt(hd)
        wo   = wo_ref[l]                               # (D, D)
        w1   = w1_ref[l]                               # (D, MLP)
        w2   = w2_ref[l]                               # (MLP, D)

        for b in range(batch):                         # static unroll
            x = xs[b]
            # multi-head self-attention
            h = _layer_norm(x, ln1_g, ln1_b)
            qkv = jnp.dot(h, wqkv, preferred_element_type=jnp.float32) + bqkv   # (S, 3D)
            ctx = []
            for hh in range(n_heads):                  # static unroll; values only, no scratch
                q_h = qkv[:, hh * hd:(hh + 1) * hd]
                k_h = qkv[:, D + hh * hd:D + (hh + 1) * hd]
                v_h = qkv[:, 2 * D + hh * hd:2 * D + (hh + 1) * hd]
                s = jax.lax.dot_general(q_h, k_h, (((1,), (1,)), ((), ())),
                                        preferred_element_type=jnp.float32)     # (S, S)
                s = s - jnp.max(s, axis=-1, keepdims=True)
                p = jnp.exp(s)
                p = p / jnp.sum(p, axis=-1, keepdims=True)                       # exact softmax
                ctx.append(jnp.dot(p, v_h, preferred_element_type=jnp.float32))  # (S, hd)
            attn = jnp.dot(jnp.concatenate(ctx, axis=-1), wo,
                           preferred_element_type=jnp.float32) + bo
            x = x + attn

            # MLP
            h2 = _layer_norm(x, ln2_g, ln2_b)
            m = jnp.dot(h2, w1, preferred_element_type=jnp.float32) + b1
            # TODO(synk): tanh-approximate GELU; PyTorch nn.GELU default is exact erf.
            m = jax.nn.gelu(m, approximate=True)
            xs[b] = x + jnp.dot(m, w2, preferred_element_type=jnp.float32) + b2

    # ---- cls pooling (last row) + projection + exact L2 normalization ----
    proj = proj_ref[...]
    for b in range(batch):
        y = jnp.dot(xs[b][S - 1:S, :], proj, preferred_element_type=jnp.float32)  # (1, E)
        norm = jnp.sqrt(jnp.sum(y * y, axis=-1, keepdims=True))
        o_ref[b:b + 1, :] = y / norm


# ------------------------------ host-facing wrapper ---------------------------
def sinusoidal_pe(seq_len, d_model):
    pos = jnp.arange(seq_len, dtype=jnp.float32)[:, None]
    i = jnp.arange(0, d_model, 2, dtype=jnp.float32)[None, :]
    div = jnp.exp(-jnp.log(10000.0) * i / d_model)
    pe = jnp.zeros((seq_len, d_model), jnp.float32)
    pe = pe.at[:, 0::2].set(jnp.sin(pos * div))
    pe = pe.at[:, 1::2].set(jnp.cos(pos * div))
    return pe


def pack_params(params):
    """One-time host-side packing: fold q-scale into QKV, pack all tiny vectors
    into a single (rows, 128) buffer so the kernel sees 8 inputs instead of ~18."""
    L, D, M, S = N_LAYERS, WIDTH, MLP_DIM, MAX_SEQ
    pe = sinusoidal_pe(S, D)

    # fold 1/sqrt(head_dim) into the Q columns of the fused QKV projection
    scale = 1.0 / math.sqrt(HEAD_DIM)
    qscale = jnp.concatenate([jnp.full((D,), scale, jnp.float32),
                              jnp.ones((2 * D,), jnp.float32)], axis=0)
    wqkv = params['wqkv'] * qscale[None, None, :]
    bqkv = params['bqkv'] * qscale[None, None, :]

    rows = S + SMALL_ROWS_PER_LAYER * L
    smalls = jnp.zeros((rows, LANE), jnp.float32)
    # sequence additive rows: patches first (aligned at sublane 0), cls last
    smalls = smalls.at[0:N_PATCHES, 0:D].set(params['conv_b'] + pe[1:, :])
    smalls = smalls.at[N_PATCHES:S, 0:D].set(params['cls_token'] + pe[0:1, :])
    for l in range(L):
        base = S + SMALL_ROWS_PER_LAYER * l
        smalls = smalls.at[base + 0, 0:D].set(params['ln1_g'][l, 0])
        smalls = smalls.at[base + 1, 0:D].set(params['ln1_b'][l, 0])
        smalls = smalls.at[base + 2, 0:3 * D].set(bqkv[l, 0])
        smalls = smalls.at[base + 3, 0:D].set(params['bo'][l, 0])
        smalls = smalls.at[base + 4, 0:D].set(params['ln2_g'][l, 0])
        smalls = smalls.at[base + 5, 0:D].set(params['ln2_b'][l, 0])
        smalls = smalls.at[base + 6, 0:M].set(params['b1'][l, 0])
        smalls = smalls.at[base + 7, 0:D].set(params['b2'][l, 0])

    return {
        'smalls': smalls,
        'conv_w': params['conv_w'],
        'wqkv': wqkv,
        'wo': params['wo'],
        'w1': params['w1'],
        'w2': params['w2'],
        'proj': params['proj'],
    }


def image_encoder_forward(x_nchw, packed):
    B, C, H, W = x_nchw.shape
    ph, pw = PATCH_SIZE

    # im2col glue (pure layout): (B,C,H,W) -> (B, N, C*ph*pw), flatten order (C, ph, pw)
    # matches Conv2d + flatten(2).transpose(1,2) of the PyTorch module. A zero row is
    # appended per batch so the kernel's patch matmul also covers the cls slot.
    patches = x_nchw.reshape(B, C, H // ph, ph, W // pw, pw)
    patches = patches.transpose(0, 2, 4, 1, 3, 5).reshape(B, N_PATCHES, PATCH_DIM)
    patches = jnp.concatenate(
        [patches, jnp.zeros((B, 1, PATCH_DIM), patches.dtype)], axis=1)          # (B, S, P)

    kernel = partial(encoder_kernel, n_heads=N_HEADS, n_layers=N_LAYERS,
                     batch=B, n_patches=N_PATCHES)

    return pl.pallas_call(
        kernel,
        out_shape=jax.ShapeDtypeStruct((B, EMB_DIM), jnp.float32),
    )(patches, packed['smalls'], packed['conv_w'], packed['wqkv'], packed['wo'],
      packed['w1'], packed['w2'], packed['proj'])


# ------------------------------ parameter setup ------------------------------
def make_params(key):
    keys = jax.random.split(key, 8)
    it = iter(keys)

    def nrm(shape, scale=0.02):
        return (scale * jax.random.normal(next(it), shape)).astype(jnp.float32)

    L, D, M = N_LAYERS, WIDTH, MLP_DIM
    return {
        # Conv2d(C, width, kernel=patch, stride=patch) weight flattened to (C*ph*pw, width)
        'conv_w': nrm((PATCH_DIM, D)),
        'conv_b': jnp.zeros((1, D), jnp.float32),
        'cls_token': jax.random.normal(next(it), (1, D), dtype=jnp.float32),
        'proj': jax.random.normal(next(it), (D, EMB_DIM), dtype=jnp.float32),
        # per-layer weights stacked along a leading L axis (kept resident in VMEM)
        'ln1_g': jnp.ones((L, 1, D), jnp.float32),
        'ln1_b': jnp.zeros((L, 1, D), jnp.float32),
        'wqkv': nrm((L, D, 3 * D)),
        'bqkv': jnp.zeros((L, 1, 3 * D), jnp.float32),
        'wo': nrm((L, D, D)),
        'bo': jnp.zeros((L, 1, D), jnp.float32),
        'ln2_g': jnp.ones((L, 1, D), jnp.float32),
        'ln2_b': jnp.zeros((L, 1, D), jnp.float32),
        'w1': nrm((L, D, M)),
        'b1': jnp.zeros((L, 1, M), jnp.float32),
        'w2': nrm((L, M, D)),
        'b2': jnp.zeros((L, 1, D), jnp.float32),
    }


# ------------------------------ pure-JAX reference ----------------------------
def reference_forward(x_nchw, params):
    B = x_nchw.shape[0]
    ph, pw = PATCH_SIZE
    patches = x_nchw.reshape(B, N_CHANNELS, IMAGE_SIZE[0] // ph, ph,
                             IMAGE_SIZE[1] // pw, pw)
    patches = patches.transpose(0, 2, 4, 1, 3, 5).reshape(B, N_PATCHES, PATCH_DIM)
    emb = patches @ params['conv_w'] + params['conv_b']
    cls = jnp.broadcast_to(params['cls_token'][None], (B, 1, WIDTH))
    x = jnp.concatenate([cls, emb], axis=1) + sinusoidal_pe(MAX_SEQ, WIDTH)[None]

    def ln(v, g, b, eps=1e-5):
        mu = v.mean(-1, keepdims=True)
        var = ((v - mu) ** 2).mean(-1, keepdims=True)
        return (v - mu) / jnp.sqrt(var + eps) * g + b

    hd = HEAD_DIM
    for l in range(N_LAYERS):
        h = ln(x, params['ln1_g'][l], params['ln1_b'][l])
        qkv = h @ params['wqkv'][l] + params['bqkv'][l]
        q = qkv[..., :WIDTH] / math.sqrt(hd)
        k = qkv[..., WIDTH:2 * WIDTH]
        v = qkv[..., 2 * WIDTH:]
        ctx = []
        for hh in range(N_HEADS):
            sl = slice(hh * hd, (hh + 1) * hd)
            s = jnp.einsum('bqe,bke->bqk', q[..., sl], k[..., sl])
            p = jax.nn.softmax(s, axis=-1)
            ctx.append(jnp.einsum('bqk,bke->bqe', p, v[..., sl]))
        x = x + jnp.concatenate(ctx, axis=-1) @ params['wo'][l] + params['bo'][l]
        h2 = ln(x, params['ln2_g'][l], params['ln2_b'][l])
        m = jax.nn.gelu(h2 @ params['w1'][l] + params['b1'][l], approximate=True)
        x = x + m @ params['w2'][l] + params['b2'][l]

    y = x[:, 0, :] @ params['proj']
    return y / jnp.linalg.norm(y, axis=-1, keepdims=True)


# ----------------------------------- main ------------------------------------
if __name__ == "__main__":
    key = jax.random.PRNGKey(0)
    k_x, k_p = jax.random.split(key)
    x = jax.random.normal(k_x, (BATCH, N_CHANNELS, IMAGE_SIZE[0], IMAGE_SIZE[1]),
                          dtype=jnp.float32)
    params = make_params(k_p)
    packed = pack_params(params)          # one-time host-side packing

    out = jax.jit(image_encoder_forward)(x, packed)
    out = jax.block_until_ready(out)

    assert out.shape == (BATCH, EMB_DIM), out.shape
    norms = jnp.linalg.norm(out, axis=-1)
    assert bool(jnp.all(jnp.abs(norms - 1.0) < 1e-3)), norms

    ref = reference_forward(x, params)
    assert bool(jnp.all(jnp.abs(out - ref) < 5e-2)), (out, ref)

    print("KERNEL_OK")
</pallas_src>

<mosaic_0001>
module attributes {stable_mosaic.version = 11 : i64} {
  func.func @encoder_kernel(%arg0: memref<2x17x64xf32, #tpu.memory_space<vmem>>, %arg1: memref<33x128xf32, #tpu.memory_space<vmem>>, %arg2: memref<64x32xf32, #tpu.memory_space<vmem>>, %arg3: memref<2x32x96xf32, #tpu.memory_space<vmem>>, %arg4: memref<2x32x32xf32, #tpu.memory_space<vmem>>, %arg5: memref<2x32x128xf32, #tpu.memory_space<vmem>>, %arg6: memref<2x128x32xf32, #tpu.memory_space<vmem>>, %arg7: memref<32x16xf32, #tpu.memory_space<vmem>>, %arg8: memref<2x16xf32, #tpu.memory_space<vmem>>) attributes {dimension_semantics = [], scalar_prefetch = 0 : i64, scratch_operands = 0 : i64, tpu.core_type = #tpu.core_type<tc>} {
    %c0 = arith.constant 0 : index
    %c0_0 = arith.constant 0 : index
    %0 = vector.load %arg2[%c0, %c0_0] : memref<64x32xf32, #tpu.memory_space<vmem>>, vector<64x32xf32>
    %c0_1 = arith.constant 0 : index
    %c0_2 = arith.constant 0 : index
    %1 = vector.load %arg1[%c0_1, %c0_2] : memref<33x128xf32, #tpu.memory_space<vmem>>, vector<17x32xf32>
    %c0_3 = arith.constant 0 : index
    %c0_4 = arith.constant 0 : index
    %c0_5 = arith.constant 0 : index
    %2 = vector.load %arg0[%c0_3, %c0_4, %c0_5] : memref<2x17x64xf32, #tpu.memory_space<vmem>>, vector<1x17x64xf32>
    %3 = vector.shape_cast %2 : vector<1x17x64xf32> to vector<17x64xf32>
    %cst = arith.constant dense<0.000000e+00> : vector<17x32xf32>
    %4 = tpu.matmul %3, %0, %cst {dimension_numbers = #tpu.dot_dimension_numbers<[1], [0], [0], [1], [0, 0, 1, 1], [], []>} : vector<17x64xf32>, vector<64x32xf32>, vector<17x32xf32> -> vector<17x32xf32>
    %5 = arith.addf %4, %1 : vector<17x32xf32>
    %c1 = arith.constant 1 : index
    %c0_6 = arith.constant 0 : index
    %c0_7 = arith.constant 0 : index
    %6 = vector.load %arg0[%c1, %c0_6, %c0_7] : memref<2x17x64xf32, #tpu.memory_space<vmem>>, vector<1x17x64xf32>
    %7 = vector.shape_cast %6 : vector<1x17x64xf32> to vector<17x64xf32>
    %cst_8 = arith.constant dense<0.000000e+00> : vector<17x32xf32>
    %8 = tpu.matmul %7, %0, %cst_8 {dimension_numbers = #tpu.dot_dimension_numbers<[1], [0], [0], [1], [0, 0, 1, 1], [], []>} : vector<17x64xf32>, vector<64x32xf32>, vector<17x32xf32> -> vector<17x32xf32>
    %9 = arith.addf %8, %1 : vector<17x32xf32>
    %c17 = arith.constant 17 : index
    %c0_9 = arith.constant 0 : index
    %10 = vector.load %arg1[%c17, %c0_9] : memref<33x128xf32, #tpu.memory_space<vmem>>, vector<1x32xf32>
    %c18 = arith.constant 18 : index
    %c0_10 = arith.constant 0 : index
    %11 = vector.load %arg1[%c18, %c0_10] : memref<33x128xf32, #tpu.memory_space<vmem>>, vector<1x32xf32>
    %c19 = arith.constant 19 : index
    %c0_11 = arith.constant 0 : index
    %12 = vector.load %arg1[%c19, %c0_11] : memref<33x128xf32, #tpu.memory_space<vmem>>, vector<1x96xf32>
    %c20 = arith.constant 20 : index
    %c0_12 = arith.constant 0 : index
    %13 = vector.load %arg1[%c20, %c0_12] : memref<33x128xf32, #tpu.memory_space<vmem>>, vector<1x32xf32>
    %c21 = arith.constant 21 : index
    %c0_13 = arith.constant 0 : index
    %14 = vector.load %arg1[%c21, %c0_13] : memref<33x128xf32, #tpu.memory_space<vmem>>, vector<1x32xf32>
    %c22 = arith.constant 22 : index
    %c0_14 = arith.constant 0 : index
    %15 = vector.load %arg1[%c22, %c0_14] : memref<33x128xf32, #tpu.memory_space<vmem>>, vector<1x32xf32>
    %c23 = arith.constant 23 : index
    %c0_15 = arith.constant 0 : index
    %16 = vector.load %arg1[%c23, %c0_15] : memref<33x128xf32, #tpu.memory_space<vmem>>, vector<1x128xf32>
    %c24 = arith.constant 24 : index
    %c0_16 = arith.constant 0 : index
    %17 = vector.load %arg1[%c24, %c0_16] : memref<33x128xf32, #tpu.memory_space<vmem>>, vector<1x32xf32>
    %c0_17 = arith.constant 0 : index
    %c0_18 = arith.constant 0 : index
    %c0_19 = arith.constant 0 : index
    %18 = vector.load %arg3[%c0_17, %c0_18, %c0_19] : memref<2x32x96xf32, #tpu.memory_space<vmem>>, vector<1x32x96xf32>
    %19 = vector.shape_cast %18 : vector<1x32x96xf32> to vector<32x96xf32>
    %c0_20 = arith.constant 0 : index
    %c0_21 = arith.constant 0 : index
    %c0_22 = arith.constant 0 : index
    %20 = vector.load %arg4[%c0_20, %c0_21, %c0_22] : memref<2x32x32xf32, #tpu.memory_space<vmem>>, vector<1x32x32xf32>
    %21 = vector.shape_cast %20 : vector<1x32x32xf32> to vector<32x32xf32>
    %c0_23 = arith.constant 0 : index
    %c0_24 = arith.constant 0 : index
    %c0_25 = arith.constant 0 : index
    %22 = vector.load %arg5[%c0_23, %c0_24, %c0_25] : memref<2x32x128xf32, #tpu.memory_space<vmem>>, vector<1x32x128xf32>
    %23 = vector.shape_cast %22 : vector<1x32x128xf32> to vector<32x128xf32>
    %c0_26 = arith.constant 0 : index
    %c0_27 = arith.constant 0 : index
    %c0_28 = arith.constant 0 : index
    %24 = vector.load %arg6[%c0_26, %c0_27, %c0_28] : memref<2x128x32xf32, #tpu.memory_space<vmem>>, vector<1x128x32xf32>
    %25 = vector.shape_cast %24 : vector<1x128x32xf32> to vector<128x32xf32>
    %cst_29 = arith.constant dense<0.000000e+00> : vector<17xf32>
    %26 = vector.multi_reduction <add>, %5, %cst_29 [1] : vector<17x32xf32> to vector<17xf32>
    %27 = vector.shape_cast %26 : vector<17xf32> to vector<17x1xf32>
    %cst_30 = arith.constant 3.200000e+01 : f32
    %28 = vector.broadcast %cst_30 : f32 to vector<17x1xf32>
    %29 = arith.divf %27, %28 : vector<17x1xf32>
    %30 = vector.broadcast %29 : vector<17x1xf32> to vector<17x32xf32>
    %31 = arith.subf %5, %30 : vector<17x32xf32>
    %32 = arith.mulf %31, %31 : vector<17x32xf32>
    %cst_31 = arith.constant dense<0.000000e+00> : vector<17xf32>
    %33 = vector.multi_reduction <add>, %32, %cst_31 [1] : vector<17x32xf32> to vector<17xf32>
    %34 = vector.shape_cast %33 : vector<17xf32> to vector<17x1xf32>
    %cst_32 = arith.constant 3.200000e+01 : f32
    %35 = vector.broadcast %cst_32 : f32 to vector<17x1xf32>
    %36 = arith.divf %34, %35 : vector<17x1xf32>
    %37 = vector.broadcast %29 : vector<17x1xf32> to vector<17x32xf32>
    %38 = arith.subf %5, %37 : vector<17x32xf32>
    %cst_33 = arith.constant 9.99999974E-6 : f32
    %39 = vector.broadcast %cst_33 : f32 to vector<17x1xf32>
    %40 = arith.addf %36, %39 : vector<17x1xf32>
    %41 = math.rsqrt %40 : vector<17x1xf32>
    %42 = vector.broadcast %41 : vector<17x1xf32> to vector<17x32xf32>
    %43 = arith.mulf %38, %42 : vector<17x32xf32>
    %44 = vector.broadcast %10 : vector<1x32xf32> to vector<17x32xf32>
    %45 = arith.mulf %43, %44 : vector<17x32xf32>
    %46 = vector.broadcast %11 : vector<1x32xf32> to vector<17x32xf32>
    %47 = arith.addf %45, %46 : vector<17x32xf32>
    %cst_34 = arith.constant dense<0.000000e+00> : vector<17x96xf32>
    %48 = tpu.matmul %47, %19, %cst_34 {dimension_numbers = #tpu.dot_dimension_numbers<[1], [0], [0], [1], [0, 0, 1, 1], [], []>} : vector<17x32xf32>, vector<32x96xf32>, vector<17x96xf32> -> vector<17x96xf32>
    %49 = vector.broadcast %12 : vector<1x96xf32> to vector<17x96xf32>
    %50 = arith.addf %48, %49 : vector<17x96xf32>
    %51 = vector.extract_strided_slice %50 {offsets = [0, 0], sizes = [17, 8], strides = [1, 1]} : vector<17x96xf32> to vector<17x8xf32>
    %52 = vector.extract_strided_slice %50 {offsets = [0, 32], sizes = [17, 8], strides = [1, 1]} : vector<17x96xf32> to vector<17x8xf32>
    %53 = vector.extract_strided_slice %50 {offsets = [0, 64], sizes = [17, 8], strides = [1, 1]} : vector<17x96xf32> to vector<17x8xf32>
    %cst_35 = arith.constant dense<0.000000e+00> : vector<17x17xf32>
    %54 = tpu.matmul %51, %52, %cst_35 {dimension_numbers = #tpu.dot_dimension_numbers<[1], [1], [0], [0], [0, 0, 1, 0], [], []>} : vector<17x8xf32>, vector<17x8xf32>, vector<17x17xf32> -> vector<17x17xf32>
    %cst_36 = arith.constant dense<0xFF800000> : vector<17xf32>
    %55 = vector.multi_reduction <maximumf>, %54, %cst_36 [1] : vector<17x17xf32> to vector<17xf32>
    %56 = vector.shape_cast %55 : vector<17xf32> to vector<17x1xf32>
    %57 = vector.broadcast %56 : vector<17x1xf32> to vector<17x17xf32>
    %58 = arith.subf %54, %57 : vector<17x17xf32>
    %59 = math.exp %58 : vector<17x17xf32>
    %cst_37 = arith.constant dense<0.000000e+00> : vector<17xf32>
    %60 = vector.multi_reduction <add>, %59, %cst_37 [1] : vector<17x17xf32> to vector<17xf32>
    %61 = vector.shape_cast %60 : vector<17xf32> to vector<17x1xf32>
    %62 = vector.broadcast %61 : vector<17x1xf32> to vector<17x17xf32>
    %63 = arith.divf %59, %62 : vector<17x17xf32>
    %cst_38 = arith.constant dense<0.000000e+00> : vector<17x8xf32>
    %64 = tpu.matmul %63, %53, %cst_38 {dimension_numbers = #tpu.dot_dimension_numbers<[1], [0], [0], [1], [0, 0, 1, 1], [], []>} : vector<17x17xf32>, vector<17x8xf32>, vector<17x8xf32> -> vector<17x8xf32>
    %65 = vector.extract_strided_slice %50 {offsets = [0, 8], sizes = [17, 8], strides = [1, 1]} : vector<17x96xf32> to vector<17x8xf32>
    %66 = vector.extract_strided_slice %50 {offsets = [0, 40], sizes = [17, 8], strides = [1, 1]} : vector<17x96xf32> to vector<17x8xf32>
    %67 = vector.extract_strided_slice %50 {offsets = [0, 72], sizes = [17, 8], strides = [1, 1]} : vector<17x96xf32> to vector<17x8xf32>
    %cst_39 = arith.constant dense<0.000000e+00> : vector<17x17xf32>
    %68 = tpu.matmul %65, %66, %cst_39 {dimension_numbers = #tpu.dot_dimension_numbers<[1], [1], [0], [0], [0, 0, 1, 0], [], []>} : vector<17x8xf32>, vector<17x8xf32>, vector<17x17xf32> -> vector<17x17xf32>
    %cst_40 = arith.constant dense<0xFF800000> : vector<17xf32>
    %69 = vector.multi_reduction <maximumf>, %68, %cst_40 [1] : vector<17x17xf32> to vector<17xf32>
    %70 = vector.shape_cast %69 : vector<17xf32> to vector<17x1xf32>
    %71 = vector.broadcast %70 : vector<17x1xf32> to vector<17x17xf32>
    %72 = arith.subf %68, %71 : vector<17x17xf32>
    %73 = math.exp %72 : vector<17x17xf32>
    %cst_41 = arith.constant dense<0.000000e+00> : vector<17xf32>
    %74 = vector.multi_reduction <add>, %73, %cst_41 [1] : vector<17x17xf32> to vector<17xf32>
    %75 = vector.shape_cast %74 : vector<17xf32> to vector<17x1xf32>
    %76 = vector.broadcast %75 : vector<17x1xf32> to vector<17x17xf32>
    %77 = arith.divf %73, %76 : vector<17x17xf32>
    %cst_42 = arith.constant dense<0.000000e+00> : vector<17x8xf32>
    %78 = tpu.matmul %77, %67, %cst_42 {dimension_numbers = #tpu.dot_dimension_numbers<[1], [0], [0], [1], [0, 0, 1, 1], [], []>} : vector<17x17xf32>, vector<17x8xf32>, vector<17x8xf32> -> vector<17x8xf32>
    %79 = vector.extract_strided_slice %50 {offsets = [0, 16], sizes = [17, 8], strides = [1, 1]} : vector<17x96xf32> to vector<17x8xf32>
    %80 = vector.extract_strided_slice %50 {offsets = [0, 48], sizes = [17, 8], strides = [1, 1]} : vector<17x96xf32> to vector<17x8xf32>
    %81 = vector.extract_strided_slice %50 {offsets = [0, 80], sizes = [17, 8], strides = [1, 1]} : vector<17x96xf32> to vector<17x8xf32>
    %cst_43 = arith.constant dense<0.000000e+00> : vector<17x17xf32>
    %82 = tpu.matmul %79, %80, %cst_43 {dimension_numbers = #tpu.dot_dimension_numbers<[1], [1], [0], [0], [0, 0, 1, 0], [], []>} : vector<17x8xf32>, vector<17x8xf32>, vector<17x17xf32> -> vector<17x17xf32>
    %cst_44 = arith.constant dense<0xFF800000> : vector<17xf32>
    %83 = vector.multi_reduction <maximumf>, %82, %cst_44 [1] : vector<17x17xf32> to vector<17xf32>
    %84 = vector.shape_cast %83 : vector<17xf32> to vector<17x1xf32>
    %85 = vector.broadcast %84 : vector<17x1xf32> to vector<17x17xf32>
    %86 = arith.subf %82, %85 : vector<17x17xf32>
    %87 = math.exp %86 : vector<17x17xf32>
    %cst_45 = arith.constant dense<0.000000e+00> : vector<17xf32>
    %88 = vector.multi_reduction <add>, %87, %cst_45 [1] : vector<17x17xf32> to vector<17xf32>
    %89 = vector.shape_cast %88 : vector<17xf32> to vector<17x1xf32>
    %90 = vector.broadcast %89 : vector<17x1xf32> to vector<17x17xf32>
    %91 = arith.divf %87, %90 : vector<17x17xf32>
    %cst_46 = arith.constant dense<0.000000e+00> : vector<17x8xf32>
    %92 = tpu.matmul %91, %81, %cst_46 {dimension_numbers = #tpu.dot_dimension_numbers<[1], [0], [0], [1], [0, 0, 1, 1], [], []>} : vector<17x17xf32>, vector<17x8xf32>, vector<17x8xf32> -> vector<17x8xf32>
    %93 = vector.extract_strided_slice %50 {offsets = [0, 24], sizes = [17, 8], strides = [1, 1]} : vector<17x96xf32> to vector<17x8xf32>
    %94 = vector.extract_strided_slice %50 {offsets = [0, 56], sizes = [17, 8], strides = [1, 1]} : vector<17x96xf32> to vector<17x8xf32>
    %95 = vector.extract_strided_slice %50 {offsets = [0, 88], sizes = [17, 8], strides = [1, 1]} : vector<17x96xf32> to vector<17x8xf32>
    %cst_47 = arith.constant dense<0.000000e+00> : vector<17x17xf32>
    %96 = tpu.matmul %93, %94, %cst_47 {dimension_numbers = #tpu.dot_dimension_numbers<[1], [1], [0], [0], [0, 0, 1, 0], [], []>} : vector<17x8xf32>, vector<17x8xf32>, vector<17x17xf32> -> vector<17x17xf32>
    %cst_48 = arith.constant dense<0xFF800000> : vector<17xf32>
    %97 = vector.multi_reduction <maximumf>, %96, %cst_48 [1] : vector<17x17xf32> to vector<17xf32>
    %98 = vector.shape_cast %97 : vector<17xf32> to vector<17x1xf32>
    %99 = vector.broadcast %98 : vector<17x1xf32> to vector<17x17xf32>
    %100 = arith.subf %96, %99 : vector<17x17xf32>
    %101 = math.exp %100 : vector<17x17xf32>
    %cst_49 = arith.constant dense<0.000000e+00> : vector<17xf32>
    %102 = vector.multi_reduction <add>, %101, %cst_49 [1] : vector<17x17xf32> to vector<17xf32>
    %103 = vector.shape_cast %102 : vector<17xf32> to vector<17x1xf32>
    %104 = vector.broadcast %103 : vector<17x1xf32> to vector<17x17xf32>
    %105 = arith.divf %101, %104 : vector<17x17xf32>
    %cst_50 = arith.constant dense<0.000000e+00> : vector<17x8xf32>
    %106 = tpu.matmul %105, %95, %cst_50 {dimension_numbers = #tpu.dot_dimension_numbers<[1], [0], [0], [1], [0, 0, 1, 1], [], []>} : vector<17x17xf32>, vector<17x8xf32>, vector<17x8xf32> -> vector<17x8xf32>
    %107 = tpu.concatenate %64, %78, %92, %106 in 1 : vector<17x8xf32>, vector<17x8xf32>, vector<17x8xf32>, vector<17x8xf32> -> vector<17x32xf32>
    %cst_51 = arith.constant dense<0.000000e+00> : vector<17x32xf32>
    %108 = tpu.matmul %107, %21, %cst_51 {dimension_numbers = #tpu.dot_dimension_numbers<[1], [0], [0], [1], [0, 0, 1, 1], [], []>} : vector<17x32xf32>, vector<32x32xf32>, vector<17x32xf32> -> vector<17x32xf32>
    %109 = vector.broadcast %13 : vector<1x32xf32> to vector<17x32xf32>
    %110 = arith.addf %108, %109 : vector<17x32xf32>
    %111 = arith.addf %5, %110 : vector<17x32xf32>
    %cst_52 = arith.constant dense<0.000000e+00> : vector<17xf32>
    %112 = vector.multi_reduction <add>, %111, %cst_52 [1] : vector<17x32xf32> to vector<17xf32>
    %113 = vector.shape_cast %112 : vector<17xf32> to vector<17x1xf32>
    %cst_53 = arith.constant 3.200000e+01 : f32
    %114 = vector.broadcast %cst_53 : f32 to vector<17x1xf32>
    %115 = arith.divf %113, %114 : vector<17x1xf32>
    %116 = vector.broadcast %115 : vector<17x1xf32> to vector<17x32xf32>
    %117 = arith.subf %111, %116 : vector<17x32xf32>
    %118 = arith.mulf %117, %117 : vector<17x32xf32>
    %cst_54 = arith.constant dense<0.000000e+00> : vector<17xf32>
    %119 = vector.multi_reduction <add>, %118, %cst_54 [1] : vector<17x32xf32> to vector<17xf32>
    %120 = vector.shape_cast %119 : vector<17xf32> to vector<17x1xf32>
    %cst_55 = arith.constant 3.200000e+01 : f32
    %121 = vector.broadcast %cst_55 : f32 to vector<17x1xf32>
    %122 = arith.divf %120, %121 : vector<17x1xf32>
    %123 = vector.broadcast %115 : vector<17x1xf32> to vector<17x32xf32>
    %124 = arith.subf %111, %123 : vector<17x32xf32>
    %cst_56 = arith.constant 9.99999974E-6 : f32
    %125 = vector.broadcast %cst_56 : f32 to vector<17x1xf32>
    %126 = arith.addf %122, %125 : vector<17x1xf32>
    %127 = math.rsqrt %126 : vector<17x1xf32>
    %128 = vector.broadcast %127 : vector<17x1xf32> to vector<17x32xf32>
    %129 = arith.mulf %124, %128 : vector<17x32xf32>
    %130 = vector.broadcast %14 : vector<1x32xf32> to vector<17x32xf32>
    %131 = arith.mulf %129, %130 : vector<17x32xf32>
    %132 = vector.broadcast %15 : vector<1x32xf32> to vector<17x32xf32>
    %133 = arith.addf %131, %132 : vector<17x32xf32>
    %cst_57 = arith.constant dense<0.000000e+00> : vector<17x128xf32>
    %134 = tpu.matmul %133, %23, %cst_57 {dimension_numbers = #tpu.dot_dimension_numbers<[1], [0], [0], [1], [0, 0, 1, 1], [], []>} : vector<17x32xf32>, vector<32x128xf32>, vector<17x128xf32> -> vector<17x128xf32>
    %135 = vector.broadcast %16 : vector<1x128xf32> to vector<17x128xf32>
    %136 = arith.addf %134, %135 : vector<17x128xf32>
    %137 = arith.mulf %136, %136 : vector<17x128xf32>
    %138 = arith.mulf %136, %137 : vector<17x128xf32>
    %cst_58 = arith.constant 4.471500e-02 : f32
    %139 = vector.broadcast %cst_58 : f32 to vector<17x128xf32>
    %140 = arith.mulf %139, %138 : vector<17x128xf32>
    %141 = arith.addf %136, %140 : vector<17x128xf32>
    %cst_59 = arith.constant 0.797884583 : f32
    %142 = vector.broadcast %cst_59 : f32 to vector<17x128xf32>
    %143 = arith.mulf %142, %141 : vector<17x128xf32>
    %144 = math.tanh %143 : vector<17x128xf32>
    %cst_60 = arith.constant 1.000000e+00 : f32
    %145 = vector.broadcast %cst_60 : f32 to vector<17x128xf32>
    %146 = arith.addf %145, %144 : vector<17x128xf32>
    %cst_61 = arith.constant 5.000000e-01 : f32
    %147 = vector.broadcast %cst_61 : f32 to vector<17x128xf32>
    %148 = arith.mulf %147, %146 : vector<17x128xf32>
    %149 = arith.mulf %136, %148 : vector<17x128xf32>
    %cst_62 = arith.constant dense<0.000000e+00> : vector<17x32xf32>
    %150 = tpu.matmul %149, %25, %cst_62 {dimension_numbers = #tpu.dot_dimension_numbers<[1], [0], [0], [1], [0, 0, 1, 1], [], []>} : vector<17x128xf32>, vector<128x32xf32>, vector<17x32xf32> -> vector<17x32xf32>
    %151 = arith.addf %111, %150 : vector<17x32xf32>
    %152 = vector.broadcast %17 : vector<1x32xf32> to vector<17x32xf32>
    %153 = arith.addf %151, %152 : vector<17x32xf32>
    %cst_63 = arith.constant dense<0.000000e+00> : vector<17xf32>
    %154 = vector.multi_reduction <add>, %9, %cst_63 [1] : vector<17x32xf32> to vector<17xf32>
    %155 = vector.shape_cast %154 : vector<17xf32> to vector<17x1xf32>
    %cst_64 = arith.constant 3.200000e+01 : f32
    %156 = vector.broadcast %cst_64 : f32 to vector<17x1xf32>
    %157 = arith.divf %155, %156 : vector<17x1xf32>
    %158 = vector.broadcast %157 : vector<17x1xf32> to vector<17x32xf32>
    %159 = arith.subf %9, %158 : vector<17x32xf32>
    %160 = arith.mulf %159, %159 : vector<17x32xf32>
    %cst_65 = arith.constant dense<0.000000e+00> : vector<17xf32>
    %161 = vector.multi_reduction <add>, %160, %cst_65 [1] : vector<17x32xf32> to vector<17xf32>
    %162 = vector.shape_cast %161 : vector<17xf32> to vector<17x1xf32>
    %cst_66 = arith.constant 3.200000e+01 : f32
    %163 = vector.broadcast %cst_66 : f32 to vector<17x1xf32>
    %164 = arith.divf %162, %163 : vector<17x1xf32>
    %165 = vector.broadcast %157 : vector<17x1xf32> to vector<17x32xf32>
    %166 = arith.subf %9, %165 : vector<17x32xf32>
    %cst_67 = arith.constant 9.99999974E-6 : f32
    %167 = vector.broadcast %cst_67 : f32 to vector<17x1xf32>
    %168 = arith.addf %164, %167 : vector<17x1xf32>
    %169 = math.rsqrt %168 : vector<17x1xf32>
    %170 = vector.broadcast %169 : vector<17x1xf32> to vector<17x32xf32>
    %171 = arith.mulf %166, %170 : vector<17x32xf32>
    %172 = vector.broadcast %10 : vector<1x32xf32> to vector<17x32xf32>
    %173 = arith.mulf %171, %172 : vector<17x32xf32>
    %174 = vector.broadcast %11 : vector<1x32xf32> to vector<17x32xf32>
    %175 = arith.addf %173, %174 : vector<17x32xf32>
    %cst_68 = arith.constant dense<0.000000e+00> : vector<17x96xf32>
    %176 = tpu.matmul %175, %19, %cst_68 {dimension_numbers = #tpu.dot_dimension_numbers<[1], [0], [0], [1], [0, 0, 1, 1], [], []>} : vector<17x32xf32>, vector<32x96xf32>, vector<17x96xf32> -> vector<17x96xf32>
    %177 = vector.broadcast %12 : vector<1x96xf32> to vector<17x96xf32>
    %178 = arith.addf %176, %177 : vector<17x96xf32>
    %179 = vector.extract_strided_slice %178 {offsets = [0, 0], sizes = [17, 8], strides = [1, 1]} : vector<17x96xf32> to vector<17x8xf32>
    %180 = vector.extract_strided_slice %178 {offsets = [0, 32], sizes = [17, 8], strides = [1, 1]} : vector<17x96xf32> to vector<17x8xf32>
    %181 = vector.extract_strided_slice %178 {offsets = [0, 64], sizes = [17, 8], strides = [1, 1]} : vector<17x96xf32> to vector<17x8xf32>
    %cst_69 = arith.constant dense<0.000000e+00> : vector<17x17xf32>
    %182 = tpu.matmul %179, %180, %cst_69 {dimension_numbers = #tpu.dot_dimension_numbers<[1], [1], [0], [0], [0, 0, 1, 0], [], []>} : vector<17x8xf32>, vector<17x8xf32>, vector<17x17xf32> -> vector<17x17xf32>
    %cst_70 = arith.constant dense<0xFF800000> : vector<17xf32>
    %183 = vector.multi_reduction <maximumf>, %182, %cst_70 [1] : vector<17x17xf32> to vector<17xf32>
    %184 = vector.shape_cast %183 : vector<17xf32> to vector<17x1xf32>
    %185 = vector.broadcast %184 : vector<17x1xf32> to vector<17x17xf32>
    %186 = arith.subf %182, %185 : vector<17x17xf32>
    %187 = math.exp %186 : vector<17x17xf32>
    %cst_71 = arith.constant dense<0.000000e+00> : vector<17xf32>
    %188 = vector.multi_reduction <add>, %187, %cst_71 [1] : vector<17x17xf32> to vector<17xf32>
    %189 = vector.shape_cast %188 : vector<17xf32> to vector<17x1xf32>
    %190 = vector.broadcast %189 : vector<17x1xf32> to vector<17x17xf32>
    %191 = arith.divf %187, %190 : vector<17x17xf32>
    %cst_72 = arith.constant dense<0.000000e+00> : vector<17x8xf32>
    %192 = tpu.matmul %191, %181, %cst_72 {dimension_numbers = #tpu.dot_dimension_numbers<[1], [0], [0], [1], [0, 0, 1, 1], [], []>} : vector<17x17xf32>, vector<17x8xf32>, vector<17x8xf32> -> vector<17x8xf32>
    %193 = vector.extract_strided_slice %178 {offsets = [0, 8], sizes = [17, 8], strides = [1, 1]} : vector<17x96xf32> to vector<17x8xf32>
    %194 = vector.extract_strided_slice %178 {offsets = [0, 40], sizes = [17, 8], strides = [1, 1]} : vector<17x96xf32> to vector<17x8xf32>
    %195 = vector.extract_strided_slice %178 {offsets = [0, 72], sizes = [17, 8], strides = [1, 1]} : vector<17x96xf32> to vector<17x8xf32>
    %cst_73 = arith.constant dense<0.000000e+00> : vector<17x17xf32>
    %196 = tpu.matmul %193, %194, %cst_73 {dimension_numbers = #tpu.dot_dimension_numbers<[1], [1], [0], [0], [0, 0, 1, 0], [], []>} : vector<17x8xf32>, vector<17x8xf32>, vector<17x17xf32> -> vector<17x17xf32>
    %cst_74 = arith.constant dense<0xFF800000> : vector<17xf32>
    %197 = vector.multi_reduction <maximumf>, %196, %cst_74 [1] : vector<17x17xf32> to vector<17xf32>
    %198 = vector.shape_cast %197 : vector<17xf32> to vector<17x1xf32>
    %199 = vector.broadcast %198 : vector<17x1xf32> to vector<17x17xf32>
    %200 = arith.subf %196, %199 : vector<17x17xf32>
    %201 = math.exp %200 : vector<17x17xf32>
    %cst_75 = arith.constant dense<0.000000e+00> : vector<17xf32>
    %202 = vector.multi_reduction <add>, %201, %cst_75 [1] : vector<17x17xf32> to vector<17xf32>
    %203 = vector.shape_cast %202 : vector<17xf32> to vector<17x1xf32>
    %204 = vector.broadcast %203 : vector<17x1xf32> to vector<17x17xf32>
    %205 = arith.divf %201, %204 : vector<17x17xf32>
    %cst_76 = arith.constant dense<0.000000e+00> : vector<17x8xf32>
    %206 = tpu.matmul %205, %195, %cst_76 {dimension_numbers = #tpu.dot_dimension_numbers<[1], [0], [0], [1], [0, 0, 1, 1], [], []>} : vector<17x17xf32>, vector<17x8xf32>, vector<17x8xf32> -> vector<17x8xf32>
    %207 = vector.extract_strided_slice %178 {offsets = [0, 16], sizes = [17, 8], strides = [1, 1]} : vector<17x96xf32> to vector<17x8xf32>
    %208 = vector.extract_strided_slice %178 {offsets = [0, 48], sizes = [17, 8], strides = [1, 1]} : vector<17x96xf32> to vector<17x8xf32>
    %209 = vector.extract_strided_slice %178 {offsets = [0, 80], sizes = [17, 8], strides = [1, 1]} : vector<17x96xf32> to vector<17x8xf32>
    %cst_77 = arith.constant dense<0.000000e+00> : vector<17x17xf32>
    %210 = tpu.matmul %207, %208, %cst_77 {dimension_numbers = #tpu.dot_dimension_numbers<[1], [1], [0], [0], [0, 0, 1, 0], [], []>} : vector<17x8xf32>, vector<17x8xf32>, vector<17x17xf32> -> vector<17x17xf32>
    %cst_78 = arith.constant dense<0xFF800000> : vector<17xf32>
    %211 = vector.multi_reduction <maximumf>, %210, %cst_78 [1] : vector<17x17xf32> to vector<17xf32>
    %212 = vector.shape_cast %211 : vector<17xf32> to vector<17x1xf32>
    %213 = vector.broadcast %212 : vector<17x1xf32> to vector<17x17xf32>
    %214 = arith.subf %210, %213 : vector<17x17xf32>
    %215 = math.exp %214 : vector<17x17xf32>
    %cst_79 = arith.constant dense<0.000000e+00> : vector<17xf32>
    %216 = vector.multi_reduction <add>, %215, %cst_79 [1] : vector<17x17xf32> to vector<17xf32>
    %217 = vector.shape_cast %216 : vector<17xf32> to vector<17x1xf32>
    %218 = vector.broadcast %217 : vector<17x1xf32> to vector<17x17xf32>
    %219 = arith.divf %215, %218 : vector<17x17xf32>
    %cst_80 = arith.constant dense<0.000000e+00> : vector<17x8xf32>
    %220 = tpu.matmul %219, %209, %cst_80 {dimension_numbers = #tpu.dot_dimension_numbers<[1], [0], [0], [1], [0, 0, 1, 1], [], []>} : vector<17x17xf32>, vector<17x8xf32>, vector<17x8xf32> -> vector<17x8xf32>
    %221 = vector.extract_strided_slice %178 {offsets = [0, 24], sizes = [17, 8], strides = [1, 1]} : vector<17x96xf32> to vector<17x8xf32>
    %222 = vector.extract_strided_slice %178 {offsets = [0, 56], sizes = [17, 8], strides = [1, 1]} : vector<17x96xf32> to vector<17x8xf32>
    %223 = vector.extract_strided_slice %178 {offsets = [0, 88], sizes = [17, 8], strides = [1, 1]} : vector<17x96xf32> to vector<17x8xf32>
    %cst_81 = arith.constant dense<0.000000e+00> : vector<17x17xf32>
    %224 = tpu.matmul %221, %222, %cst_81 {dimension_numbers = #tpu.dot_dimension_numbers<[1], [1], [0], [0], [0, 0, 1, 0], [], []>} : vector<17x8xf32>, vector<17x8xf32>, vector<17x17xf32> -> vector<17x17xf32>
    %cst_82 = arith.constant dense<0xFF800000> : vector<17xf32>
    %225 = vector.multi_reduction <maximumf>, %224, %cst_82 [1] : vector<17x17xf32> to vector<17xf32>
    %226 = vector.shape_cast %225 : vector<17xf32> to vector<17x1xf32>
    %227 = vector.broadcast %226 : vector<17x1xf32> to vector<17x17xf32>
    %228 = arith.subf %224, %227 : vector<17x17xf32>
    %229 = math.exp %228 : vector<17x17xf32>
    %cst_83 = arith.constant dense<0.000000e+00> : vector<17xf32>
    %230 = vector.multi_reduction <add>, %229, %cst_83 [1] : vector<17x17xf32> to vector<17xf32>
    %231 = vector.shape_cast %230 : vector<17xf32> to vector<17x1xf32>
    %232 = vector.broadcast %231 : vector<17x1xf32> to vector<17x17xf32>
    %233 = arith.divf %229, %232 : vector<17x17xf32>
    %cst_84 = arith.constant dense<0.000000e+00> : vector<17x8xf32>
    %234 = tpu.matmul %233, %223, %cst_84 {dimension_numbers = #tpu.dot_dimension_numbers<[1], [0], [0], [1], [0, 0, 1, 1], [], []>} : vector<17x17xf32>, vector<17x8xf32>, vector<17x8xf32> -> vector<17x8xf32>
    %235 = tpu.concatenate %192, %206, %220, %234 in 1 : vector<17x8xf32>, vector<17x8xf32>, vector<17x8xf32>, vector<17x8xf32> -> vector<17x32xf32>
    %cst_85 = arith.constant dense<0.000000e+00> : vector<17x32xf32>
    %236 = tpu.matmul %235, %21, %cst_85 {dimension_numbers = #tpu.dot_dimension_numbers<[1], [0], [0], [1], [0, 0, 1, 1], [], []>} : vector<17x32xf32>, vector<32x32xf32>, vector<17x32xf32> -> vector<17x32xf32>
    %237 = vector.broadcast %13 : vector<1x32xf32> to vector<17x32xf32>
    %238 = arith.addf %236, %237 : vector<17x32xf32>
    %239 = arith.addf %9, %238 : vector<17x32xf32>
    %cst_86 = arith.constant dense<0.000000e+00> : vector<17xf32>
    %240 = vector.multi_reduction <add>, %239, %cst_86 [1] : vector<17x32xf32> to vector<17xf32>
    %241 = vector.shape_cast %240 : vector<17xf32> to vector<17x1xf32>
    %cst_87 = arith.constant 3.200000e+01 : f32
    %242 = vector.broadcast %cst_87 : f32 to vector<17x1xf32>
    %243 = arith.divf %241, %242 : vector<17x1xf32>
    %244 = vector.broadcast %243 : vector<17x1xf32> to vector<17x32xf32>
    %245 = arith.subf %239, %244 : vector<17x32xf32>
    %246 = arith.mulf %245, %245 : vector<17x32xf32>
    %cst_88 = arith.constant dense<0.000000e+00> : vector<17xf32>
    %247 = vector.multi_reduction <add>, %246, %cst_88 [1] : vector<17x32xf32> to vector<17xf32>
    %248 = vector.shape_cast %247 : vector<17xf32> to vector<17x1xf32>
    %cst_89 = arith.constant 3.200000e+01 : f32
    %249 = vector.broadcast %cst_89 : f32 to vector<17x1xf32>
    %250 = arith.divf %248, %249 : vector<17x1xf32>
    %251 = vector.broadcast %243 : vector<17x1xf32> to vector<17x32xf32>
    %252 = arith.subf %239, %251 : vector<17x32xf32>
    %cst_90 = arith.constant 9.99999974E-6 : f32
    %253 = vector.broadcast %cst_90 : f32 to vector<17x1xf32>
    %254 = arith.addf %250, %253 : vector<17x1xf32>
    %255 = math.rsqrt %254 : vector<17x1xf32>
    %256 = vector.broadcast %255 : vector<17x1xf32> to vector<17x32xf32>
    %257 = arith.mulf %252, %256 : vector<17x32xf32>
    %258 = vector.broadcast %14 : vector<1x32xf32> to vector<17x32xf32>
    %259 = arith.mulf %257, %258 : vector<17x32xf32>
    %260 = vector.broadcast %15 : vector<1x32xf32> to vector<17x32xf32>
    %261 = arith.addf %259, %260 : vector<17x32xf32>
    %cst_91 = arith.constant dense<0.000000e+00> : vector<17x128xf32>
    %262 = tpu.matmul %261, %23, %cst_91 {dimension_numbers = #tpu.dot_dimension_numbers<[1], [0], [0], [1], [0, 0, 1, 1], [], []>} : vector<17x32xf32>, vector<32x128xf32>, vector<17x128xf32> -> vector<17x128xf32>
    %263 = vector.broadcast %16 : vector<1x128xf32> to vector<17x128xf32>
    %264 = arith.addf %262, %263 : vector<17x128xf32>
    %265 = arith.mulf %264, %264 : vector<17x128xf32>
    %266 = arith.mulf %264, %265 : vector<17x128xf32>
    %cst_92 = arith.constant 4.471500e-02 : f32
    %267 = vector.broadcast %cst_92 : f32 to vector<17x128xf32>
    %268 = arith.mulf %267, %266 : vector<17x128xf32>
    %269 = arith.addf %264, %268 : vector<17x128xf32>
    %cst_93 = arith.constant 0.797884583 : f32
    %270 = vector.broadcast %cst_93 : f32 to vector<17x128xf32>
    %271 = arith.mulf %270, %269 : vector<17x128xf32>
    %272 = math.tanh %271 : vector<17x128xf32>
    %cst_94 = arith.constant 1.000000e+00 : f32
    %273 = vector.broadcast %cst_94 : f32 to vector<17x128xf32>
    %274 = arith.addf %273, %272 : vector<17x128xf32>
    %cst_95 = arith.constant 5.000000e-01 : f32
    %275 = vector.broadcast %cst_95 : f32 to vector<17x128xf32>
    %276 = arith.mulf %275, %274 : vector<17x128xf32>
    %277 = arith.mulf %264, %276 : vector<17x128xf32>
    %cst_96 = arith.constant dense<0.000000e+00> : vector<17x32xf32>
    %278 = tpu.matmul %277, %25, %cst_96 {dimension_numbers = #tpu.dot_dimension_numbers<[1], [0], [0], [1], [0, 0, 1, 1], [], []>} : vector<17x128xf32>, vector<128x32xf32>, vector<17x32xf32> -> vector<17x32xf32>
    %279 = arith.addf %239, %278 : vector<17x32xf32>
    %280 = vector.broadcast %17 : vector<1x32xf32> to vector<17x32xf32>
    %281 = arith.addf %279, %280 : vector<17x32xf32>
    %c25 = arith.constant 25 : index
    %c0_97 = arith.constant 0 : index
    %282 = vector.load %arg1[%c25, %c0_97] : memref<33x128xf32, #tpu.memory_space<vmem>>, vector<1x32xf32>
    %c26 = arith.constant 26 : index
    %c0_98 = arith.constant 0 : index
    %283 = vector.load %arg1[%c26, %c0_98] : memref<33x128xf32, #tpu.memory_space<vmem>>, vector<1x32xf32>
    %c27 = arith.constant 27 : index
    %c0_99 = arith.constant 0 : index
    %284 = vector.load %arg1[%c27, %c0_99] : memref<33x128xf32, #tpu.memory_space<vmem>>, vector<1x96xf32>
    %c28 = arith.constant 28 : index
    %c0_100 = arith.constant 0 : index
    %285 = vector.load %arg1[%c28, %c0_100] : memref<33x128xf32, #tpu.memory_space<vmem>>, vector<1x32xf32>
    %c29 = arith.constant 29 : index
    %c0_101 = arith.constant 0 : index
    %286 = vector.load %arg1[%c29, %c0_101] : memref<33x128xf32, #tpu.memory_space<vmem>>, vector<1x32xf32>
    %c30 = arith.constant 30 : index
    %c0_102 = arith.constant 0 : index
    %287 = vector.load %arg1[%c30, %c0_102] : memref<33x128xf32, #tpu.memory_space<vmem>>, vector<1x32xf32>
    %c31 = arith.constant 31 : index
    %c0_103 = arith.constant 0 : index
    %288 = vector.load %arg1[%c31, %c0_103] : memref<33x128xf32, #tpu.memory_space<vmem>>, vector<1x128xf32>
    %c32 = arith.constant 32 : index
    %c0_104 = arith.constant 0 : index
    %289 = vector.load %arg1[%c32, %c0_104] : memref<33x128xf32, #tpu.memory_space<vmem>>, vector<1x32xf32>
    %c1_105 = arith.constant 1 : index
    %c0_106 = arith.constant 0 : index
    %c0_107 = arith.constant 0 : index
    %290 = vector.load %arg3[%c1_105, %c0_106, %c0_107] : memref<2x32x96xf32, #tpu.memory_space<vmem>>, vector<1x32x96xf32>
    %291 = vector.shape_cast %290 : vector<1x32x96xf32> to vector<32x96xf32>
    %c1_108 = arith.constant 1 : index
    %c0_109 = arith.constant 0 : index
    %c0_110 = arith.constant 0 : index
    %292 = vector.load %arg4[%c1_108, %c0_109, %c0_110] : memref<2x32x32xf32, #tpu.memory_space<vmem>>, vector<1x32x32xf32>
    %293 = vector.shape_cast %292 : vector<1x32x32xf32> to vector<32x32xf32>
    %c1_111 = arith.constant 1 : index
    %c0_112 = arith.constant 0 : index
    %c0_113 = arith.constant 0 : index
    %294 = vector.load %arg5[%c1_111, %c0_112, %c0_113] : memref<2x32x128xf32, #tpu.memory_space<vmem>>, vector<1x32x128xf32>
    %295 = vector.shape_cast %294 : vector<1x32x128xf32> to vector<32x128xf32>
    %c1_114 = arith.constant 1 : index
    %c0_115 = arith.constant 0 : index
    %c0_116 = arith.constant 0 : index
    %296 = vector.load %arg6[%c1_114, %c0_115, %c0_116] : memref<2x128x32xf32, #tpu.memory_space<vmem>>, vector<1x128x32xf32>
    %297 = vector.shape_cast %296 : vector<1x128x32xf32> to vector<128x32xf32>
    %cst_117 = arith.constant dense<0.000000e+00> : vector<17xf32>
    %298 = vector.multi_reduction <add>, %153, %cst_117 [1] : vector<17x32xf32> to vector<17xf32>
    %299 = vector.shape_cast %298 : vector<17xf32> to vector<17x1xf32>
    %cst_118 = arith.constant 3.200000e+01 : f32
    %300 = vector.broadcast %cst_118 : f32 to vector<17x1xf32>
    %301 = arith.divf %299, %300 : vector<17x1xf32>
    %302 = vector.broadcast %301 : vector<17x1xf32> to vector<17x32xf32>
    %303 = arith.subf %153, %302 : vector<17x32xf32>
    %304 = arith.mulf %303, %303 : vector<17x32xf32>
    %cst_119 = arith.constant dense<0.000000e+00> : vector<17xf32>
    %305 = vector.multi_reduction <add>, %304, %cst_119 [1] : vector<17x32xf32> to vector<17xf32>
    %306 = vector.shape_cast %305 : vector<17xf32> to vector<17x1xf32>
    %cst_120 = arith.constant 3.200000e+01 : f32
    %307 = vector.broadcast %cst_120 : f32 to vector<17x1xf32>
    %308 = arith.divf %306, %307 : vector<17x1xf32>
    %309 = vector.broadcast %301 : vector<17x1xf32> to vector<17x32xf32>
    %310 = arith.subf %153, %309 : vector<17x32xf32>
    %cst_121 = arith.constant 9.99999974E-6 : f32
    %311 = vector.broadcast %cst_121 : f32 to vector<17x1xf32>
    %312 = arith.addf %308, %311 : vector<17x1xf32>
    %313 = math.rsqrt %312 : vector<17x1xf32>
    %314 = vector.broadcast %313 : vector<17x1xf32> to vector<17x32xf32>
    %315 = arith.mulf %310, %314 : vector<17x32xf32>
    %316 = vector.broadcast %282 : vector<1x32xf32> to vector<17x32xf32>
    %317 = arith.mulf %315, %316 : vector<17x32xf32>
    %318 = vector.broadcast %283 : vector<1x32xf32> to vector<17x32xf32>
    %319 = arith.addf %317, %318 : vector<17x32xf32>
    %cst_122 = arith.constant dense<0.000000e+00> : vector<17x96xf32>
    %320 = tpu.matmul %319, %291, %cst_122 {dimension_numbers = #tpu.dot_dimension_numbers<[1], [0], [0], [1], [0, 0, 1, 1], [], []>} : vector<17x32xf32>, vector<32x96xf32>, vector<17x96xf32> -> vector<17x96xf32>
    %321 = vector.broadcast %284 : vector<1x96xf32> to vector<17x96xf32>
    %322 = arith.addf %320, %321 : vector<17x96xf32>
    %323 = vector.extract_strided_slice %322 {offsets = [0, 0], sizes = [17, 8], strides = [1, 1]} : vector<17x96xf32> to vector<17x8xf32>
    %324 = vector.extract_strided_slice %322 {offsets = [0, 32], sizes = [17, 8], strides = [1, 1]} : vector<17x96xf32> to vector<17x8xf32>
    %325 = vector.extract_strided_slice %322 {offsets = [0, 64], sizes = [17, 8], strides = [1, 1]} : vector<17x96xf32> to vector<17x8xf32>
    %cst_123 = arith.constant dense<0.000000e+00> : vector<17x17xf32>
    %326 = tpu.matmul %323, %324, %cst_123 {dimension_numbers = #tpu.dot_dimension_numbers<[1], [1], [0], [0], [0, 0, 1, 0], [], []>} : vector<17x8xf32>, vector<17x8xf32>, vector<17x17xf32> -> vector<17x17xf32>
    %cst_124 = arith.constant dense<0xFF800000> : vector<17xf32>
    %327 = vector.multi_reduction <maximumf>, %326, %cst_124 [1] : vector<17x17xf32> to vector<17xf32>
    %328 = vector.shape_cast %327 : vector<17xf32> to vector<17x1xf32>
    %329 = vector.broadcast %328 : vector<17x1xf32> to vector<17x17xf32>
    %330 = arith.subf %326, %329 : vector<17x17xf32>
    %331 = math.exp %330 : vector<17x17xf32>
    %cst_125 = arith.constant dense<0.000000e+00> : vector<17xf32>
    %332 = vector.multi_reduction <add>, %331, %cst_125 [1] : vector<17x17xf32> to vector<17xf32>
    %333 = vector.shape_cast %332 : vector<17xf32> to vector<17x1xf32>
    %334 = vector.broadcast %333 : vector<17x1xf32> to vector<17x17xf32>
    %335 = arith.divf %331, %334 : vector<17x17xf32>
    %cst_126 = arith.constant dense<0.000000e+00> : vector<17x8xf32>
    %336 = tpu.matmul %335, %325, %cst_126 {dimension_numbers = #tpu.dot_dimension_numbers<[1], [0], [0], [1], [0, 0, 1, 1], [], []>} : vector<17x17xf32>, vector<17x8xf32>, vector<17x8xf32> -> vector<17x8xf32>
    %337 = vector.extract_strided_slice %322 {offsets = [0, 8], sizes = [17, 8], strides = [1, 1]} : vector<17x96xf32> to vector<17x8xf32>
    %338 = vector.extract_strided_slice %322 {offsets = [0, 40], sizes = [17, 8], strides = [1, 1]} : vector<17x96xf32> to vector<17x8xf32>
    %339 = vector.extract_strided_slice %322 {offsets = [0, 72], sizes = [17, 8], strides = [1, 1]} : vector<17x96xf32> to vector<17x8xf32>
    %cst_127 = arith.constant dense<0.000000e+00> : vector<17x17xf32>
    %340 = tpu.matmul %337, %338, %cst_127 {dimension_numbers = #tpu.dot_dimension_numbers<[1], [1], [0], [0], [0, 0, 1, 0], [], []>} : vector<17x8xf32>, vector<17x8xf32>, vector<17x17xf32> -> vector<17x17xf32>
    %cst_128 = arith.constant dense<0xFF800000> : vector<17xf32>
    %341 = vector.multi_reduction <maximumf>, %340, %cst_128 [1] : vector<17x17xf32> to vector<17xf32>
    %342 = vector.shape_cast %341 : vector<17xf32> to vector<17x1xf32>
    %343 = vector.broadcast %342 : vector<17x1xf32> to vector<17x17xf32>
    %344 = arith.subf %340, %343 : vector<17x17xf32>
    %345 = math.exp %344 : vector<17x17xf32>
    %cst_129 = arith.constant dense<0.000000e+00> : vector<17xf32>
    %346 = vector.multi_reduction <add>, %345, %cst_129 [1] : vector<17x17xf32> to vector<17xf32>
    %347 = vector.shape_cast %346 : vector<17xf32> to vector<17x1xf32>
    %348 = vector.broadcast %347 : vector<17x1xf32> to vector<17x17xf32>
    %349 = arith.divf %345, %348 : vector<17x17xf32>
    %cst_130 = arith.constant dense<0.000000e+00> : vector<17x8xf32>
    %350 = tpu.matmul %349, %339, %cst_130 {dimension_numbers = #tpu.dot_dimension_numbers<[1], [0], [0], [1], [0, 0, 1, 1], [], []>} : vector<17x17xf32>, vector<17x8xf32>, vector<17x8xf32> -> vector<17x8xf32>
    %351 = vector.extract_strided_slice %322 {offsets = [0, 16], sizes = [17, 8], strides = [1, 1]} : vector<17x96xf32> to vector<17x8xf32>
    %352 = vector.extract_strided_slice %322 {offsets = [0, 48], sizes = [17, 8], strides = [1, 1]} : vector<17x96xf32> to vector<17x8xf32>
    %353 = vector.extract_strided_slice %322 {offsets = [0, 80], sizes = [17, 8], strides = [1, 1]} : vector<17x96xf32> to vector<17x8xf32>
    %cst_131 = arith.constant dense<0.000000e+00> : vector<17x17xf32>
    %354 = tpu.matmul %351, %352, %cst_131 {dimension_numbers = #tpu.dot_dimension_numbers<[1], [1], [0], [0], [0, 0, 1, 0], [], []>} : vector<17x8xf32>, vector<17x8xf32>, vector<17x17xf32> -> vector<17x17xf32>
    %cst_132 = arith.constant dense<0xFF800000> : vector<17xf32>
    %355 = vector.multi_reduction <maximumf>, %354, %cst_132 [1] : vector<17x17xf32> to vector<17xf32>
    %356 = vector.shape_cast %355 : vector<17xf32> to vector<17x1xf32>
    %357 = vector.broadcast %356 : vector<17x1xf32> to vector<17x17xf32>
    %358 = arith.subf %354, %357 : vector<17x17xf32>
    %359 = math.exp %358 : vector<17x17xf32>
    %cst_133 = arith.constant dense<0.000000e+00> : vector<17xf32>
    %360 = vector.multi_reduction <add>, %359, %cst_133 [1] : vector<17x17xf32> to vector<17xf32>
    %361 = vector.shape_cast %360 : vector<17xf32> to vector<17x1xf32>
    %362 = vector.broadcast %361 : vector<17x1xf32> to vector<17x17xf32>
    %363 = arith.divf %359, %362 : vector<17x17xf32>
    %cst_134 = arith.constant dense<0.000000e+00> : vector<17x8xf32>
    %364 = tpu.matmul %363, %353, %cst_134 {dimension_numbers = #tpu.dot_dimension_numbers<[1], [0], [0], [1], [0, 0, 1, 1], [], []>} : vector<17x17xf32>, vector<17x8xf32>, vector<17x8xf32> -> vector<17x8xf32>
    %365 = vector.extract_strided_slice %322 {offsets = [0, 24], sizes = [17, 8], strides = [1, 1]} : vector<17x96xf32> to vector<17x8xf32>
    %366 = vector.extract_strided_slice %322 {offsets = [0, 56], sizes = [17, 8], strides = [1, 1]} : vector<17x96xf32> to vector<17x8xf32>
    %367 = vector.extract_strided_slice %322 {offsets = [0, 88], sizes = [17, 8], strides = [1, 1]} : vector<17x96xf32> to vector<17x8xf32>
    %cst_135 = arith.constant dense<0.000000e+00> : vector<17x17xf32>
    %368 = tpu.matmul %365, %366, %cst_135 {dimension_numbers = #tpu.dot_dimension_numbers<[1], [1], [0], [0], [0, 0, 1, 0], [], []>} : vector<17x8xf32>, vector<17x8xf32>, vector<17x17xf32> -> vector<17x17xf32>
    %cst_136 = arith.constant dense<0xFF800000> : vector<17xf32>
    %369 = vector.multi_reduction <maximumf>, %368, %cst_136 [1] : vector<17x17xf32> to vector<17xf32>
    %370 = vector.shape_cast %369 : vector<17xf32> to vector<17x1xf32>
    %371 = vector.broadcast %370 : vector<17x1xf32> to vector<17x17xf32>
    %372 = arith.subf %368, %371 : vector<17x17xf32>
    %373 = math.exp %372 : vector<17x17xf32>
    %cst_137 = arith.constant dense<0.000000e+00> : vector<17xf32>
    %374 = vector.multi_reduction <add>, %373, %cst_137 [1] : vector<17x17xf32> to vector<17xf32>
    %375 = vector.shape_cast %374 : vector<17xf32> to vector<17x1xf32>
    %376 = vector.broadcast %375 : vector<17x1xf32> to vector<17x17xf32>
    %377 = arith.divf %373, %376 : vector<17x17xf32>
    %cst_138 = arith.constant dense<0.000000e+00> : vector<17x8xf32>
    %378 = tpu.matmul %377, %367, %cst_138 {dimension_numbers = #tpu.dot_dimension_numbers<[1], [0], [0], [1], [0, 0, 1, 1], [], []>} : vector<17x17xf32>, vector<17x8xf32>, vector<17x8xf32> -> vector<17x8xf32>
    %379 = tpu.concatenate %336, %350, %364, %378 in 1 : vector<17x8xf32>, vector<17x8xf32>, vector<17x8xf32>, vector<17x8xf32> -> vector<17x32xf32>
    %cst_139 = arith.constant dense<0.000000e+00> : vector<17x32xf32>
    %380 = tpu.matmul %379, %293, %cst_139 {dimension_numbers = #tpu.dot_dimension_numbers<[1], [0], [0], [1], [0, 0, 1, 1], [], []>} : vector<17x32xf32>, vector<32x32xf32>, vector<17x32xf32> -> vector<17x32xf32>
    %381 = vector.broadcast %285 : vector<1x32xf32> to vector<17x32xf32>
    %382 = arith.addf %380, %381 : vector<17x32xf32>
    %383 = arith.addf %153, %382 : vector<17x32xf32>
    %cst_140 = arith.constant dense<0.000000e+00> : vector<17xf32>
    %384 = vector.multi_reduction <add>, %383, %cst_140 [1] : vector<17x32xf32> to vector<17xf32>
    %385 = vector.shape_cast %384 : vector<17xf32> to vector<17x1xf32>
    %cst_141 = arith.constant 3.200000e+01 : f32
    %386 = vector.broadcast %cst_141 : f32 to vector<17x1xf32>
    %387 = arith.divf %385, %386 : vector<17x1xf32>
    %388 = vector.broadcast %387 : vector<17x1xf32> to vector<17x32xf32>
    %389 = arith.subf %383, %388 : vector<17x32xf32>
    %390 = arith.mulf %389, %389 : vector<17x32xf32>
    %cst_142 = arith.constant dense<0.000000e+00> : vector<17xf32>
    %391 = vector.multi_reduction <add>, %390, %cst_142 [1] : vector<17x32xf32> to vector<17xf32>
    %392 = vector.shape_cast %391 : vector<17xf32> to vector<17x1xf32>
    %cst_143 = arith.constant 3.200000e+01 : f32
    %393 = vector.broadcast %cst_143 : f32 to vector<17x1xf32>
    %394 = arith.divf %392, %393 : vector<17x1xf32>
    %395 = vector.broadcast %387 : vector<17x1xf32> to vector<17x32xf32>
    %396 = arith.subf %383, %395 : vector<17x32xf32>
    %cst_144 = arith.constant 9.99999974E-6 : f32
    %397 = vector.broadcast %cst_144 : f32 to vector<17x1xf32>
    %398 = arith.addf %394, %397 : vector<17x1xf32>
    %399 = math.rsqrt %398 : vector<17x1xf32>
    %400 = vector.broadcast %399 : vector<17x1xf32> to vector<17x32xf32>
    %401 = arith.mulf %396, %400 : vector<17x32xf32>
    %402 = vector.broadcast %286 : vector<1x32xf32> to vector<17x32xf32>
    %403 = arith.mulf %401, %402 : vector<17x32xf32>
    %404 = vector.broadcast %287 : vector<1x32xf32> to vector<17x32xf32>
    %405 = arith.addf %403, %404 : vector<17x32xf32>
    %cst_145 = arith.constant dense<0.000000e+00> : vector<17x128xf32>
    %406 = tpu.matmul %405, %295, %cst_145 {dimension_numbers = #tpu.dot_dimension_numbers<[1], [0], [0], [1], [0, 0, 1, 1], [], []>} : vector<17x32xf32>, vector<32x128xf32>, vector<17x128xf32> -> vector<17x128xf32>
    %407 = vector.broadcast %288 : vector<1x128xf32> to vector<17x128xf32>
    %408 = arith.addf %406, %407 : vector<17x128xf32>
    %409 = arith.mulf %408, %408 : vector<17x128xf32>
    %410 = arith.mulf %408, %409 : vector<17x128xf32>
    %cst_146 = arith.constant 4.471500e-02 : f32
    %411 = vector.broadcast %cst_146 : f32 to vector<17x128xf32>
    %412 = arith.mulf %411, %410 : vector<17x128xf32>
    %413 = arith.addf %408, %412 : vector<17x128xf32>
    %cst_147 = arith.constant 0.797884583 : f32
    %414 = vector.broadcast %cst_147 : f32 to vector<17x128xf32>
    %415 = arith.mulf %414, %413 : vector<17x128xf32>
    %416 = math.tanh %415 : vector<17x128xf32>
    %cst_148 = arith.constant 1.000000e+00 : f32
    %417 = vector.broadcast %cst_148 : f32 to vector<17x128xf32>
    %418 = arith.addf %417, %416 : vector<17x128xf32>
    %cst_149 = arith.constant 5.000000e-01 : f32
    %419 = vector.broadcast %cst_149 : f32 to vector<17x128xf32>
    %420 = arith.mulf %419, %418 : vector<17x128xf32>
    %421 = arith.mulf %408, %420 : vector<17x128xf32>
    %cst_150 = arith.constant dense<0.000000e+00> : vector<17x32xf32>
    %422 = tpu.matmul %421, %297, %cst_150 {dimension_numbers = #tpu.dot_dimension_numbers<[1], [0], [0], [1], [0, 0, 1, 1], [], []>} : vector<17x128xf32>, vector<128x32xf32>, vector<17x32xf32> -> vector<17x32xf32>
    %423 = arith.addf %383, %422 : vector<17x32xf32>
    %424 = vector.broadcast %289 : vector<1x32xf32> to vector<17x32xf32>
    %425 = arith.addf %423, %424 : vector<17x32xf32>
    %cst_151 = arith.constant dense<0.000000e+00> : vector<17xf32>
    %426 = vector.multi_reduction <add>, %281, %cst_151 [1] : vector<17x32xf32> to vector<17xf32>
    %427 = vector.shape_cast %426 : vector<17xf32> to vector<17x1xf32>
    %cst_152 = arith.constant 3.200000e+01 : f32
    %428 = vector.broadcast %cst_152 : f32 to vector<17x1xf32>
    %429 = arith.divf %427, %428 : vector<17x1xf32>
    %430 = vector.broadcast %429 : vector<17x1xf32> to vector<17x32xf32>
    %431 = arith.subf %281, %430 : vector<17x32xf32>
    %432 = arith.mulf %431, %431 : vector<17x32xf32>
    %cst_153 = arith.constant dense<0.000000e+00> : vector<17xf32>
    %433 = vector.multi_reduction <add>, %432, %cst_153 [1] : vector<17x32xf32> to vector<17xf32>
    %434 = vector.shape_cast %433 : vector<17xf32> to vector<17x1xf32>
    %cst_154 = arith.constant 3.200000e+01 : f32
    %435 = vector.broadcast %cst_154 : f32 to vector<17x1xf32>
    %436 = arith.divf %434, %435 : vector<17x1xf32>
    %437 = vector.broadcast %429 : vector<17x1xf32> to vector<17x32xf32>
    %438 = arith.subf %281, %437 : vector<17x32xf32>
    %cst_155 = arith.constant 9.99999974E-6 : f32
    %439 = vector.broadcast %cst_155 : f32 to vector<17x1xf32>
    %440 = arith.addf %436, %439 : vector<17x1xf32>
    %441 = math.rsqrt %440 : vector<17x1xf32>
    %442 = vector.broadcast %441 : vector<17x1xf32> to vector<17x32xf32>
    %443 = arith.mulf %438, %442 : vector<17x32xf32>
    %444 = vector.broadcast %282 : vector<1x32xf32> to vector<17x32xf32>
    %445 = arith.mulf %443, %444 : vector<17x32xf32>
    %446 = vector.broadcast %283 : vector<1x32xf32> to vector<17x32xf32>
    %447 = arith.addf %445, %446 : vector<17x32xf32>
    %cst_156 = arith.constant dense<0.000000e+00> : vector<17x96xf32>
    %448 = tpu.matmul %447, %291, %cst_156 {dimension_numbers = #tpu.dot_dimension_numbers<[1], [0], [0], [1], [0, 0, 1, 1], [], []>} : vector<17x32xf32>, vector<32x96xf32>, vector<17x96xf32> -> vector<17x96xf32>
    %449 = vector.broadcast %284 : vector<1x96xf32> to vector<17x96xf32>
    %450 = arith.addf %448, %449 : vector<17x96xf32>
    %451 = vector.extract_strided_slice %450 {offsets = [0, 0], sizes = [17, 8], strides = [1, 1]} : vector<17x96xf32> to vector<17x8xf32>
    %452 = vector.extract_strided_slice %450 {offsets = [0, 32], sizes = [17, 8], strides = [1, 1]} : vector<17x96xf32> to vector<17x8xf32>
    %453 = vector.extract_strided_slice %450 {offsets = [0, 64], sizes = [17, 8], strides = [1, 1]} : vector<17x96xf32> to vector<17x8xf32>
    %cst_157 = arith.constant dense<0.000000e+00> : vector<17x17xf32>
    %454 = tpu.matmul %451, %452, %cst_157 {dimension_numbers = #tpu.dot_dimension_numbers<[1], [1], [0], [0], [0, 0, 1, 0], [], []>} : vector<17x8xf32>, vector<17x8xf32>, vector<17x17xf32> -> vector<17x17xf32>
    %cst_158 = arith.constant dense<0xFF800000> : vector<17xf32>
    %455 = vector.multi_reduction <maximumf>, %454, %cst_158 [1] : vector<17x17xf32> to vector<17xf32>
    %456 = vector.shape_cast %455 : vector<17xf32> to vector<17x1xf32>
    %457 = vector.broadcast %456 : vector<17x1xf32> to vector<17x17xf32>
    %458 = arith.subf %454, %457 : vector<17x17xf32>
    %459 = math.exp %458 : vector<17x17xf32>
    %cst_159 = arith.constant dense<0.000000e+00> : vector<17xf32>
    %460 = vector.multi_reduction <add>, %459, %cst_159 [1] : vector<17x17xf32> to vector<17xf32>
    %461 = vector.shape_cast %460 : vector<17xf32> to vector<17x1xf32>
    %462 = vector.broadcast %461 : vector<17x1xf32> to vector<17x17xf32>
    %463 = arith.divf %459, %462 : vector<17x17xf32>
    %cst_160 = arith.constant dense<0.000000e+00> : vector<17x8xf32>
    %464 = tpu.matmul %463, %453, %cst_160 {dimension_numbers = #tpu.dot_dimension_numbers<[1], [0], [0], [1], [0, 0, 1, 1], [], []>} : vector<17x17xf32>, vector<17x8xf32>, vector<17x8xf32> -> vector<17x8xf32>
    %465 = vector.extract_strided_slice %450 {offsets = [0, 8], sizes = [17, 8], strides = [1, 1]} : vector<17x96xf32> to vector<17x8xf32>
    %466 = vector.extract_strided_slice %450 {offsets = [0, 40], sizes = [17, 8], strides = [1, 1]} : vector<17x96xf32> to vector<17x8xf32>
    %467 = vector.extract_strided_slice %450 {offsets = [0, 72], sizes = [17, 8], strides = [1, 1]} : vector<17x96xf32> to vector<17x8xf32>
    %cst_161 = arith.constant dense<0.000000e+00> : vector<17x17xf32>
    %468 = tpu.matmul %465, %466, %cst_161 {dimension_numbers = #tpu.dot_dimension_numbers<[1], [1], [0], [0], [0, 0, 1, 0], [], []>} : vector<17x8xf32>, vector<17x8xf32>, vector<17x17xf32> -> vector<17x17xf32>
    %cst_162 = arith.constant dense<0xFF800000> : vector<17xf32>
    %469 = vector.multi_reduction <maximumf>, %468, %cst_162 [1] : vector<17x17xf32> to vector<17xf32>
    %470 = vector.shape_cast %469 : vector<17xf32> to vector<17x1xf32>
    %471 = vector.broadcast %470 : vector<17x1xf32> to vector<17x17xf32>
    %472 = arith.subf %468, %471 : vector<17x17xf32>
    %473 = math.exp %472 : vector<17x17xf32>
    %cst_163 = arith.constant dense<0.000000e+00> : vector<17xf32>
    %474 = vector.multi_reduction <add>, %473, %cst_163 [1] : vector<17x17xf32> to vector<17xf32>
    %475 = vector.shape_cast %474 : vector<17xf32> to vector<17x1xf32>
    %476 = vector.broadcast %475 : vector<17x1xf32> to vector<17x17xf32>
    %477 = arith.divf %473, %476 : vector<17x17xf32>
    %cst_164 = arith.constant dense<0.000000e+00> : vector<17x8xf32>
    %478 = tpu.matmul %477, %467, %cst_164 {dimension_numbers = #tpu.dot_dimension_numbers<[1], [0], [0], [1], [0, 0, 1, 1], [], []>} : vector<17x17xf32>, vector<17x8xf32>, vector<17x8xf32> -> vector<17x8xf32>
    %479 = vector.extract_strided_slice %450 {offsets = [0, 16], sizes = [17, 8], strides = [1, 1]} : vector<17x96xf32> to vector<17x8xf32>
    %480 = vector.extract_strided_slice %450 {offsets = [0, 48], sizes = [17, 8], strides = [1, 1]} : vector<17x96xf32> to vector<17x8xf32>
    %481 = vector.extract_strided_slice %450 {offsets = [0, 80], sizes = [17, 8], strides = [1, 1]} : vector<17x96xf32> to vector<17x8xf32>
    %cst_165 = arith.constant dense<0.000000e+00> : vector<17x17xf32>
    %482 = tpu.matmul %479, %480, %cst_165 {dimension_numbers = #tpu.dot_dimension_numbers<[1], [1], [0], [0], [0, 0, 1, 0], [], []>} : vector<17x8xf32>, vector<17x8xf32>, vector<17x17xf32> -> vector<17x17xf32>
    %cst_166 = arith.constant dense<0xFF800000> : vector<17xf32>
    %483 = vector.multi_reduction <maximumf>, %482, %cst_166 [1] : vector<17x17xf32> to vector<17xf32>
    %484 = vector.shape_cast %483 : vector<17xf32> to vector<17x1xf32>
    %485 = vector.broadcast %484 : vector<17x1xf32> to vector<17x17xf32>
    %486 = arith.subf %482, %485 : vector<17x17xf32>
    %487 = math.exp %486 : vector<17x17xf32>
    %cst_167 = arith.constant dense<0.000000e+00> : vector<17xf32>
    %488 = vector.multi_reduction <add>, %487, %cst_167 [1] : vector<17x17xf32> to vector<17xf32>
    %489 = vector.shape_cast %488 : vector<17xf32> to vector<17x1xf32>
    %490 = vector.broadcast %489 : vector<17x1xf32> to vector<17x17xf32>
    %491 = arith.divf %487, %490 : vector<17x17xf32>
    %cst_168 = arith.constant dense<0.000000e+00> : vector<17x8xf32>
    %492 = tpu.matmul %491, %481, %cst_168 {dimension_numbers = #tpu.dot_dimension_numbers<[1], [0], [0], [1], [0, 0, 1, 1], [], []>} : vector<17x17xf32>, vector<17x8xf32>, vector<17x8xf32> -> vector<17x8xf32>
    %493 = vector.extract_strided_slice %450 {offsets = [0, 24], sizes = [17, 8], strides = [1, 1]} : vector<17x96xf32> to vector<17x8xf32>
    %494 = vector.extract_strided_slice %450 {offsets = [0, 56], sizes = [17, 8], strides = [1, 1]} : vector<17x96xf32> to vector<17x8xf32>
    %495 = vector.extract_strided_slice %450 {offsets = [0, 88], sizes = [17, 8], strides = [1, 1]} : vector<17x96xf32> to vector<17x8xf32>
    %cst_169 = arith.constant dense<0.000000e+00> : vector<17x17xf32>
    %496 = tpu.matmul %493, %494, %cst_169 {dimension_numbers = #tpu.dot_dimension_numbers<[1], [1], [0], [0], [0, 0, 1, 0], [], []>} : vector<17x8xf32>, vector<17x8xf32>, vector<17x17xf32> -> vector<17x17xf32>
    %cst_170 = arith.constant dense<0xFF800000> : vector<17xf32>
    %497 = vector.multi_reduction <maximumf>, %496, %cst_170 [1] : vector<17x17xf32> to vector<17xf32>
    %498 = vector.shape_cast %497 : vector<17xf32> to vector<17x1xf32>
    %499 = vector.broadcast %498 : vector<17x1xf32> to vector<17x17xf32>
    %500 = arith.subf %496, %499 : vector<17x17xf32>
    %501 = math.exp %500 : vector<17x17xf32>
    %cst_171 = arith.constant dense<0.000000e+00> : vector<17xf32>
    %502 = vector.multi_reduction <add>, %501, %cst_171 [1] : vector<17x17xf32> to vector<17xf32>
    %503 = vector.shape_cast %502 : vector<17xf32> to vector<17x1xf32>
    %504 = vector.broadcast %503 : vector<17x1xf32> to vector<17x17xf32>
    %505 = arith.divf %501, %504 : vector<17x17xf32>
    %cst_172 = arith.constant dense<0.000000e+00> : vector<17x8xf32>
    %506 = tpu.matmul %505, %495, %cst_172 {dimension_numbers = #tpu.dot_dimension_numbers<[1], [0], [0], [1], [0, 0, 1, 1], [], []>} : vector<17x17xf32>, vector<17x8xf32>, vector<17x8xf32> -> vector<17x8xf32>
    %507 = tpu.concatenate %464, %478, %492, %506 in 1 : vector<17x8xf32>, vector<17x8xf32>, vector<17x8xf32>, vector<17x8xf32> -> vector<17x32xf32>
    %cst_173 = arith.constant dense<0.000000e+00> : vector<17x32xf32>
    %508 = tpu.matmul %507, %293, %cst_173 {dimension_numbers = #tpu.dot_dimension_numbers<[1], [0], [0], [1], [0, 0, 1, 1], [], []>} : vector<17x32xf32>, vector<32x32xf32>, vector<17x32xf32> -> vector<17x32xf32>
    %509 = vector.broadcast %285 : vector<1x32xf32> to vector<17x32xf32>
    %510 = arith.addf %508, %509 : vector<17x32xf32>
    %511 = arith.addf %281, %510 : vector<17x32xf32>
    %cst_174 = arith.constant dense<0.000000e+00> : vector<17xf32>
    %512 = vector.multi_reduction <add>, %511, %cst_174 [1] : vector<17x32xf32> to vector<17xf32>
    %513 = vector.shape_cast %512 : vector<17xf32> to vector<17x1xf32>
    %cst_175 = arith.constant 3.200000e+01 : f32
    %514 = vector.broadcast %cst_175 : f32 to vector<17x1xf32>
    %515 = arith.divf %513, %514 : vector<17x1xf32>
    %516 = vector.broadcast %515 : vector<17x1xf32> to vector<17x32xf32>
    %517 = arith.subf %511, %516 : vector<17x32xf32>
    %518 = arith.mulf %517, %517 : vector<17x32xf32>
    %cst_176 = arith.constant dense<0.000000e+00> : vector<17xf32>
    %519 = vector.multi_reduction <add>, %518, %cst_176 [1] : vector<17x32xf32> to vector<17xf32>
    %520 = vector.shape_cast %519 : vector<17xf32> to vector<17x1xf32>
    %cst_177 = arith.constant 3.200000e+01 : f32
    %521 = vector.broadcast %cst_177 : f32 to vector<17x1xf32>
    %522 = arith.divf %520, %521 : vector<17x1xf32>
    %523 = vector.broadcast %515 : vector<17x1xf32> to vector<17x32xf32>
    %524 = arith.subf %511, %523 : vector<17x32xf32>
    %cst_178 = arith.constant 9.99999974E-6 : f32
    %525 = vector.broadcast %cst_178 : f32 to vector<17x1xf32>
    %526 = arith.addf %522, %525 : vector<17x1xf32>
    %527 = math.rsqrt %526 : vector<17x1xf32>
    %528 = vector.broadcast %527 : vector<17x1xf32> to vector<17x32xf32>
    %529 = arith.mulf %524, %528 : vector<17x32xf32>
    %530 = vector.broadcast %286 : vector<1x32xf32> to vector<17x32xf32>
    %531 = arith.mulf %529, %530 : vector<17x32xf32>
    %532 = vector.broadcast %287 : vector<1x32xf32> to vector<17x32xf32>
    %533 = arith.addf %531, %532 : vector<17x32xf32>
    %cst_179 = arith.constant dense<0.000000e+00> : vector<17x128xf32>
    %534 = tpu.matmul %533, %295, %cst_179 {dimension_numbers = #tpu.dot_dimension_numbers<[1], [0], [0], [1], [0, 0, 1, 1], [], []>} : vector<17x32xf32>, vector<32x128xf32>, vector<17x128xf32> -> vector<17x128xf32>
    %535 = vector.broadcast %288 : vector<1x128xf32> to vector<17x128xf32>
    %536 = arith.addf %534, %535 : vector<17x128xf32>
    %537 = arith.mulf %536, %536 : vector<17x128xf32>
    %538 = arith.mulf %536, %537 : vector<17x128xf32>
    %cst_180 = arith.constant 4.471500e-02 : f32
    %539 = vector.broadcast %cst_180 : f32 to vector<17x128xf32>
    %540 = arith.mulf %539, %538 : vector<17x128xf32>
    %541 = arith.addf %536, %540 : vector<17x128xf32>
    %cst_181 = arith.constant 0.797884583 : f32
    %542 = vector.broadcast %cst_181 : f32 to vector<17x128xf32>
    %543 = arith.mulf %542, %541 : vector<17x128xf32>
    %544 = math.tanh %543 : vector<17x128xf32>
    %cst_182 = arith.constant 1.000000e+00 : f32
    %545 = vector.broadcast %cst_182 : f32 to vector<17x128xf32>
    %546 = arith.addf %545, %544 : vector<17x128xf32>
    %cst_183 = arith.constant 5.000000e-01 : f32
    %547 = vector.broadcast %cst_183 : f32 to vector<17x128xf32>
    %548 = arith.mulf %547, %546 : vector<17x128xf32>
    %549 = arith.mulf %536, %548 : vector<17x128xf32>
    %cst_184 = arith.constant dense<0.000000e+00> : vector<17x32xf32>
    %550 = tpu.matmul %549, %297, %cst_184 {dimension_numbers = #tpu.dot_dimension_numbers<[1], [0], [0], [1], [0, 0, 1, 1], [], []>} : vector<17x128xf32>, vector<128x32xf32>, vector<17x32xf32> -> vector<17x32xf32>
    %551 = arith.addf %511, %550 : vector<17x32xf32>
    %552 = vector.broadcast %289 : vector<1x32xf32> to vector<17x32xf32>
    %553 = arith.addf %551, %552 : vector<17x32xf32>
    %c0_185 = arith.constant 0 : index
    %c0_186 = arith.constant 0 : index
    %554 = vector.load %arg7[%c0_185, %c0_186] : memref<32x16xf32, #tpu.memory_space<vmem>>, vector<32x16xf32>
    %555 = vector.extract_strided_slice %425 {offsets = [16, 0], sizes = [1, 32], strides = [1, 1]} : vector<17x32xf32> to vector<1x32xf32>
    %cst_187 = arith.constant dense<0.000000e+00> : vector<1x16xf32>
    %556 = tpu.matmul %555, %554, %cst_187 {dimension_numbers = #tpu.dot_dimension_numbers<[1], [0], [0], [1], [0, 0, 1, 1], [], []>} : vector<1x32xf32>, vector<32x16xf32>, vector<1x16xf32> -> vector<1x16xf32>
    %557 = arith.mulf %556, %556 : vector<1x16xf32>
    %cst_188 = arith.constant dense<0.000000e+00> : vector<1xf32>
    %558 = vector.multi_reduction <add>, %557, %cst_188 [1] : vector<1x16xf32> to vector<1xf32>
    %559 = vector.shape_cast %558 : vector<1xf32> to vector<1x1xf32>
    %560 = math.sqrt %559 : vector<1x1xf32>
    %561 = vector.broadcast %560 : vector<1x1xf32> to vector<1x16xf32>
    %562 = arith.divf %556, %561 : vector<1x16xf32>
    %c0_189 = arith.constant 0 : index
    %c0_190 = arith.constant 0 : index
    %563 = vector.load %arg8[%c0_189, %c0_190] : memref<2x16xf32, #tpu.memory_space<vmem>>, vector<1x16xf32>
    tpu.vector_store %arg8[%c0_189, %c0_190], %562 {strides = array<i32>} : memref<2x16xf32, #tpu.memory_space<vmem>>, vector<1x16xf32>,
    %564 = vector.extract_strided_slice %553 {offsets = [16, 0], sizes = [1, 32], strides = [1, 1]} : vector<17x32xf32> to vector<1x32xf32>
    %cst_191 = arith.constant dense<0.000000e+00> : vector<1x16xf32>
    %565 = tpu.matmul %564, %554, %cst_191 {dimension_numbers = #tpu.dot_dimension_numbers<[1], [0], [0], [1], [0, 0, 1, 1], [], []>} : vector<1x32xf32>, vector<32x16xf32>, vector<1x16xf32> -> vector<1x16xf32>
    %566 = arith.mulf %565, %565 : vector<1x16xf32>
    %cst_192 = arith.constant dense<0.000000e+00> : vector<1xf32>
    %567 = vector.multi_reduction <add>, %566, %cst_192 [1] : vector<1x16xf32> to vector<1xf32>
    %568 = vector.shape_cast %567 : vector<1xf32> to vector<1x1xf32>
    %569 = math.sqrt %568 : vector<1x1xf32>
    %570 = vector.broadcast %569 : vector<1x1xf32> to vector<1x16xf32>
    %571 = arith.divf %565, %570 : vector<1x16xf32>
    %c1_193 = arith.constant 1 : index
    %c0_194 = arith.constant 0 : index
    %572 = vector.load %arg8[%c1_193, %c0_194] : memref<2x16xf32, #tpu.memory_space<vmem>>, vector<1x16xf32>
    tpu.vector_store %arg8[%c1_193, %c0_194], %571 {strides = array<i32>} : memref<2x16xf32, #tpu.memory_space<vmem>>, vector<1x16xf32>,
    return
  }
}

</mosaic_0001>

<bundles_post_ra>
// kernel: image_encoder_forward.1
= control target key start
LH: loop header
LB: loop body
LE: loop exit
PB: predicated region body
PF: predicated region fallthrough
CT: control target
= control target key end

     0   :  { %v8323_v1 = vmov 0.0   ;;  %vm8324_vm0 = vmmov 0   ;;  %s10706_s0 = inlined_call_operand.vmem [shape: f32[2,17,64], index: 0, kind: input, shape index: {}]   ;;  %s10707_s1 = inlined_call_operand.vmem [shape: f32[33,128], index: 1, kind: input, shape index: {}]   ;;  %s10708_s2 = inlined_call_operand.vmem [shape: f32[64,32], index: 2, kind: input, shape index: {}]   ;;  %s10709_s3 = inlined_call_operand.vmem [shape: f32[2,32,96], index: 3, kind: input, shape index: {}]   ;;  %s10710_s4 = inlined_call_operand.vmem [shape: f32[2,32,32], index: 4, kind: input, shape index: {}]   ;;  %s10711_s5 = inlined_call_operand.vmem [shape: f32[2,32,128], index: 5, kind: input, shape index: {}]   ;;  %s10712_s6 = inlined_call_operand.vmem [shape: f32[2,128,32], index: 6, kind: input, shape index: {}]   ;;  %s10713_s7 = inlined_call_operand.vmem [shape: f32[32,16], index: 7, kind: input, shape index: {}]   ;;  %s10714_s8 = inlined_call_operand.hbm [shape: f32[2,16], index: 8, kind: output, shape index: {}]  }
   0x1   :  { %v37_v0 = vld [vmem:[%s10708_s2 + $0x38] sm:$0xff]  ;;  %7028 = vmatprep.subr.mxu0 %v8323_v1  ;;  %v36_v2 = vld [vmem:[%s10708_s2 + $0x30] sm:$0xff]  ;;  %7044 = vmatprep.mubr.msk.f32.mxu0 %vm8324_vm0, %v8323_v1  ;;  %v35_v3 = vld [vmem:[%s10708_s2 + $0x28] sm:$0xff] }
   0x2   :  { %7029 = vmatpush3.msra.mxu0 %v37_v0  ;;  %7053 = vmatprep.subr.mxu1 %v8323_v1 }
   0x3   :  { %7030 = vmatprep.subr.mxu0 %v8323_v1  ;;  %7054 = vmatpush3.msra.mxu1 %v37_v0 }
   0x4   :  { %7031 = vmatpush3.msra.mxu0 %v36_v2  ;;  %7055 = vmatprep.subr.mxu1 %v8323_v1 }
   0x5   :  { %13 = vsyncpa [#allocation3], 0  ;;  %7032 = vmatprep.subr.mxu0 %v8323_v1  ;;  %v34_v4 = vld [vmem:[%s10708_s2 + $0x20] sm:$0xff]  ;;  %7056 = vmatpush3.msra.mxu1 %v36_v2  ;;  %v33_v5 = vld [vmem:[%s10708_s2 + $0x18] sm:$0xff]  ;;  %vm44_vm1 = vcmask 523264   ;;  %vm263_vm2 = vcmask 261120  }
   0x6   :  { %7033 = vmatpush3.msra.mxu0 %v35_v3  ;;  %7057 = vmatprep.subr.mxu1 %v8323_v1  ;;  %v32_v6 = vld [vmem:[%s10708_s2 + $0x10] sm:$0xff]  ;;  %v31_v7 = vld [vmem:[%s10708_s2 + $0x8] sm:$0xff]  ;;  %v30_v8 = vld [vmem:[%s10708_s2] sm:$0xff]  ;;  %vm270_vm3 = vcmask 253952   ;;  %s8325_s29 = smov 96   ;;  %s8327_s30 = smov 120  }
   0x7   :  { %7034 = vmatprep.subr.mxu0 %v8323_v1  ;;  %7058 = vmatpush3.msra.mxu1 %v35_v3  ;;  %v41_v9 = vld [vmem:[%s10706_s0] sm:$0xff]  ;;  %v42_v10 = vld [vmem:[%s10706_s0 + $0x8] sm:$0xff]  ;;  %v43_v11 = vld [vmem:[%s10706_s0 + $0x10] sm:$0x1]  ;;  %s8328_s9 = smov 80   ;;  %s8329_s10 = smov 112  }
   0x8   :  { %7035 = vmatpush3.msra.mxu0 %v34_v4  ;;  %7059 = vmatprep.subr.mxu1 %v8323_v1  ;;  %v38_v12 = vld [vmem:[%s10707_s1] sm:$0xff]  ;;  %v39_v16 = vld [vmem:[%s10707_s1 + $0x8] sm:$0xff]  ;;  %v40_v21 = vld [vmem:[%s10707_s1 + $0x10] sm:$0x1]  ;;  %s8330_s11 = smov 72   ;;  %s8331_s12 = smov 104  }
   0x9   :  { %7036 = vmatprep.subr.mxu0 %v8323_v1  ;;  %7060 = vmatpush3.msra.mxu1 %v34_v4  ;;  %v238_v42 = vld [vmem:[%s10709_s3 + $0x18] sm:$0xff]  ;;  %v237_v43 = vld [vmem:[%s10709_s3 + $0x10] sm:$0xff]  ;;  %v236_v44 = vld [vmem:[%s10709_s3 + $0x8] sm:$0xff]  ;;  %s8332_s13 = smov 64   ;;  %s8333_s14 = smov 56   ;;  %vm421_vm4 = vcmask 64512  }
   0xa   :  { %7037 = vmatpush3.msra.mxu0 %v33_v5  ;;  %7061 = vmatprep.subr.mxu1 %v8323_v1  ;;  %v235_v45 = vld [vmem:[%s10709_s3] sm:$0xff]  ;;  %v6402_v56 = vld [vmem:[%s10707_s1 + $0x11] ss:$0 sm:$0xff]  ;;  %v6403_v58 = vld [vmem:[%s10707_s1 + $0x12] ss:$0 sm:$0xff]  ;;  %vm566_vm5 = vcmask 1040384  }
   0xb   :  { %7038 = vmatprep.subr.mxu0 %v8323_v1  ;;  %7062 = vmatpush3.msra.mxu1 %v33_v5  ;;  %vm514_vm6 = vcmask 138240   ;;  %vm521_vm7 = vcmask 131072   ;;  %s8334_s15 = smov 48   ;;  %s8335_s16 = smov 40   ;;  %vm1396_vm8 = vcmask 130048   ;;  %vm1400_vm9 = vcmask 195584  }
   0xc   :  { %7039 = vmatpush3.msra.mxu0 %v32_v6  ;;  %7063 = vmatprep.subr.mxu1 %v8323_v1  ;;  %s8336_s17 = smov 8   ;;  %s8337_s18 = smov 16   ;;  %vm6278_vm10 = vcmask 122880  }
   0xd   :  { %7040 = vmatprep.subr.mxu0 %v8323_v1  ;;  %7064 = vmatpush3.msra.mxu1 %v32_v6  ;;  %v6396_v6 = vld [vmem:[%s10706_s0 + $0x18] sm:$0xff]  ;;  %s8338_s26 = smov 24  }
   0xe   :  { %7041 = vmatpush3.msra.mxu0 %v31_v7  ;;  %7065 = vmatprep.subr.mxu1 %v8323_v1 }
   0xf   :  { %7042 = vmatprep.subr.mxu0 %v8323_v1  ;;  %7066 = vmatpush3.msra.mxu1 %v31_v7  ;;  %v6397_v7 = vld [vmem:[%s10706_s0 + $0x20] sm:$0xff] }
  0x10   :  { %7043 = vmatpush3.msra.mxu0 %v30_v8  ;;  %7067 = vmatprep.subr.mxu1 %v8323_v1 }
  0x11   :  { %7045 = vmatmul.mubr.msk.f32.vlgmr.msra.gmra.mxu0 %vm44_vm1, %v41_v9  ;;  %7078 = vmatprep.subr.mxu0 %v8323_v1 }
  0x12   :  { %7047 = vmatprep.mubr.msk.f32.mxu0 %vm8324_vm0, %v8323_v1  ;;  %7068 = vmatpush3.msra.mxu1 %v30_v8 }
  0x13   :  { %7069 = vmatprep.mubr.msk.f32.mxu1 %vm8324_vm0, %v8323_v1  ;;  %7095 = vmatprep.subr.mxu1 %v8323_v1 }
  0x14   :  { %7079 = vmatpush3.msra.mxu0 %v238_v42  ;;  %7070 = vmatmul.mubr.msk.f32.vlgmr.msra.gmra.mxu1 %vm44_vm1, %v6396_v6 }
  0x15   :  { %7048 = vmatmul.mubr.msk.f32.gmra.mxu0 %vm44_vm1, %v42_v10  ;;  %7080 = vmatprep.subr.mxu0 %v8323_v1  ;;  %v6398_v10 = vld [vmem:[%s10706_s0 + $0x28] sm:$0x1]  ;;  %s8326_s0 = smov 88  }
  0x16   :  { %7050 = vmatprep.mubr.msk.f32.mxu0 %vm8324_vm0, %v8323_v1  ;;  %7081 = vmatpush3.msra.mxu0 %v237_v43 }
  0x17   :  { %7082 = vmatprep.subr.mxu0 %v8323_v1  ;;  %7072 = vmatprep.mubr.msk.f32.mxu1 %vm8324_vm0, %v8323_v1 }
  0x18   :  { %7083 = vmatpush3.msra.mxu0 %v236_v44  ;;  %7073 = vmatmul.mubr.msk.f32.gmra.mxu1 %vm44_vm1, %v6397_v7 }
  0x19   :  { %7051 = vmatmul.mubr.msk.f32.gmra.mxu0 %vm44_vm1, %v43_v11  ;;  %7084 = vmatprep.subr.mxu0 %v8323_v1  ;;  %v6404_v11 = vld [vmem:[%s10707_s1 + $0x13] ss:$0 sm:$0xff] }
  0x1a   :  { %7086 = vmatprep.mubr.msk.f32.mxu0 %vm8324_vm0, %v8323_v1  ;;  %7085 = vmatpush3.msra.mxu0 %v235_v45 }
  0x1b   :  { %7110 = vmatprep.subr.mxu0 %v8323_v1  ;;  %7075 = vmatprep.mubr.msk.f32.mxu1 %vm8324_vm0, %v8323_v1 }
  0x1c   :  { %7076 = vmatmul.mubr.msk.f32.gmra.mxu1 %vm44_vm1, %v6398_v10 }
  0x1d   :  { %7101 = vmatprep.mubr.msk.f32.mxu1 %vm8324_vm0, %v8323_v1 }
  0xd1   :  { %v120_v13 = vpop.f32.mrf.mxu0 }
  0xd2   :  { %v8452_v14 = vadd.f32 %v120_v13, %v38_v12 }
  0xd3   :  { %v7046_v15 = vpop.f32.mrf.mxu0 }
  0xd4   :  { %v264_v17 = vsel %vm263_vm2, %v8452_v14, 0.0 }
  0xd5   :  { %265 = vadd.xlane.f32.xlu0 %v264_v17  ;;  %v125_v18 = vpop.f32.mrf.mxu0 }
  0xd6   :  { %v8459_v19 = vadd.f32 %v125_v18, %v39_v16 }
  0xd7   :  { %v7049_v20 = vpop.f32.mrf.mxu0 }
  0xd8   :  { %v267_v22 = vsel %vm263_vm2, %v8459_v19, 0.0 }
  0xd9   :  { %268 = vadd.xlane.f32.xlu0 %v267_v22  ;;  %v130_v23 = vpop.f32.mrf.mxu0 }
  0xda   :  { %v8466_v24 = vadd.f32 %v130_v23, %v40_v21 }
  0xdb   :  { %v7052_v25 = vpop.f32.mrf.mxu0 }
  0xdc   :  { %v271_v26 = vsel %vm270_vm3, %v8466_v24, 0.0 }
  0xdd   :  { %272 = vadd.xlane.f32.xlu1 %v271_v26 }
 0x15e   :  { %v266_v27 = vpop.xlane.xlu0 %265 }
 0x15f   :  { %v275_v28 = vmul.f32 0.03125, %v266_v27 }
 0x161   :  { %v278_v29 = vsub.f32 %v8452_v14, %v275_v28 }
 0x162   :  { %v269_v30 = vpop.xlane.xlu0 %268 }
 0x163   :  { %v276_v31 = vmul.f32 0.03125, %v269_v30  ;;  %v281_v32 = vmul.f32 %v278_v29, %v278_v29 }
 0x165   :  { %v279_v33 = vsub.f32 %v8459_v19, %v276_v31  ;;  %v284_v34 = vsel %vm263_vm2, %v281_v32, 0.0 }
 0x166   :  { %285 = vadd.xlane.f32.xlu1 %v284_v34  ;;  %v273_v35 = vpop.xlane.xlu1 %272 }
 0x167   :  { %v277_v36 = vmul.f32 0.03125, %v273_v35  ;;  %v282_v37 = vmul.f32 %v279_v33, %v279_v33 }
 0x169   :  { %v280_v38 = vsub.f32 %v8466_v24, %v277_v36  ;;  %v287_v39 = vsel %vm263_vm2, %v282_v37, 0.0 }
 0x16a   :  { %288 = vadd.xlane.f32.xlu0 %v287_v39 }
 0x16b   :  { %v283_v40 = vmul.f32 %v280_v38, %v280_v38 }
 0x16d   :  { %v290_v41 = vsel %vm270_vm3, %v283_v40, 0.0 }
 0x16e   :  { %291 = vadd.xlane.f32.xlu1 %v290_v41 }
 0x1ef   :  { %v286_v46 = vpop.xlane.xlu1 %285 }
 0x1f0   :  { %v293_v47 = vmul.f32 0.03125, %v286_v46  ;;  %v8651_v46 = vpop.f32.mrf.mxu1 }
 0x1f2   :  { %v296_v48 = vadd.f32 1e-05, %v293_v47  ;;  %v7071_v47 = vpop.f32.mrf.mxu1 }
 0x1f3   :  { %v289_v49 = vpop.xlane.xlu0 %288 }
 0x1f4   :  { %7971 = vrsqrt.f32 %v296_v48  ;;  %v294_v50 = vmul.f32 0.03125, %v289_v49  ;;  %v8653_v48 = vpop.f32.mrf.mxu1 }
 0x1f6   :  { %v297_v51 = vadd.f32 1e-05, %v294_v50  ;;  %v7074_v49 = vpop.f32.mrf.mxu1 }
 0x1f7   :  { %v292_v52 = vpop.xlane.xlu1 %291 }
 0x1f8   :  { %7973 = vrsqrt.f32 %v297_v51  ;;  %v295_v53 = vmul.f32 0.03125, %v292_v52  ;;  %v8655_v50 = vpop.f32.mrf.mxu1 }
 0x1fa   :  { %v298_v54 = vadd.f32 1e-05, %v295_v53  ;;  %v7077_v51 = vpop.f32.mrf.mxu1 }
 0x1fc   :  { %7975 = vrsqrt.f32 %v298_v54 }
 0x201   :  { %v7972_v55 = vpop.eup %7971 }
 0x202   :  { %v302_v57 = vmul.f32 %v7972_v55, %v278_v29 }
 0x204   :  { %v309_v59 = vmul.f32 %v6402_v56, %v302_v57 }
 0x205   :  { %v7974_v60 = vpop.eup %7973 }
 0x206   :  { %v316_v61 = vadd.f32 %v6403_v58, %v309_v59  ;;  %v303_v62 = vmul.f32 %v7974_v60, %v279_v33 }
 0x208   :  { %7087 = vmatmul.mubr.msk.f32.vlgmr.msra.gmra.mxu0 %vm263_vm2, %v316_v61  ;;  %v310_v63 = vmul.f32 %v6402_v56, %v303_v62 }
 0x209   :  { %v7976_v0 = vpop.eup %7975  ;;  %7089 = vmatprep.mubr.msk.f32.mxu0 %vm8324_vm0, %v8323_v1 }
 0x20a   :  { %v317_v2 = vadd.f32 %v6403_v58, %v310_v63  ;;  %v304_v3 = vmul.f32 %v7976_v0, %v280_v38 }
 0x20c   :  { %7090 = vmatmul.mubr.msk.f32.gmra.mxu0 %vm263_vm2, %v317_v2  ;;  %v311_v4 = vmul.f32 %v6402_v56, %v304_v3 }
 0x20d   :  { %7092 = vmatprep.mubr.msk.f32.mxu0 %vm8324_vm0, %v8323_v1 }
 0x20e   :  { %v318_v5 = vadd.f32 %v6403_v58, %v311_v4 }
 0x210   :  { %7093 = vmatmul.mubr.msk.f32.gmra.mxu0 %vm263_vm2, %v318_v5 }
 0x211   :  { %7116 = vmatprep.mubr.msk.f32.mxu0 %vm8324_vm0, %v8323_v1 }
 0x2c8   :  { %v398_v8 = vpop.f32.mrf.mxu0 }
 0x2c9   :  { %v8532_v17 = vadd.f32 %v6404_v11, %v398_v8 }
 0x2ca   :  { %v7088_v9 = vpop.f32.mrf.mxu0 }
 0x2cc   :  { %v403_v12 = vpop.f32.mrf.mxu0 }
 0x2cd   :  { %v8528_v13 = vadd.f32 %v6404_v11, %v403_v12 }
 0x2ce   :  { %v7091_v15 = vpop.f32.mrf.mxu0 }
 0x2cf   :  { %417 = vrot.lane.b32.xlu1 %v8528_v13, %s8325_s29 }
 0x2d0   :  { %v408_v16 = vpop.f32.mrf.mxu0 }
 0x2d1   :  { %v8534_v18 = vadd.f32 %v6404_v11, %v408_v16 }
 0x2d2   :  { %v7094_v20 = vpop.f32.mrf.mxu0 }
 0x2d3   :  { %415 = vrot.lane.b32.xlu1 %v8532_v17, %s8325_s29  ;;  %419 = vrot.lane.b32.xlu0 %v8534_v18, %s8325_s29 }
 0x2d7   :  { %659 = vrot.lane.b32.xlu1 %v8534_v18, %s8326_s0  ;;  %657 = vrot.lane.b32.xlu0 %v8528_v13, %s8326_s0 }
 0x2db   :  { %655 = vrot.lane.b32.xlu1 %v8532_v17, %s8326_s0  ;;  %649 = vrot.lane.b32.xlu0 %v8532_v17, %s8327_s30 }
 0x2df   :  { %895 = vrot.lane.b32.xlu1 %v8534_v18, %s8328_s9  ;;  %651 = vrot.lane.b32.xlu0 %v8528_v13, %s8327_s30 }
 0x2e3   :  { %893 = vrot.lane.b32.xlu1 %v8528_v13, %s8328_s9  ;;  %653 = vrot.lane.b32.xlu0 %v8534_v18, %s8327_s30 }
 0x2e7   :  { %891 = vrot.lane.b32.xlu1 %v8532_v17, %s8328_s9  ;;  %885 = vrot.lane.b32.xlu0 %v8532_v17, %s8329_s10 }
 0x2eb   :  { %1131 = vrot.lane.b32.xlu1 %v8534_v18, %s8330_s11  ;;  %887 = vrot.lane.b32.xlu0 %v8528_v13, %s8329_s10 }
 0x2ef   :  { %1129 = vrot.lane.b32.xlu1 %v8528_v13, %s8330_s11  ;;  %889 = vrot.lane.b32.xlu0 %v8534_v18, %s8329_s10 }
 0x2f3   :  { %1127 = vrot.lane.b32.xlu1 %v8532_v17, %s8330_s11  ;;  %1121 = vrot.lane.b32.xlu0 %v8532_v17, %s8331_s12 }
 0x2f7   :  { %1123 = vrot.lane.b32.xlu1 %v8528_v13, %s8331_s12  ;;  %1125 = vrot.lane.b32.xlu0 %v8534_v18, %s8331_s12 }
 0x2fb   :  { %549 = vrot.lane.b32.xlu1 %v8532_v17, %s8332_s13  ;;  %551 = vrot.lane.b32.xlu0 %v8528_v13, %s8332_s13 }
 0x2ff   :  { %553 = vrot.lane.b32.xlu1 %v8534_v18, %s8332_s13 }
 0x303   :  { %790 = vrot.lane.b32.xlu1 %v8534_v18, %s8333_s14 }
 0x341   :  { %v418_v21 = vpop.permute.xlu1 %417 }
 0x345   :  { %v416_v22 = vpop.permute.xlu1 %415  ;;  %v420_v23 = vpop.permute.xlu0 %419 }
 0x346   :  { %7096 = vmatpush3.xpose.msk.msra.mxu1 %vm421_vm4, %v420_v23 }
 0x347   :  { %7097 = vmatprep.subr.mxu1 %v8323_v1 }
 0x349   :  { %v660_v25 = vpop.permute.xlu1 %659  ;;  %v658_v26 = vpop.permute.xlu0 %657 }
 0x34a   :  { %7098 = vmatpush3.xpose.msk.msra.mxu1 %vm421_vm4, %v418_v21 }
 0x34b   :  { %7099 = vmatprep.subr.mxu1 %v8323_v1 }
 0x34d   :  { %v656_v27 = vpop.permute.xlu1 %655  ;;  %v650_v28 = vpop.permute.xlu0 %649 }
 0x34e   :  { %7100 = vmatpush3.xpose.msk.msra.mxu1 %vm421_vm4, %v416_v22 }
 0x34f   :  { %7125 = vmatprep.subr.mxu1 %v8323_v1 }
 0x351   :  { %v896_v29 = vpop.permute.xlu1 %895  ;;  %7102 = vmatmul.mubr.msk.f32.vlgmr.msra.gmra.mxu1 %vm421_vm4, %v8532_v17  ;;  %v652_v30 = vpop.permute.xlu0 %651 }
 0x352   :  { %7126 = vmatpush3.xpose.msk.msra.mxu1 %vm421_vm4, %v660_v25  ;;  %7104 = vmatprep.mubr.msk.f32.mxu1 %vm8324_vm0, %v8323_v1 }
 0x353   :  { %7127 = vmatprep.subr.mxu1 %v8323_v1 }
 0x355   :  { %v894_v31 = vpop.permute.xlu1 %893  ;;  %7105 = vmatmul.mubr.msk.f32.gmra.mxu1 %vm421_vm4, %v8528_v13  ;;  %v654_v32 = vpop.permute.xlu0 %653 }
 0x356   :  { %7128 = vmatpush3.xpose.msk.msra.mxu1 %vm421_vm4, %v658_v26  ;;  %7107 = vmatprep.mubr.msk.f32.mxu1 %vm8324_vm0, %v8323_v1 }
 0x357   :  { %7129 = vmatprep.subr.mxu1 %v8323_v1 }
 0x359   :  { %v892_v33 = vpop.permute.xlu1 %891  ;;  %7108 = vmatmul.mubr.msk.f32.gmra.mxu1 %vm421_vm4, %v8534_v18  ;;  %v886_v34 = vpop.permute.xlu0 %885 }
 0x35a   :  { %7130 = vmatpush3.xpose.msk.msra.mxu1 %vm421_vm4, %v656_v27  ;;  %7131 = vmatprep.mubr.msk.f32.mxu1 %vm8324_vm0, %v8323_v1 }
 0x35b   :  { %7155 = vmatprep.subr.mxu1 %v8323_v1 }
 0x35d   :  { %v1132_v35 = vpop.permute.xlu1 %1131  ;;  %7132 = vmatmul.mubr.msk.f32.vlgmr.msra.gmra.mxu1 %vm421_vm4, %v650_v28  ;;  %v888_v36 = vpop.permute.xlu0 %887 }
 0x35e   :  { %7156 = vmatpush3.xpose.msk.msra.mxu1 %vm421_vm4, %v896_v29  ;;  %7134 = vmatprep.mubr.msk.f32.mxu1 %vm8324_vm0, %v8323_v1 }
 0x35f   :  { %7157 = vmatprep.subr.mxu1 %v8323_v1 }
 0x361   :  { %v1130_v37 = vpop.permute.xlu1 %1129  ;;  %7135 = vmatmul.mubr.msk.f32.gmra.mxu1 %vm421_vm4, %v652_v30  ;;  %v890_v38 = vpop.permute.xlu0 %889 }
 0x362   :  { %7158 = vmatpush3.xpose.msk.msra.mxu1 %vm421_vm4, %v894_v31  ;;  %7137 = vmatprep.mubr.msk.f32.mxu1 %vm8324_vm0, %v8323_v1 }
 0x363   :  { %7159 = vmatprep.subr.mxu1 %v8323_v1 }
 0x365   :  { %v1128_v39 = vpop.permute.xlu1 %1127  ;;  %7138 = vmatmul.mubr.msk.f32.gmra.mxu1 %vm421_vm4, %v654_v32  ;;  %v1122_v40 = vpop.permute.xlu0 %1121 }
 0x366   :  { %7160 = vmatpush3.xpose.msk.msra.mxu1 %vm421_vm4, %v892_v33  ;;  %7161 = vmatprep.mubr.msk.f32.mxu1 %vm8324_vm0, %v8323_v1 }
 0x367   :  { %7185 = vmatprep.subr.mxu1 %v8323_v1 }
 0x369   :  { %v1124_v41 = vpop.permute.xlu1 %1123  ;;  %7162 = vmatmul.mubr.msk.f32.vlgmr.msra.gmra.mxu1 %vm421_vm4, %v886_v34  ;;  %v1126_v42 = vpop.permute.xlu0 %1125 }
 0x36a   :  { %7186 = vmatpush3.xpose.msk.msra.mxu1 %vm421_vm4, %v1132_v35  ;;  %7164 = vmatprep.mubr.msk.f32.mxu1 %vm8324_vm0, %v8323_v1 }
 0x36b   :  { %7187 = vmatprep.subr.mxu1 %v8323_v1 }
 0x36d   :  { %v550_v43 = vpop.permute.xlu1 %549  ;;  %7165 = vmatmul.mubr.msk.f32.gmra.mxu1 %vm421_vm4, %v888_v36  ;;  %v552_v45 = vpop.permute.xlu0 %551 }
 0x36e   :  { %7188 = vmatpush3.xpose.msk.msra.mxu1 %vm421_vm4, %v1130_v37  ;;  %7167 = vmatprep.mubr.msk.f32.mxu1 %vm8324_vm0, %v8323_v1 }
 0x36f   :  { %7189 = vmatprep.subr.mxu1 %v8323_v1 }
 0x371   :  { %v554_v44 = vpop.permute.xlu1 %553  ;;  %7168 = vmatmul.mubr.msk.f32.gmra.mxu1 %vm421_vm4, %v890_v38 }
 0x372   :  { %7111 = vmatpush3.msk.msra.mxu0 %vm566_vm5, %v554_v44  ;;  %7190 = vmatpush3.xpose.msk.msra.mxu1 %vm421_vm4, %v1128_v39 }
 0x373   :  { %7112 = vmatprep.subr.mxu0 %v8323_v1  ;;  %7191 = vmatprep.mubr.msk.f32.mxu1 %vm8324_vm0, %v8323_v1 }
 0x374   :  { %7113 = vmatpush3.msra.mxu0 %v552_v45  ;;  %7948 = vmatprep.subr.mxu1 %v8323_v1 }
 0x375   :  { %7114 = vmatprep.subr.mxu0 %v8323_v1  ;;  %7192 = vmatmul.mubr.msk.f32.vlgmr.msra.gmra.mxu1 %vm421_vm4, %v1122_v40  ;;  %v8699_v31 = vpop.permute.xlu1 %790 }
 0x376   :  { %7115 = vmatpush3.msra.mxu0 %v550_v43  ;;  %7194 = vmatprep.mubr.msk.f32.mxu1 %vm8324_vm0, %v8323_v1 }
 0x377   :  { %7140 = vmatprep.subr.mxu0 %v8323_v1 }
 0x379   :  { %7195 = vmatmul.mubr.msk.f32.gmra.mxu1 %vm421_vm4, %v1124_v41 }
 0x37a   :  { %7197 = vmatprep.mubr.msk.f32.mxu1 %vm8324_vm0, %v8323_v1 }
 0x37d   :  { %7198 = vmatmul.mubr.msk.f32.gmra.mxu1 %vm421_vm4, %v1126_v42 }
 0x37e   :  { %7212 = vmatprep.mubr.msk.f32.mxu1 %vm8324_vm0, %v8323_v1 }
 0x411   :  { %v500_v52 = vpop.f32.mrf.mxu1 }
 0x412   :  { %v515_v53 = vsel %vm514_vm6, %v500_v52, -inf }
 0x413   :  { %516 = vmax.xlane.f32.xlu1 %v515_v53  ;;  %v7103_v54 = vpop.f32.mrf.mxu1 }
 0x415   :  { %v505_v55 = vpop.f32.mrf.mxu1 }
 0x416   :  { %v518_v56 = vsel %vm514_vm6, %v505_v55, -inf }
 0x417   :  { %519 = vmax.xlane.f32.xlu0 %v518_v56  ;;  %v7106_v57 = vpop.f32.mrf.mxu1 }
 0x419   :  { %v8659_v58 = vpop.f32.mrf.mxu1 }
 0x41a   :  { %v522_v59 = vsel %vm521_vm7, %v8659_v58, -inf }
 0x41b   :  { %523 = vmax.xlane.f32.xlu0 %v522_v59  ;;  %v7109_v60 = vpop.f32.mrf.mxu1 }
 0x41d   :  { %v8663_v61 = vpop.f32.mrf.mxu1 }
 0x41e   :  { %v753_v62 = vsel %vm514_vm6, %v8663_v61, -inf }
 0x41f   :  { %754 = vmax.xlane.f32.xlu0 %v753_v62  ;;  %v7133_v63 = vpop.f32.mrf.mxu1 }
 0x421   :  { %v8667_v0 = vpop.f32.mrf.mxu1 }
 0x422   :  { %v756_v2 = vsel %vm514_vm6, %v8667_v0, -inf }
 0x423   :  { %757 = vmax.xlane.f32.xlu1 %v756_v2  ;;  %v7136_v3 = vpop.f32.mrf.mxu1 }
 0x425   :  { %v8671_v4 = vpop.f32.mrf.mxu1 }
 0x426   :  { %v759_v5 = vsel %vm521_vm7, %v8671_v4, -inf }
 0x427   :  { %760 = vmax.xlane.f32.xlu0 %v759_v5  ;;  %v7139_v6 = vpop.f32.mrf.mxu1 }
 0x429   :  { %v8675_v7 = vpop.f32.mrf.mxu1 }
 0x42a   :  { %v989_v8 = vsel %vm514_vm6, %v8675_v7, -inf }
 0x42b   :  { %990 = vmax.xlane.f32.xlu1 %v989_v8  ;;  %v7163_v9 = vpop.f32.mrf.mxu1 }
 0x42d   :  { %v8679_v10 = vpop.f32.mrf.mxu1 }
 0x42e   :  { %v992_v11 = vsel %vm514_vm6, %v8679_v10, -inf }
 0x42f   :  { %993 = vmax.xlane.f32.xlu0 %v992_v11  ;;  %v7166_v12 = vpop.f32.mrf.mxu1 }
 0x431   :  { %v985_v15 = vpop.f32.mrf.mxu1 }
 0x432   :  { %v995_v16 = vsel %vm521_vm7, %v985_v15, -inf }
 0x433   :  { %996 = vmax.xlane.f32.xlu1 %v995_v16  ;;  %v7169_v20 = vpop.f32.mrf.mxu1 }
 0x435   :  { %v1211_v21 = vpop.f32.mrf.mxu1 }
 0x436   :  { %v1225_v22 = vsel %vm514_vm6, %v1211_v21, -inf }
 0x437   :  { %1226 = vmax.xlane.f32.xlu0 %v1225_v22  ;;  %v7193_v23 = vpop.f32.mrf.mxu1 }
 0x439   :  { %v8685_v25 = vpop.f32.mrf.mxu1 }
 0x43a   :  { %v1228_v29 = vsel %vm514_vm6, %v8685_v25, -inf }
 0x43b   :  { %v7196_v26 = vpop.f32.mrf.mxu1 }
 0x43d   :  { %v8687_v27 = vpop.f32.mrf.mxu1 }
 0x43e   :  { %v1231_v30 = vsel %vm521_vm7, %v8687_v27, -inf }
 0x43f   :  { %v7199_v28 = vpop.f32.mrf.mxu1 }
 0x444   :  { %786 = vrot.lane.b32.xlu1 %v8532_v17, %s8333_s14 }
 0x448   :  { %1026 = vrot.lane.b32.xlu1 %v8534_v18, %s8334_s15 }
 0x44d   :  { %788 = vrot.lane.b32.xlu0 %v8528_v13, %s8333_s14 }
 0x46c   :  { %1229 = vmax.xlane.f32.xlu1 %v1228_v29  ;;  %1232 = vmax.xlane.f32.xlu0 %v1231_v30 }
 0x49c   :  { %v517_v32 = vpop.xlane.xlu1 %516 }
 0x49d   :  { %v525_v33 = vsub.f32 %v500_v52, %v517_v32 }
 0x49f   :  { %v528_v34 = vmul.f32 1.442695, %v525_v33 }
 0x4a0   :  { %v520_v35 = vpop.xlane.xlu0 %519 }
 0x4a1   :  { %7977 = vpow2.f32 %v528_v34  ;;  %v526_v36 = vsub.f32 %v505_v55, %v520_v35 }
 0x4a3   :  { %v530_v37 = vmul.f32 1.442695, %v526_v36 }
 0x4a4   :  { %v524_v42 = vpop.xlane.xlu0 %523 }
 0x4a5   :  { %7979 = vpow2.f32 %v530_v37  ;;  %v527_v43 = vsub.f32 %v8659_v58, %v524_v42 }
 0x4a7   :  { %v532_v49 = vmul.f32 1.442695, %v527_v43 }
 0x4a8   :  { %v755_v44 = vpop.xlane.xlu0 %754 }
 0x4a9   :  { %v762_v47 = vsub.f32 %v8663_v61, %v755_v44  ;;  %7981 = vpow2.f32 %v532_v49 }
 0x4ab   :  { %v765_v53 = vmul.f32 1.442695, %v762_v47 }
 0x4ac   :  { %v758_v45 = vpop.xlane.xlu1 %757 }
 0x4ad   :  { %v763_v51 = vsub.f32 %v8667_v0, %v758_v45  ;;  %7983 = vpow2.f32 %v765_v53 }
 0x4ae   :  { %v8701_v38 = vpop.eup %7977 }
 0x4af   :  { %v534_v39 = vsel %vm514_vm6, %v8701_v38, 0.0  ;;  %v767_v54 = vmul.f32 1.442695, %v763_v51 }
 0x4b0   :  { %535 = vadd.xlane.f32.xlu1 %v534_v39  ;;  %v761_v52 = vpop.xlane.xlu0 %760 }
 0x4b1   :  { %v764_v55 = vsub.f32 %v8671_v4, %v761_v52  ;;  %7985 = vpow2.f32 %v767_v54 }
 0x4b2   :  { %v8705_v40 = vpop.eup %7979 }
 0x4b3   :  { %v537_v41 = vsel %vm514_vm6, %v8705_v40, 0.0  ;;  %v769_v57 = vmul.f32 1.442695, %v764_v55 }
 0x4b4   :  { %538 = vadd.xlane.f32.xlu0 %v537_v41  ;;  %v991_v56 = vpop.xlane.xlu1 %990 }
 0x4b5   :  { %v998_v59 = vsub.f32 %v8675_v7, %v991_v56  ;;  %7987 = vpow2.f32 %v769_v57 }
 0x4b6   :  { %v8718_v3 = vpop.eup %7981 }
 0x4b7   :  { %v1001_v62 = vmul.f32 1.442695, %v998_v59  ;;  %v540_v6 = vsel %vm521_vm7, %v8718_v3, 0.0 }
 0x4b8   :  { %v994_v58 = vpop.xlane.xlu0 %993 }
 0x4b9   :  { %7989 = vpow2.f32 %v1001_v62  ;;  %v999_v34 = vsub.f32 %v8679_v10, %v994_v58 }
 0x4ba   :  { %v8720_v5 = vpop.eup %7983 }
 0x4bb   :  { %v771_v9 = vsel %vm514_vm6, %v8720_v5, 0.0  ;;  %v1003_v37 = vmul.f32 1.442695, %v999_v34 }
 0x4bc   :  { %v997_v60 = vpop.xlane.xlu1 %996 }
 0x4bd   :  { %v1000_v61 = vsub.f32 %v985_v15, %v997_v60 }
 0x4be   :  { %v8724_v8 = vpop.eup %7985 }
 0x4bf   :  { %v1005_v0 = vmul.f32 1.442695, %v1000_v61  ;;  %v774_v7 = vsel %vm514_vm6, %v8724_v8, 0.0 }
 0x4c0   :  { %v1227_v63 = vpop.xlane.xlu0 %1226  ;;  %v787_v32 = vpop.permute.xlu1 %786 }
 0x4c1   :  { %1022 = vrot.lane.b32.xlu1 %v8532_v17, %s8334_s15  ;;  %v1234_v2 = vsub.f32 %v1211_v21, %v1227_v63  ;;  %7991 = vpow2.f32 %v1005_v0 }
 0x4c2   :  { %v8730_v11 = vpop.eup %7987 }
 0x4c3   :  { %v1237_v4 = vmul.f32 1.442695, %v1234_v2  ;;  %v777_v12 = vsel %vm521_vm7, %v8730_v11, 0.0 }
 0x4c4   :  { %v789_v21 = vpop.permute.xlu0 %788  ;;  %v1027_v33 = vpop.permute.xlu1 %1026 }
 0x4c5   :  { %7993 = vpow2.f32 %v1237_v4 }
 0x4c6   :  { %v8734_v15 = vpop.eup %7989 }
 0x4c7   :  { %v1007_v16 = vsel %vm514_vm6, %v8734_v15, 0.0 }
 0x4ca   :  { %1024 = vrot.lane.b32.xlu0 %v8528_v13, %s8334_s15 }
 0x4ce   :  { %v8738_v20 = vpop.eup %7991 }
 0x4cf   :  { %v1013_v22 = vsel %vm521_vm7, %v8738_v20, 0.0 }
 0x4d2   :  { %v8742_v23 = vpop.eup %7993 }
 0x4d3   :  { %v1243_v30 = vsel %vm514_vm6, %v8742_v23, 0.0 }
 0x4e5   :  { %541 = vadd.xlane.f32.xlu1 %v540_v6 }
 0x4e9   :  { %775 = vadd.xlane.f32.xlu1 %v774_v7  ;;  %772 = vadd.xlane.f32.xlu0 %v771_v9 }
 0x4ed   :  { %778 = vadd.xlane.f32.xlu0 %v777_v12 }
 0x4f1   :  { %1008 = vadd.xlane.f32.xlu0 %v1007_v16 }
 0x4f5   :  { %1014 = vadd.xlane.f32.xlu0 %v1013_v22  ;;  %v1233_v26 = vpop.xlane.xlu0 %1232  ;;  %v1230_v35 = vpop.xlane.xlu1 %1229 }
 0x4f6   :  { %v1236_v28 = vsub.f32 %v8687_v27, %v1233_v26  ;;  %v1235_v27 = vsub.f32 %v8685_v25, %v1230_v35 }
 0x4f8   :  { %v1241_v29 = vmul.f32 1.442695, %v1236_v28  ;;  %v1239_v41 = vmul.f32 1.442695, %v1235_v27 }
 0x4f9   :  { %1244 = vadd.xlane.f32.xlu0 %v1243_v30 }
 0x4fa   :  { %1262 = vrot.lane.b32.xlu1 %v8534_v18, %s8335_s16  ;;  %7995 = vpow2.f32 %v1241_v29 }
 0x4fb   :  { %7997 = vpow2.f32 %v1003_v37 }
 0x4fc   :  { %7999 = vpow2.f32 %v1239_v41 }
 0x507   :  { %v8750_v36 = vpop.eup %7995 }
 0x508   :  { %v1249_v39 = vsel %vm521_vm7, %v8750_v36, 0.0  ;;  %v8755_v42 = vpop.eup %7997 }
 0x509   :  { %1250 = vadd.xlane.f32.xlu0 %v1249_v39  ;;  %v1010_v18 = vsel %vm514_vm6, %v8755_v42, 0.0  ;;  %v8759_v43 = vpop.eup %7999 }
 0x50a   :  { %v1246_v10 = vsel %vm514_vm6, %v8759_v43, 0.0 }
 0x51e   :  { %1011 = vadd.xlane.f32.xlu1 %v1010_v18 }
 0x51f   :  { %1258 = vrot.lane.b32.xlu0 %v8532_v17, %s8335_s16 }
 0x522   :  { %1247 = vadd.xlane.f32.xlu1 %v1246_v10  ;;  %v8845_v10 = vld [vmem:[%s10710_s4 + $0x10] sm:$0xff] }
 0x533   :  { %1260 = vrot.lane.b32.xlu1 %v8528_v13, %s8335_s16 }
 0x539   :  { %v536_v25 = vpop.xlane.xlu1 %535 }
 0x53a   :  { %8001 = vrcp.f32 %v536_v25  ;;  %v8852_v25 = vld [vmem:[%s10710_s4 + $0x8] sm:$0xff] }
 0x53d   :  { %v539_v44 = vpop.xlane.xlu0 %538  ;;  %v1023_v17 = vpop.permute.xlu1 %1022 }
 0x53e   :  { %8003 = vrcp.f32 %v539_v44 }
 0x547   :  { %v8002_v45 = vpop.eup %8001 }
 0x548   :  { %v544_v47 = vmul.f32 %v8002_v45, %v8701_v38  ;;  %v8861_v45 = vld [vmem:[%s10710_s4] sm:$0xff] }
 0x54a   :  { %7117 = vmatmul.mubr.msk.f32.vlgmr.msra.gmra.mxu0 %vm514_vm6, %v544_v47 }
 0x54b   :  { %v8004_v49 = vpop.eup %8003  ;;  %7141 = vmatpush3.msk.msra.mxu0 %vm566_vm5, %v8699_v31  ;;  %7119 = vmatprep.mubr.msk.f32.mxu0 %vm8324_vm0, %v8323_v1  ;;  %v1025_v31 = vpop.permute.xlu0 %1024 }
 0x54c   :  { %7142 = vmatprep.subr.mxu0 %v8323_v1  ;;  %v546_v13 = vmul.f32 %v8004_v49, %v8705_v40 }
 0x54d   :  { %7143 = vmatpush3.msra.mxu0 %v789_v21 }
 0x54e   :  { %7144 = vmatprep.subr.mxu0 %v8323_v1  ;;  %7120 = vmatmul.mubr.msk.f32.gmra.mxu0 %vm514_vm6, %v546_v13 }
 0x54f   :  { %7145 = vmatpush3.msra.mxu0 %v787_v32  ;;  %7122 = vmatprep.mubr.msk.f32.mxu0 %vm8324_vm0, %v8323_v1 }
 0x550   :  { %7170 = vmatprep.subr.mxu0 %v8323_v1 }
 0x56e   :  { %v542_v38 = vpop.xlane.xlu1 %541 }
 0x56f   :  { %8005 = vrcp.f32 %v542_v38 }
 0x572   :  { %v776_v51 = vpop.xlane.xlu1 %775  ;;  %v773_v52 = vpop.xlane.xlu0 %772 }
 0x573   :  { %8007 = vrcp.f32 %v773_v52 }
 0x574   :  { %8009 = vrcp.f32 %v776_v51 }
 0x576   :  { %v1263_v40 = vpop.permute.xlu1 %1262  ;;  %v779_v53 = vpop.xlane.xlu0 %778 }
 0x577   :  { %7951 = vmatpush3.msk.msra.mxu1 %vm566_vm5, %v1263_v40  ;;  %8011 = vrcp.f32 %v779_v53 }
 0x578   :  { %7949 = vmatprep.subr.mxu1 %v8323_v1 }
 0x57a   :  { %v1009_v54 = vpop.xlane.xlu0 %1008 }
 0x57b   :  { %8013 = vrcp.f32 %v1009_v54 }
 0x57c   :  { %v8006_v55 = vpop.eup %8005 }
 0x57d   :  { %v548_v56 = vmul.f32 %v8006_v55, %v8718_v3 }
 0x57e   :  { %v1015_v2 = vpop.xlane.xlu0 %1014 }
 0x57f   :  { %7123 = vmatmul.mubr.msk.f32.gmra.mxu0 %vm514_vm6, %v548_v56 }
 0x580   :  { %7146 = vmatprep.mubr.msk.f32.mxu0 %vm8324_vm0, %v8323_v1  ;;  %v8008_v57 = vpop.eup %8007 }
 0x581   :  { %v781_v59 = vmul.f32 %v8008_v57, %v8720_v5  ;;  %v8010_v58 = vpop.eup %8009 }
 0x582   :  { %v783_v60 = vmul.f32 %v8010_v58, %v8724_v8  ;;  %v1245_v3 = vpop.xlane.xlu0 %1244 }
 0x583   :  { %7147 = vmatmul.mubr.msk.f32.vlgmr.msra.gmra.mxu0 %vm514_vm6, %v781_v59 }
 0x584   :  { %7171 = vmatpush3.msk.msra.mxu0 %vm566_vm5, %v1027_v33  ;;  %7149 = vmatprep.mubr.msk.f32.mxu0 %vm8324_vm0, %v8323_v1  ;;  %v8012_v62 = vpop.eup %8011 }
 0x585   :  { %7172 = vmatprep.subr.mxu0 %v8323_v1  ;;  %v785_v61 = vmul.f32 %v8012_v62, %v8730_v11 }
 0x586   :  { %7173 = vmatpush3.msra.mxu0 %v1025_v31 }
 0x587   :  { %7174 = vmatprep.subr.mxu0 %v8323_v1  ;;  %7150 = vmatmul.mubr.msk.f32.gmra.mxu0 %vm514_vm6, %v783_v60 }
 0x588   :  { %7175 = vmatpush3.msra.mxu0 %v1023_v17  ;;  %7152 = vmatprep.mubr.msk.f32.mxu0 %vm8324_vm0, %v8323_v1  ;;  %v8014_v63 = vpop.eup %8013 }
 0x589   :  { %7200 = vmatprep.subr.mxu0 %v8323_v1  ;;  %v1017_v0 = vmul.f32 %v8014_v63, %v8734_v15 }
 0x58b   :  { %7153 = vmatmul.mubr.msk.f32.gmra.mxu0 %vm514_vm6, %v785_v61 }
 0x58c   :  { %7176 = vmatprep.mubr.msk.f32.mxu0 %vm8324_vm0, %v8323_v1 }
 0x58f   :  { %7177 = vmatmul.mubr.msk.f32.vlgmr.msra.gmra.mxu0 %vm514_vm6, %v1017_v0 }
 0x590   :  { %7201 = vmatpush3.msk.msra.mxu0 %vm566_vm5, %v1263_v40  ;;  %7179 = vmatprep.mubr.msk.f32.mxu0 %vm8324_vm0, %v8323_v1 }
 0x591   :  { %7202 = vmatprep.subr.mxu0 %v8323_v1 }
 0x592   :  { %v1251_v5 = vpop.xlane.xlu0 %1250 }
 0x593   :  { %8015 = vrcp.f32 %v1251_v5 }
 0x596   :  { %v1259_v11 = vpop.permute.xlu0 %1258 }
 0x5a0   :  { %v8016_v8 = vpop.eup %8015 }
 0x5a1   :  { %v1257_v9 = vmul.f32 %v8016_v8, %v8750_v36 }
 0x5a7   :  { %v1012_v4 = vpop.xlane.xlu1 %1011 }
 0x5a8   :  { %8017 = vrcp.f32 %v1012_v4 }
 0x5a9   :  { %8019 = vrcp.f32 %v1015_v2 }
 0x5aa   :  { %8021 = vrcp.f32 %v1245_v3 }
 0x5ab   :  { %v1248_v6 = vpop.xlane.xlu1 %1247 }
 0x5ac   :  { %8023 = vrcp.f32 %v1248_v6 }
 0x5af   :  { %v1261_v7 = vpop.permute.xlu1 %1260 }
 0x5b0   :  { %7203 = vmatpush3.msra.mxu0 %v1261_v7  ;;  %7952 = vmatpush3.msra.mxu1 %v1261_v7  ;;  %v6448_v7 = vld [vmem:[%s10707_s1 + $0x14] ss:$0 sm:$0xff] }
 0x5b1   :  { %7204 = vmatprep.subr.mxu0 %v8323_v1  ;;  %7950 = vmatprep.subr.mxu1 %v8323_v1 }
 0x5b2   :  { %7205 = vmatpush3.msra.mxu0 %v1259_v11  ;;  %7953 = vmatpush3.msra.mxu1 %v1259_v11 }
 0x5b3   :  { %7213 = vmatmul.mubr.msk.f32.vlgmr.msra.gmra.mxu1 %vm514_vm6, %v1257_v9  ;;  %7215 = vmatprep.subr.mxu1 %v8323_v1 }
 0x5b4   :  { %7223 = vmatprep.mubr.msk.f32.mxu1 %vm8324_vm0, %v8323_v1  ;;  %7232 = vmatprep.subr.mxu0 %v8323_v1 }
 0x5b5   :  { %v8018_v12 = vpop.eup %8017 }
 0x5b6   :  { %v1019_v15 = vmul.f32 %v8018_v12, %v8755_v42  ;;  %v8020_v16 = vpop.eup %8019 }
 0x5b7   :  { %v1021_v21 = vmul.f32 %v8020_v16, %v8738_v20  ;;  %v8022_v22 = vpop.eup %8021 }
 0x5b8   :  { %7180 = vmatmul.mubr.msk.f32.gmra.mxu0 %vm514_vm6, %v1019_v15  ;;  %v1253_v26 = vmul.f32 %v8022_v22, %v8742_v23 }
 0x5b9   :  { %7182 = vmatprep.mubr.msk.f32.mxu0 %vm8324_vm0, %v8323_v1  ;;  %v8024_v28 = vpop.eup %8023 }
 0x5ba   :  { %v1255_v29 = vmul.f32 %v8024_v28, %v8759_v43  ;;  %v8840_v43 = vld [vmem:[%s10710_s4 + $0x18] sm:$0xff] }
 0x5bb   :  { %7216 = vmatpush3.msra.mxu1 %v8840_v43 }
 0x5bc   :  { %7183 = vmatmul.mubr.msk.f32.gmra.mxu0 %vm514_vm6, %v1021_v21  ;;  %7217 = vmatprep.subr.mxu1 %v8323_v1 }
 0x5bd   :  { %7206 = vmatprep.mubr.msk.f32.mxu0 %vm8324_vm0, %v8323_v1  ;;  %7218 = vmatpush3.msra.mxu1 %v8845_v10 }
 0x5be   :  { %7219 = vmatprep.subr.mxu1 %v8323_v1 }
 0x5bf   :  { %7220 = vmatpush3.msra.mxu1 %v8852_v25 }
 0x5c0   :  { %7207 = vmatmul.mubr.msk.f32.vlgmr.msra.gmra.mxu0 %vm514_vm6, %v1253_v26  ;;  %7221 = vmatprep.subr.mxu1 %v8323_v1 }
 0x5c1   :  { %7209 = vmatprep.mubr.msk.f32.mxu0 %vm8324_vm0, %v8323_v1  ;;  %7222 = vmatpush3.msra.mxu1 %v8861_v45 }
 0x5c2   :  { %7249 = vmatprep.subr.mxu1 %v8323_v1 }
 0x5c4   :  { %7210 = vmatmul.mubr.msk.f32.gmra.mxu0 %vm514_vm6, %v1255_v29  ;;  %v8243_v29 = vld [vmem:[%s10707_s1 + $0x10] sm:$0x1] }
 0x5c5   :  { %7240 = vmatprep.mubr.msk.f32.mxu0 %vm8324_vm0, %v8323_v1 }
 0x60a   :  { %v635_v20 = vpop.f32.mrf.mxu0 }
 0x60c   :  { %v7118_v30 = vpop.f32.mrf.mxu0 }
 0x60e   :  { %v640_v32 = vpop.f32.mrf.mxu0 }
 0x610   :  { %v7121_v33 = vpop.f32.mrf.mxu0 }
 0x63f   :  { %v8832_v34 = vpop.f32.mrf.mxu0 }
 0x641   :  { %v7124_v23 = vpop.f32.mrf.mxu0 }
 0x642   :  { %v8244_v23 = vld [vmem:[%s10707_s1] sm:$0xff] }
 0x643   :  { %v871_v35 = vpop.f32.mrf.mxu0 }
 0x644   :  { %1360 = vrot.lane.b32.xlu1 %v871_v35, %s8336_s17 }
 0x645   :  { %v7148_v36 = vpop.f32.mrf.mxu0 }
 0x647   :  { %v876_v37 = vpop.f32.mrf.mxu0 }
 0x648   :  { %1362 = vrot.lane.b32.xlu0 %v876_v37, %s8336_s17 }
 0x649   :  { %v7151_v27 = vpop.f32.mrf.mxu0 }
 0x64b   :  { %v881_v39 = vpop.f32.mrf.mxu0 }
 0x64d   :  { %v7154_v41 = vpop.f32.mrf.mxu0 }
 0x64f   :  { %v1107_v42 = vpop.f32.mrf.mxu0 }
 0x650   :  { %1372 = vrot.lane.b32.xlu0 %v1107_v42, %s8337_s18 }
 0x651   :  { %v7178_v18 = vpop.f32.mrf.mxu0 }
 0x673   :  { %v1353_v44 = vpop.f32.mrf.mxu1 }
 0x675   :  { %v7214_v47 = vpop.f32.mrf.mxu1 }
 0x678   :  { %v1112_v49 = vpop.f32.mrf.mxu0 }
 0x679   :  { %1374 = vrot.lane.b32.xlu1 %v1112_v49, %s8337_s18 }
 0x67a   :  { %v7181_v13 = vpop.f32.mrf.mxu0 }
 0x67c   :  { %v1117_v17 = vpop.f32.mrf.mxu0 }
 0x67e   :  { %v7184_v31 = vpop.f32.mrf.mxu0 }
 0x680   :  { %v1343_v38 = vpop.f32.mrf.mxu0 }
 0x681   :  { %1384 = vrot.lane.b32.xlu1 %v1343_v38, %s8338_s26 }
 0x682   :  { %v7208_v51 = vpop.f32.mrf.mxu0 }
 0x684   :  { %v1348_v52 = vpop.f32.mrf.mxu0 }
 0x685   :  { %1364 = vrot.lane.b32.xlu1 %v881_v39, %s8336_s17  ;;  %1386 = vrot.lane.b32.xlu0 %v1348_v52, %s8338_s26 }
 0x686   :  { %v7211_v40 = vpop.f32.mrf.mxu0 }
 0x689   :  { %1388 = vrot.lane.b32.xlu1 %v1353_v44, %s8338_s26  ;;  %1376 = vrot.lane.b32.xlu0 %v1117_v17, %s8337_s18 }
 0x6b6   :  { %v1361_v53 = vpop.permute.xlu1 %1360 }
 0x6b7   :  { %v1393_v57 = vsel %vm421_vm4, %v635_v20, %v1361_v53  ;;  %v8905_v20 = vadd.f32 %v8243_v29, %v8655_v50  ;;  %v8918_v50 = vadd.f32 %v8244_v23, %v8651_v46 }
 0x6b9   :  { %v1763_v37 = vsel %vm263_vm2, %v8918_v50, 0.0 }
 0x6ba   :  { %v1363_v54 = vpop.permute.xlu0 %1362 }
 0x6bb   :  { %v1394_v62 = vsel %vm421_vm4, %v640_v32, %v1363_v54 }
 0x6c2   :  { %v1373_v56 = vpop.permute.xlu0 %1372 }
 0x6c3   :  { %v1397_v59 = vsel %vm1396_vm8, %v1393_v57, %v1373_v56 }
 0x6eb   :  { %v1375_v55 = vpop.permute.xlu1 %1374 }
 0x6ec   :  { %v1398_v61 = vsel %vm1396_vm8, %v1394_v62, %v1375_v55 }
 0x6f3   :  { %v1385_v58 = vpop.permute.xlu1 %1384 }
 0x6f4   :  { %v1401_v60 = vsel %vm1400_vm9, %v1397_v59, %v1385_v58 }
 0x6f5   :  { %7224 = vmatmul.mubr.msk.f32.vlgmr.msra.gmra.mxu1 %vm263_vm2, %v1401_v60 }
 0x6f6   :  { %7226 = vmatprep.mubr.msk.f32.mxu1 %vm8324_vm0, %v8323_v1 }
 0x6f7   :  { %v1365_v63 = vpop.permute.xlu1 %1364  ;;  %v1387_v0 = vpop.permute.xlu0 %1386 }
 0x6f8   :  { %v1402_v2 = vsel %vm1400_vm9, %v1398_v61, %v1387_v0  ;;  %v1395_v3 = vsel %vm421_vm4, %v8832_v34, %v1365_v63 }
 0x6f9   :  { %7227 = vmatmul.mubr.msk.f32.gmra.mxu1 %vm263_vm2, %v1402_v2 }
 0x6fa   :  { %7229 = vmatprep.mubr.msk.f32.mxu1 %vm8324_vm0, %v8323_v1 }
 0x6fb   :  { %v1389_v5 = vpop.permute.xlu1 %1388  ;;  %v1377_v4 = vpop.permute.xlu0 %1376 }
 0x6fc   :  { %v1399_v6 = vsel %vm1396_vm8, %v1395_v3, %v1377_v4  ;;  %v245_v4 = vld [vmem:[%s10711_s5 + $0x10] sm:$0xff] }
 0x6fd   :  { %v1403_v8 = vsel %vm1400_vm9, %v1399_v6, %v1389_v5  ;;  %v246_v5 = vld [vmem:[%s10711_s5 + $0x18] sm:$0xff]  ;;  %v244_v6 = vld [vmem:[%s10711_s5 + $0x8] sm:$0xff] }
 0x6fe   :  { %7230 = vmatmul.mubr.msk.f32.gmra.mxu1 %vm263_vm2, %v1403_v8  ;;  %7233 = vmatpush3.msra.mxu0 %v246_v5  ;;  %v243_v8 = vld [vmem:[%s10711_s5] sm:$0xff] }
 0x6ff   :  { %7281 = vmatprep.mubr.msk.f32.mxu1 %vm8324_vm0, %v8323_v1  ;;  %7234 = vmatprep.subr.mxu0 %v8323_v1 }
 0x700   :  { %7235 = vmatpush3.msra.mxu0 %v245_v4 }
 0x701   :  { %7236 = vmatprep.subr.mxu0 %v8323_v1 }
 0x702   :  { %7237 = vmatpush3.msra.mxu0 %v244_v6 }
 0x703   :  { %7238 = vmatprep.subr.mxu0 %v8323_v1 }
 0x704   :  { %7239 = vmatpush3.msra.mxu0 %v243_v8  ;;  %v260_v8 = vld [vmem:[%s10712_s6 + $0x68] sm:$0xff] }
 0x705   :  { %7290 = vmatprep.subr.mxu0 %v8323_v1 }
 0x7b5   :  { %v1483_v9 = vpop.f32.mrf.mxu1 }
 0x7b6   :  { %v1484_v11 = vadd.f32 %v6448_v7, %v1483_v9 }
 0x7b7   :  { %v7225_v12 = vpop.f32.mrf.mxu1 }
 0x7b8   :  { %v8894_v15 = vadd.f32 %v1484_v11, %v8452_v14 }
 0x7b9   :  { %v1488_v16 = vpop.f32.mrf.mxu1 }
 0x7ba   :  { %v1489_v21 = vadd.f32 %v6448_v7, %v1488_v16  ;;  %v1500_v22 = vsel %vm263_vm2, %v8894_v15, 0.0 }
 0x7bb   :  { %1501 = vadd.xlane.f32.xlu0 %v1500_v22  ;;  %v7228_v26 = vpop.f32.mrf.mxu1 }
 0x7bc   :  { %v8899_v28 = vadd.f32 %v1489_v21, %v8459_v19  ;;  %v1769_v19 = vsel %vm270_vm3, %v8905_v20, 0.0 }
 0x7be   :  { %v1493_v30 = vpop.f32.mrf.mxu1  ;;  %v1503_v14 = vsel %vm263_vm2, %v8899_v28, 0.0 }
 0x7bf   :  { %v1494_v32 = vadd.f32 %v6448_v7, %v1493_v30  ;;  %1504 = vadd.xlane.f32.xlu1 %v1503_v14 }
 0x7c0   :  { %v7231_v33 = vpop.f32.mrf.mxu1 }
 0x7c1   :  { %v8910_v34 = vadd.f32 %v1494_v32, %v8466_v24  ;;  %v8245_v24 = vld [vmem:[%s10707_s1 + $0x8] sm:$0xff] }
 0x7c2   :  { %v8926_v36 = vadd.f32 %v8245_v24, %v8653_v48 }
 0x7c3   :  { %1770 = vadd.xlane.f32.xlu1 %v1769_v19  ;;  %v1506_v35 = vsel %vm270_vm3, %v8910_v34, 0.0 }
 0x7c4   :  { %1507 = vadd.xlane.f32.xlu0 %v1506_v35  ;;  %v1766_v46 = vsel %vm263_vm2, %v8926_v36, 0.0  ;;  %v6452_v35 = vld [vmem:[%s10707_s1 + $0x15] ss:$0 sm:$0xff] }
 0x7c8   :  { %1764 = vadd.xlane.f32.xlu0 %v1763_v37 }
 0x7cc   :  { %1767 = vadd.xlane.f32.xlu0 %v1766_v46 }
 0x844   :  { %v1502_v27 = vpop.xlane.xlu0 %1501 }
 0x845   :  { %v1509_v39 = vmul.f32 0.03125, %v1502_v27 }
 0x847   :  { %v8933_v41 = vsub.f32 %v8894_v15, %v1509_v39 }
 0x848   :  { %v1505_v42 = vpop.xlane.xlu1 %1504 }
 0x849   :  { %v1510_v18 = vmul.f32 0.03125, %v1505_v42  ;;  %v1515_v44 = vmul.f32 %v8933_v41, %v8933_v41  ;;  %v6453_v42 = vld [vmem:[%s10707_s1 + $0x16] ss:$0 sm:$0xff] }
 0x84b   :  { %v8938_v48 = vsub.f32 %v8899_v28, %v1510_v18  ;;  %v1518_v47 = vsel %vm263_vm2, %v1515_v44, 0.0 }
 0x84c   :  { %1519 = vadd.xlane.f32.xlu0 %v1518_v47  ;;  %v1771_v49 = vpop.xlane.xlu1 %1770 }
 0x84d   :  { %v1508_v13 = vpop.xlane.xlu0 %1507  ;;  %v1516_v17 = vmul.f32 %v8938_v48, %v8938_v48  ;;  %v1774_v51 = vmul.f32 0.03125, %v1771_v49 }
 0x84e   :  { %v1511_v31 = vmul.f32 0.03125, %v1508_v13 }
 0x84f   :  { %v1521_v38 = vsel %vm263_vm2, %v1516_v17, 0.0  ;;  %v8950_v55 = vsub.f32 %v8905_v20, %v1774_v51  ;;  %v8248_v51 = vld [vmem:[%s10709_s3 + $0x8] sm:$0xff] }
 0x850   :  { %v8945_v52 = vsub.f32 %v8910_v34, %v1511_v31  ;;  %1522 = vadd.xlane.f32.xlu1 %v1521_v38  ;;  %v8247_v38 = vld [vmem:[%s10709_s3 + $0x10] sm:$0xff] }
 0x851   :  { %v1765_v40 = vpop.xlane.xlu0 %1764  ;;  %v1780_v63 = vmul.f32 %v8950_v55, %v8950_v55 }
 0x852   :  { %v1772_v53 = vmul.f32 0.03125, %v1765_v40  ;;  %v1517_v54 = vmul.f32 %v8945_v52, %v8945_v52 }
 0x853   :  { %v1787_v2 = vsel %vm270_vm3, %v1780_v63, 0.0 }
 0x854   :  { %v8953_v56 = vsub.f32 %v8918_v50, %v1772_v53  ;;  %v1524_v57 = vsel %vm270_vm3, %v1517_v54, 0.0 }
 0x855   :  { %1525 = vadd.xlane.f32.xlu0 %v1524_v57  ;;  %v1768_v59 = vpop.xlane.xlu0 %1767 }
 0x856   :  { %v1773_v58 = vmul.f32 0.03125, %v1768_v59  ;;  %v1778_v60 = vmul.f32 %v8953_v56, %v8953_v56  ;;  %v8250_v59 = vld [vmem:[%s10707_s1 + $0x11] ss:$0 sm:$0xff] }
 0x858   :  { %v8959_v62 = vsub.f32 %v8926_v36, %v1773_v58  ;;  %v1781_v61 = vsel %vm263_vm2, %v1778_v60, 0.0 }
 0x859   :  { %1782 = vadd.xlane.f32.xlu1 %v1781_v61  ;;  %v8251_v61 = vld [vmem:[%s10707_s1 + $0x12] ss:$0 sm:$0xff] }
 0x85a   :  { %v1779_v0 = vmul.f32 %v8959_v62, %v8959_v62 }
 0x85c   :  { %v1784_v3 = vsel %vm263_vm2, %v1779_v0, 0.0 }
 0x85d   :  { %1788 = vadd.xlane.f32.xlu1 %v1787_v2  ;;  %1785 = vadd.xlane.f32.xlu0 %v1784_v3 }
 0x8d5   :  { %v1520_v7 = vpop.xlane.xlu0 %1519 }
 0x8d6   :  { %v1527_v9 = vmul.f32 0.03125, %v1520_v7  ;;  %v259_v7 = vld [vmem:[%s10712_s6 + $0x60] sm:$0xff] }
 0x8d8   :  { %v1530_v11 = vadd.f32 1e-05, %v1527_v9  ;;  %v258_v9 = vld [vmem:[%s10712_s6 + $0x58] sm:$0xff] }
 0x8d9   :  { %v1523_v12 = vpop.xlane.xlu1 %1522 }
 0x8da   :  { %8025 = vrsqrt.f32 %v1530_v11  ;;  %v1528_v16 = vmul.f32 0.03125, %v1523_v12  ;;  %v257_v11 = vld [vmem:[%s10712_s6 + $0x50] sm:$0xff]  ;;  %v256_v12 = vld [vmem:[%s10712_s6 + $0x48] sm:$0xff] }
 0x8dc   :  { %v1531_v21 = vadd.f32 1e-05, %v1528_v16  ;;  %v255_v16 = vld [vmem:[%s10712_s6 + $0x40] sm:$0xff] }
 0x8de   :  { %8027 = vrsqrt.f32 %v1531_v21  ;;  %v1526_v22 = vpop.xlane.xlu0 %1525  ;;  %v254_v21 = vld [vmem:[%s10712_s6 + $0x38] sm:$0xff] }
 0x8df   :  { %v1529_v26 = vmul.f32 0.03125, %v1526_v22  ;;  %v253_v22 = vld [vmem:[%s10712_s6 + $0x30] sm:$0xff] }
 0x8e1   :  { %v1532_v29 = vadd.f32 1e-05, %v1529_v26  ;;  %v252_v26 = vld [vmem:[%s10712_s6 + $0x28] sm:$0xff] }
 0x8e2   :  { %v1783_v30 = vpop.xlane.xlu1 %1782 }
 0x8e3   :  { %8029 = vrsqrt.f32 %v1532_v29  ;;  %v1790_v14 = vmul.f32 0.03125, %v1783_v30  ;;  %v251_v29 = vld [vmem:[%s10712_s6 + $0x20] sm:$0xff]  ;;  %v250_v30 = vld [vmem:[%s10712_s6 + $0x18] sm:$0xff] }
 0x8e5   :  { %v1793_v32 = vadd.f32 1e-05, %v1790_v14  ;;  %v9094_v14 = vld [vmem:[%s10712_s6 + $0x10] sm:$0xff] }
 0x8e6   :  { %v1789_v33 = vpop.xlane.xlu1 %1788  ;;  %v1786_v19 = vpop.xlane.xlu0 %1785 }
 0x8e7   :  { %v8026_v23 = vpop.eup %8025  ;;  %8031 = vrsqrt.f32 %v1793_v32  ;;  %v1792_v24 = vmul.f32 0.03125, %v1789_v33  ;;  %v1791_v37 = vmul.f32 0.03125, %v1786_v19  ;;  %v9101_v32 = vld [vmem:[%s10712_s6 + $0x8] sm:$0xff]  ;;  %v9106_v33 = vld [vmem:[%s10712_s6] sm:$0xff]  ;;  %v6454_v19 = vld [vmem:[%s10707_s1 + $0x17] ss:$0 sm:$0xff] }
 0x8e8   :  { %v1536_v46 = vmul.f32 %v8026_v23, %v8933_v41  ;;  %v8246_v41 = vld [vmem:[%s10709_s3 + $0x18] sm:$0xff] }
 0x8e9   :  { %v1795_v27 = vadd.f32 1e-05, %v1792_v24  ;;  %v1794_v39 = vadd.f32 1e-05, %v1791_v37 }
 0x8ea   :  { %v1543_v18 = vmul.f32 %v6452_v35, %v1536_v46 }
 0x8eb   :  { %v8028_v44 = vpop.eup %8027  ;;  %8033 = vrsqrt.f32 %v1795_v27 }
 0x8ec   :  { %8035 = vrsqrt.f32 %v1794_v39  ;;  %v1550_v47 = vadd.f32 %v6453_v42, %v1543_v18  ;;  %v1537_v49 = vmul.f32 %v8028_v44, %v8938_v48 }
 0x8ee   :  { %7241 = vmatmul.mubr.msk.f32.vlgmr.msra.gmra.mxu0 %vm263_vm2, %v1550_v47  ;;  %v1544_v13 = vmul.f32 %v6452_v35, %v1537_v49 }
 0x8ef   :  { %7291 = vmatpush3.msra.mxu0 %v8246_v41  ;;  %7243 = vmatprep.mubr.msk.f32.mxu0 %vm8324_vm0, %v8323_v1 }
 0x8f0   :  { %v8030_v17 = vpop.eup %8029  ;;  %v1551_v31 = vadd.f32 %v6453_v42, %v1544_v13  ;;  %7292 = vmatprep.subr.mxu0 %v8323_v1 }
 0x8f1   :  { %7293 = vmatpush3.msra.mxu0 %v8247_v38  ;;  %v1538_v48 = vmul.f32 %v8030_v17, %v8945_v52  ;;  %v8249_v52 = vld [vmem:[%s10709_s3] sm:$0xff] }
 0x8f2   :  { %7244 = vmatmul.mubr.msk.f32.gmra.mxu0 %vm263_vm2, %v1551_v31  ;;  %7294 = vmatprep.subr.mxu0 %v8323_v1 }
 0x8f3   :  { %7246 = vmatprep.mubr.msk.f32.mxu0 %vm8324_vm0, %v8323_v1  ;;  %7295 = vmatpush3.msra.mxu0 %v8248_v51  ;;  %v1545_v40 = vmul.f32 %v6452_v35, %v1538_v48 }
 0x8f4   :  { %v8032_v53 = vpop.eup %8031  ;;  %7296 = vmatprep.subr.mxu0 %v8323_v1 }
 0x8f5   :  { %v1799_v54 = vmul.f32 %v8032_v53, %v8953_v56  ;;  %v1552_v57 = vadd.f32 %v6453_v42, %v1545_v40  ;;  %7297 = vmatpush3.msra.mxu0 %v8249_v52 }
 0x8f6   :  { %7307 = vmatprep.subr.mxu0 %v8323_v1 }
 0x8f7   :  { %v1802_v58 = vmul.f32 %v8250_v59, %v1799_v54  ;;  %7247 = vmatmul.mubr.msk.f32.gmra.mxu0 %vm263_vm2, %v1552_v57 }
 0x8f8   :  { %v8034_v60 = vpop.eup %8033  ;;  %7298 = vmatprep.mubr.msk.f32.mxu0 %vm8324_vm0, %v8323_v1 }
 0x8f9   :  { %v8036_v56 = vpop.eup %8035  ;;  %v1805_v63 = vadd.f32 %v8251_v61, %v1802_v58  ;;  %v1801_v2 = vmul.f32 %v8034_v60, %v8950_v55  ;;  %v9039_v55 = vld [vmem:[%s10712_s6 + $0x78] sm:$0xff]  ;;  %v8252_v60 = vld [vmem:[%s10707_s1 + $0x13] ss:$0 sm:$0xff] }
 0x8fa   :  { %v1800_v0 = vmul.f32 %v8036_v56, %v8959_v62  ;;  %7250 = vmatpush3.msra.mxu1 %v9039_v55  ;;  %v261_v62 = vld [vmem:[%s10712_s6 + $0x70] sm:$0xff] }
 0x8fb   :  { %7299 = vmatmul.mubr.msk.f32.vlgmr.msra.gmra.mxu0 %vm263_vm2, %v1805_v63  ;;  %v1804_v4 = vmul.f32 %v8250_v59, %v1801_v2  ;;  %7251 = vmatprep.subr.mxu1 %v8323_v1 }
 0x8fc   :  { %7301 = vmatprep.mubr.msk.f32.mxu0 %vm8324_vm0, %v8323_v1  ;;  %v1803_v3 = vmul.f32 %v8250_v59, %v1800_v0  ;;  %7252 = vmatpush3.msra.mxu1 %v261_v62 }
 0x8fd   :  { %v1807_v6 = vadd.f32 %v8251_v61, %v1804_v4  ;;  %7253 = vmatprep.subr.mxu1 %v8323_v1 }
 0x8fe   :  { %v1806_v5 = vadd.f32 %v8251_v61, %v1803_v3  ;;  %7254 = vmatpush3.msra.mxu1 %v260_v8 }
 0x8ff   :  { %7255 = vmatprep.subr.mxu1 %v8323_v1 }
 0x900   :  { %7302 = vmatmul.mubr.msk.f32.gmra.mxu0 %vm263_vm2, %v1806_v5  ;;  %7256 = vmatpush3.msra.mxu1 %v259_v7 }
 0x901   :  { %7304 = vmatprep.mubr.msk.f32.mxu0 %vm8324_vm0, %v8323_v1  ;;  %7257 = vmatprep.subr.mxu1 %v8323_v1 }
 0x902   :  { %7258 = vmatpush3.msra.mxu1 %v258_v9 }
 0x903   :  { %7259 = vmatprep.subr.mxu1 %v8323_v1 }
 0x904   :  { %7305 = vmatmul.mubr.msk.f32.gmra.mxu0 %vm263_vm2, %v1807_v6  ;;  %7260 = vmatpush3.msra.mxu1 %v257_v11 }
 0x905   :  { %7313 = vmatprep.mubr.msk.f32.mxu0 %vm8324_vm0, %v8323_v1  ;;  %7261 = vmatprep.subr.mxu1 %v8323_v1 }
 0x906   :  { %7262 = vmatpush3.msra.mxu1 %v256_v12 }
 0x907   :  { %7263 = vmatprep.subr.mxu1 %v8323_v1 }
 0x908   :  { %7264 = vmatpush3.msra.mxu1 %v255_v16 }
 0x909   :  { %7265 = vmatprep.subr.mxu1 %v8323_v1 }
 0x90a   :  { %7266 = vmatpush3.msra.mxu1 %v254_v21 }
 0x90b   :  { %7267 = vmatprep.subr.mxu1 %v8323_v1 }
 0x90c   :  { %7268 = vmatpush3.msra.mxu1 %v253_v22 }
 0x90d   :  { %7269 = vmatprep.subr.mxu1 %v8323_v1 }
 0x90e   :  { %7270 = vmatpush3.msra.mxu1 %v252_v26 }
 0x90f   :  { %7271 = vmatprep.subr.mxu1 %v8323_v1 }
 0x910   :  { %7272 = vmatpush3.msra.mxu1 %v251_v29 }
 0x911   :  { %7273 = vmatprep.subr.mxu1 %v8323_v1 }
 0x912   :  { %7274 = vmatpush3.msra.mxu1 %v250_v30 }
 0x913   :  { %7275 = vmatprep.subr.mxu1 %v8323_v1 }
 0x914   :  { %7276 = vmatpush3.msra.mxu1 %v9094_v14 }
 0x915   :  { %7277 = vmatprep.subr.mxu1 %v8323_v1 }
 0x916   :  { %7278 = vmatpush3.msra.mxu1 %v9101_v32 }
 0x917   :  { %7279 = vmatprep.subr.mxu1 %v8323_v1 }
 0x918   :  { %7280 = vmatpush3.msra.mxu1 %v9106_v33 }
 0x919   :  { %7322 = vmatprep.subr.mxu1 %v8323_v1 }
 0x9ae   :  { %v1632_v23 = vpop.f32.mrf.mxu0 }
 0x9af   :  { %v1633_v35 = vadd.f32 %v6454_v19, %v1632_v23 }
 0x9b0   :  { %v7242_v24 = vpop.f32.mrf.mxu0 }
 0x9b1   :  { %v1646_v37 = vmul.f32 %v1633_v35, %v1633_v35 }
 0x9b2   :  { %v1637_v46 = vpop.f32.mrf.mxu0 }
 0x9b3   :  { %v1649_v27 = vmul.f32 %v1646_v37, %v1633_v35  ;;  %v1638_v39 = vadd.f32 %v6454_v19, %v1637_v46 }
 0x9b4   :  { %v7245_v42 = vpop.f32.mrf.mxu0 }
 0x9b5   :  { %v1652_v18 = vmul.f32 0.044715, %v1649_v27  ;;  %v1647_v44 = vmul.f32 %v1638_v39, %v1638_v39 }
 0x9b7   :  { %v1655_v47 = vadd.f32 %v1652_v18, %v1633_v35  ;;  %v1650_v49 = vmul.f32 %v1647_v44, %v1638_v39  ;;  %v1642_v13 = vpop.f32.mrf.mxu0 }
 0x9b8   :  { %v1643_v41 = vadd.f32 %v6454_v19, %v1642_v13 }
 0x9b9   :  { %v1658_v17 = vmul.f32 0.7978846, %v1655_v47  ;;  %v1653_v31 = vmul.f32 0.044715, %v1650_v49  ;;  %v7248_v38 = vpop.f32.mrf.mxu0 }
 0x9ba   :  { %v1648_v48 = vmul.f32 %v1643_v41, %v1643_v41 }
 0x9bb   :  { %8037 = vtanh.f32 %v1658_v17  ;;  %v1656_v51 = vadd.f32 %v1653_v31, %v1638_v39  ;;  %v1883_v40 = vpop.f32.mrf.mxu0 }
 0x9bc   :  { %v1651_v53 = vmul.f32 %v1648_v48, %v1643_v41  ;;  %v9122_v2 = vadd.f32 %v8252_v60, %v1883_v40 }
 0x9bd   :  { %v1659_v54 = vmul.f32 0.7978846, %v1656_v51  ;;  %v7300_v57 = vpop.f32.mrf.mxu0 }
 0x9be   :  { %v1654_v52 = vmul.f32 0.044715, %v1651_v53 }
 0x9bf   :  { %8039 = vtanh.f32 %v1659_v54 }
 0x9c0   :  { %v1657_v59 = vadd.f32 %v1654_v52, %v1643_v41  ;;  %v1888_v58 = vpop.f32.mrf.mxu0 }
 0x9c1   :  { %v9118_v56 = vadd.f32 %v8252_v60, %v1888_v58 }
 0x9c2   :  { %v1660_v61 = vmul.f32 0.7978846, %v1657_v59  ;;  %v7303_v63 = vpop.f32.mrf.mxu0 }
 0x9c3   :  { %1902 = vrot.lane.b32.xlu1 %v9118_v56, %s8325_s29 }
 0x9c4   :  { %8041 = vtanh.f32 %v1660_v61  ;;  %v1893_v0 = vpop.f32.mrf.mxu0 }
 0x9c5   :  { %v9124_v3 = vadd.f32 %v8252_v60, %v1893_v0 }
 0x9c6   :  { %v7306_v5 = vpop.f32.mrf.mxu0 }
 0x9c7   :  { %1900 = vrot.lane.b32.xlu1 %v9122_v2, %s8325_s29  ;;  %1904 = vrot.lane.b32.xlu0 %v9124_v3, %s8325_s29 }
 0x9c8   :  { %v8038_v4 = vpop.eup %8037 }
 0x9c9   :  { %v1664_v6 = vadd.f32 1.0, %v8038_v4 }
 0x9cb   :  { %v1667_v62 = vmul.f32 0.5, %v1664_v6  ;;  %2140 = vrot.lane.b32.xlu1 %v9124_v3, %s8326_s0  ;;  %2138 = vrot.lane.b32.xlu0 %v9118_v56, %s8326_s0 }
 0x9cc   :  { %v8040_v8 = vpop.eup %8039 }
 0x9cd   :  { %v1670_v7 = vmul.f32 %v1667_v62, %v1633_v35  ;;  %v1665_v9 = vadd.f32 1.0, %v8040_v8 }
 0x9cf   :  { %2136 = vrot.lane.b32.xlu1 %v9122_v2, %s8326_s0  ;;  %2130 = vrot.lane.b32.xlu0 %v9122_v2, %s8327_s30  ;;  %v1668_v11 = vmul.f32 0.5, %v1665_v9 }
 0x9d0   :  { %7282 = vmatmul.mubr.f32.vlgmr.msra.gmra.mxu1 %v1670_v7 }
 0x9d1   :  { %v8042_v12 = vpop.eup %8041  ;;  %7284 = vmatprep.mubr.msk.f32.mxu1 %vm8324_vm0, %v8323_v1  ;;  %v1671_v16 = vmul.f32 %v1668_v11, %v1638_v39 }
 0x9d2   :  { %v1666_v21 = vadd.f32 1.0, %v8042_v12 }
 0x9d3   :  { %2376 = vrot.lane.b32.xlu1 %v9124_v3, %s8328_s9  ;;  %2132 = vrot.lane.b32.xlu0 %v9118_v56, %s8327_s30 }
 0x9d4   :  { %7285 = vmatmul.mubr.f32.gmra.mxu1 %v1671_v16  ;;  %v1669_v22 = vmul.f32 0.5, %v1666_v21 }
 0x9d5   :  { %7287 = vmatprep.mubr.msk.f32.mxu1 %vm8324_vm0, %v8323_v1 }
 0x9d6   :  { %v1672_v26 = vmul.f32 %v1669_v22, %v1643_v41 }
 0x9d7   :  { %2374 = vrot.lane.b32.xlu1 %v9118_v56, %s8328_s9  ;;  %2134 = vrot.lane.b32.xlu0 %v9124_v3, %s8327_s30 }
 0x9d8   :  { %7288 = vmatmul.mubr.f32.gmra.mxu1 %v1672_v26 }
 0x9d9   :  { %7328 = vmatprep.mubr.msk.f32.mxu1 %vm8324_vm0, %v8323_v1 }
 0x9db   :  { %2372 = vrot.lane.b32.xlu1 %v9122_v2, %s8328_s9  ;;  %2366 = vrot.lane.b32.xlu0 %v9122_v2, %s8329_s10 }
 0x9df   :  { %2612 = vrot.lane.b32.xlu1 %v9124_v3, %s8330_s11  ;;  %2368 = vrot.lane.b32.xlu0 %v9118_v56, %s8329_s10 }
 0x9e3   :  { %2610 = vrot.lane.b32.xlu1 %v9118_v56, %s8330_s11  ;;  %2370 = vrot.lane.b32.xlu0 %v9124_v3, %s8329_s10 }
 0x9e7   :  { %2608 = vrot.lane.b32.xlu1 %v9122_v2, %s8330_s11  ;;  %2602 = vrot.lane.b32.xlu0 %v9122_v2, %s8331_s12 }
 0x9eb   :  { %2604 = vrot.lane.b32.xlu1 %v9118_v56, %s8331_s12  ;;  %2606 = vrot.lane.b32.xlu0 %v9124_v3, %s8331_s12 }
 0x9ef   :  { %2031 = vrot.lane.b32.xlu1 %v9122_v2, %s8332_s13  ;;  %2033 = vrot.lane.b32.xlu0 %v9118_v56, %s8332_s13 }
 0x9f3   :  { %2035 = vrot.lane.b32.xlu1 %v9124_v3, %s8332_s13 }
 0x9f7   :  { %2271 = vrot.lane.b32.xlu1 %v9124_v3, %s8333_s14 }
 0xa35   :  { %v1903_v29 = vpop.permute.xlu1 %1902 }
 0xa39   :  { %v1901_v30 = vpop.permute.xlu1 %1900  ;;  %v1905_v19 = vpop.permute.xlu0 %1904 }
 0xa3a   :  { %7308 = vmatpush3.xpose.msk.msra.mxu0 %vm421_vm4, %v1905_v19 }
 0xa3b   :  { %7309 = vmatprep.subr.mxu0 %v8323_v1 }
 0xa3d   :  { %v2141_v23 = vpop.permute.xlu1 %2140  ;;  %v2139_v35 = vpop.permute.xlu0 %2138 }
 0xa3e   :  { %7310 = vmatpush3.xpose.msk.msra.mxu0 %vm421_vm4, %v1903_v29 }
 0xa3f   :  { %7311 = vmatprep.subr.mxu0 %v8323_v1 }
 0xa41   :  { %v2137_v24 = vpop.permute.xlu1 %2136  ;;  %v2131_v37 = vpop.permute.xlu0 %2130 }
 0xa42   :  { %7312 = vmatpush3.xpose.msk.msra.mxu0 %vm421_vm4, %v1901_v30 }
 0xa43   :  { %7337 = vmatprep.subr.mxu0 %v8323_v1 }
 0xa45   :  { %v2377_v46 = vpop.permute.xlu1 %2376  ;;  %7314 = vmatmul.mubr.msk.f32.vlgmr.msra.gmra.mxu0 %vm421_vm4, %v9122_v2  ;;  %v2133_v27 = vpop.permute.xlu0 %2132 }
 0xa46   :  { %7338 = vmatpush3.xpose.msk.msra.mxu0 %vm421_vm4, %v2141_v23  ;;  %7316 = vmatprep.mubr.msk.f32.mxu0 %vm8324_vm0, %v8323_v1 }
 0xa47   :  { %7339 = vmatprep.subr.mxu0 %v8323_v1 }
 0xa49   :  { %v2375_v39 = vpop.permute.xlu1 %2374  ;;  %7317 = vmatmul.mubr.msk.f32.gmra.mxu0 %vm421_vm4, %v9118_v56  ;;  %v2135_v42 = vpop.permute.xlu0 %2134 }
 0xa4a   :  { %7340 = vmatpush3.xpose.msk.msra.mxu0 %vm421_vm4, %v2139_v35  ;;  %7319 = vmatprep.mubr.msk.f32.mxu0 %vm8324_vm0, %v8323_v1 }
 0xa4b   :  { %7341 = vmatprep.subr.mxu0 %v8323_v1 }
 0xa4d   :  { %v2373_v18 = vpop.permute.xlu1 %2372  ;;  %7320 = vmatmul.mubr.msk.f32.gmra.mxu0 %vm421_vm4, %v9124_v3  ;;  %v2367_v44 = vpop.permute.xlu0 %2366 }
 0xa4e   :  { %7342 = vmatpush3.xpose.msk.msra.mxu0 %vm421_vm4, %v2137_v24  ;;  %7343 = vmatprep.mubr.msk.f32.mxu0 %vm8324_vm0, %v8323_v1 }
 0xa4f   :  { %7367 = vmatprep.subr.mxu0 %v8323_v1 }
 0xa51   :  { %v2613_v47 = vpop.permute.xlu1 %2612  ;;  %7344 = vmatmul.mubr.msk.f32.vlgmr.msra.gmra.mxu0 %vm421_vm4, %v2131_v37  ;;  %v2369_v49 = vpop.permute.xlu0 %2368 }
 0xa52   :  { %7368 = vmatpush3.xpose.msk.msra.mxu0 %vm421_vm4, %v2377_v46  ;;  %7346 = vmatprep.mubr.msk.f32.mxu0 %vm8324_vm0, %v8323_v1 }
 0xa53   :  { %7369 = vmatprep.subr.mxu0 %v8323_v1 }
 0xa55   :  { %v2611_v13 = vpop.permute.xlu1 %2610  ;;  %7347 = vmatmul.mubr.msk.f32.gmra.mxu0 %vm421_vm4, %v2133_v27  ;;  %v2371_v41 = vpop.permute.xlu0 %2370 }
 0xa56   :  { %7370 = vmatpush3.xpose.msk.msra.mxu0 %vm421_vm4, %v2375_v39  ;;  %7349 = vmatprep.mubr.msk.f32.mxu0 %vm8324_vm0, %v8323_v1 }
 0xa57   :  { %7371 = vmatprep.subr.mxu0 %v8323_v1 }
 0xa59   :  { %v2609_v17 = vpop.permute.xlu1 %2608  ;;  %7350 = vmatmul.mubr.msk.f32.gmra.mxu0 %vm421_vm4, %v2135_v42  ;;  %v2603_v31 = vpop.permute.xlu0 %2602 }
 0xa5a   :  { %7372 = vmatpush3.xpose.msk.msra.mxu0 %vm421_vm4, %v2373_v18  ;;  %7373 = vmatprep.mubr.msk.f32.mxu0 %vm8324_vm0, %v8323_v1 }
 0xa5b   :  { %7397 = vmatprep.subr.mxu0 %v8323_v1 }
 0xa5d   :  { %v2605_v38 = vpop.permute.xlu1 %2604  ;;  %7374 = vmatmul.mubr.msk.f32.vlgmr.msra.gmra.mxu0 %vm421_vm4, %v2367_v44  ;;  %v2607_v48 = vpop.permute.xlu0 %2606 }
 0xa5e   :  { %7398 = vmatpush3.xpose.msk.msra.mxu0 %vm421_vm4, %v2613_v47  ;;  %7376 = vmatprep.mubr.msk.f32.mxu0 %vm8324_vm0, %v8323_v1 }
 0xa5f   :  { %7399 = vmatprep.subr.mxu0 %v8323_v1 }
 0xa61   :  { %v2032_v51 = vpop.permute.xlu1 %2031  ;;  %7377 = vmatmul.mubr.msk.f32.gmra.mxu0 %vm421_vm4, %v2369_v49  ;;  %v2034_v53 = vpop.permute.xlu0 %2033 }
 0xa62   :  { %7400 = vmatpush3.xpose.msk.msra.mxu0 %vm421_vm4, %v2611_v13  ;;  %7379 = vmatprep.mubr.msk.f32.mxu0 %vm8324_vm0, %v8323_v1 }
 0xa63   :  { %7401 = vmatprep.subr.mxu0 %v8323_v1 }
 0xa65   :  { %v2036_v40 = vpop.permute.xlu1 %2035  ;;  %7380 = vmatmul.mubr.msk.f32.gmra.mxu0 %vm421_vm4, %v2371_v41 }
 0xa66   :  { %7323 = vmatpush3.msk.msra.mxu1 %vm566_vm5, %v2036_v40  ;;  %7402 = vmatpush3.xpose.msk.msra.mxu0 %vm421_vm4, %v2609_v17 }
 0xa67   :  { %7324 = vmatprep.subr.mxu1 %v8323_v1  ;;  %7403 = vmatprep.mubr.msk.f32.mxu0 %vm8324_vm0, %v8323_v1 }
 0xa68   :  { %7325 = vmatpush3.msra.mxu1 %v2034_v53  ;;  %7427 = vmatprep.subr.mxu0 %v8323_v1 }
 0xa69   :  { %7326 = vmatprep.subr.mxu1 %v8323_v1  ;;  %7404 = vmatmul.mubr.msk.f32.vlgmr.msra.gmra.mxu0 %vm421_vm4, %v2603_v31  ;;  %v9300_v41 = vpop.permute.xlu1 %2271 }
 0xa6a   :  { %7327 = vmatpush3.msra.mxu1 %v2032_v51  ;;  %7406 = vmatprep.mubr.msk.f32.mxu0 %vm8324_vm0, %v8323_v1 }
 0xa6b   :  { %7352 = vmatprep.subr.mxu1 %v8323_v1  ;;  %7428 = vmatpush3.msra.mxu0 %v8840_v43 }
 0xa6c   :  { %7429 = vmatprep.subr.mxu0 %v8323_v1 }
 0xa6d   :  { %7407 = vmatmul.mubr.msk.f32.gmra.mxu0 %vm421_vm4, %v2605_v38 }
 0xa6e   :  { %7409 = vmatprep.mubr.msk.f32.mxu0 %vm8324_vm0, %v8323_v1  ;;  %7430 = vmatpush3.msra.mxu0 %v8845_v10 }
 0xa6f   :  { %7431 = vmatprep.subr.mxu0 %v8323_v1 }
 0xa70   :  { %7432 = vmatpush3.msra.mxu0 %v8852_v25 }
 0xa71   :  { %7410 = vmatmul.mubr.msk.f32.gmra.mxu0 %vm421_vm4, %v2607_v48  ;;  %7433 = vmatprep.subr.mxu0 %v8323_v1 }
 0xa72   :  { %7434 = vmatpush3.msra.mxu0 %v8861_v45  ;;  %7435 = vmatprep.mubr.msk.f32.mxu0 %vm8324_vm0, %v8323_v1 }
 0xa73   :  { %7461 = vmatprep.subr.mxu0 %v8323_v1 }
 0xa90   :  { %v9255_v43 = vpop.f32.mrf.mxu1 }
 0xa92   :  { %v7283_v54 = vpop.f32.mrf.mxu1 }
 0xa94   :  { %v9257_v57 = vpop.f32.mrf.mxu1 }
 0xa96   :  { %v7286_v10 = vpop.f32.mrf.mxu1 }
 0xa98   :  { %v9259_v52 = vpop.f32.mrf.mxu1 }
 0xa9a   :  { %v7289_v25 = vpop.f32.mrf.mxu1 }
 0xb05   :  { %v1984_v59 = vpop.f32.mrf.mxu0 }
 0xb06   :  { %v1998_v58 = vsel %vm514_vm6, %v1984_v59, -inf }
 0xb07   :  { %1999 = vmax.xlane.f32.xlu1 %v1998_v58  ;;  %v7315_v60 = vpop.f32.mrf.mxu0 }
 0xb09   :  { %v1989_v45 = vpop.f32.mrf.mxu0 }
 0xb0a   :  { %v2001_v61 = vsel %vm514_vm6, %v1989_v45, -inf }
 0xb0b   :  { %2002 = vmax.xlane.f32.xlu0 %v2001_v61  ;;  %v7318_v63 = vpop.f32.mrf.mxu0 }
 0xb0d   :  { %v9263_v0 = vpop.f32.mrf.mxu0 }
 0xb0e   :  { %v2004_v5 = vsel %vm521_vm7, %v9263_v0, -inf }
 0xb0f   :  { %2005 = vmax.xlane.f32.xlu0 %v2004_v5  ;;  %v7321_v4 = vpop.f32.mrf.mxu0 }
 0xb11   :  { %v9267_v6 = vpop.f32.mrf.mxu0 }
 0xb12   :  { %v2234_v62 = vsel %vm514_vm6, %v9267_v6, -inf }
 0xb13   :  { %2235 = vmax.xlane.f32.xlu0 %v2234_v62  ;;  %v7345_v8 = vpop.f32.mrf.mxu0 }
 0xb15   :  { %v2225_v7 = vpop.f32.mrf.mxu0 }
 0xb16   :  { %v2237_v9 = vsel %vm514_vm6, %v2225_v7, -inf }
 0xb17   :  { %2238 = vmax.xlane.f32.xlu1 %v2237_v9  ;;  %v7348_v11 = vpop.f32.mrf.mxu0 }
 0xb19   :  { %v9272_v12 = vpop.f32.mrf.mxu0 }
 0xb1a   :  { %v2240_v16 = vsel %vm521_vm7, %v9272_v12, -inf }
 0xb1b   :  { %2241 = vmax.xlane.f32.xlu0 %v2240_v16  ;;  %v7351_v21 = vpop.f32.mrf.mxu0 }
 0xb1d   :  { %v9276_v22 = vpop.f32.mrf.mxu0 }
 0xb1e   :  { %v2470_v26 = vsel %vm514_vm6, %v9276_v22, -inf }
 0xb1f   :  { %2471 = vmax.xlane.f32.xlu1 %v2470_v26  ;;  %v7375_v29 = vpop.f32.mrf.mxu0 }
 0xb21   :  { %v9280_v30 = vpop.f32.mrf.mxu0 }
 0xb22   :  { %v2473_v19 = vsel %vm514_vm6, %v9280_v30, -inf }
 0xb23   :  { %2474 = vmax.xlane.f32.xlu0 %v2473_v19  ;;  %v7378_v23 = vpop.f32.mrf.mxu0 }
 0xb25   :  { %v2466_v35 = vpop.f32.mrf.mxu0 }
 0xb26   :  { %v2476_v24 = vsel %vm521_vm7, %v2466_v35, -inf }
 0xb27   :  { %2477 = vmax.xlane.f32.xlu1 %v2476_v24  ;;  %v7381_v37 = vpop.f32.mrf.mxu0 }
 0xb29   :  { %v2692_v46 = vpop.f32.mrf.mxu0 }
 0xb2a   :  { %v2706_v27 = vsel %vm514_vm6, %v2692_v46, -inf }
 0xb2b   :  { %2707 = vmax.xlane.f32.xlu0 %v2706_v27  ;;  %v7405_v39 = vpop.f32.mrf.mxu0 }
 0xb2d   :  { %v9286_v42 = vpop.f32.mrf.mxu0 }
 0xb2e   :  { %v2709_v49 = vsel %vm514_vm6, %v9286_v42, -inf }
 0xb2f   :  { %v7408_v18 = vpop.f32.mrf.mxu0 }
 0xb31   :  { %v9288_v44 = vpop.f32.mrf.mxu0 }
 0xb32   :  { %v2712_v13 = vsel %vm521_vm7, %v9288_v44, -inf }
 0xb33   :  { %v7411_v47 = vpop.f32.mrf.mxu0 }
 0xb38   :  { %2267 = vrot.lane.b32.xlu1 %v9122_v2, %s8333_s14 }
 0xb3c   :  { %2507 = vrot.lane.b32.xlu1 %v9124_v3, %s8334_s15 }
 0xb41   :  { %2269 = vrot.lane.b32.xlu0 %v9118_v56, %s8333_s14 }
 0xb60   :  { %2710 = vmax.xlane.f32.xlu1 %v2709_v49  ;;  %2713 = vmax.xlane.f32.xlu0 %v2712_v13 }
 0xb90   :  { %v2000_v17 = vpop.xlane.xlu1 %1999 }
 0xb91   :  { %v2007_v31 = vsub.f32 %v1984_v59, %v2000_v17 }
 0xb93   :  { %v2010_v38 = vmul.f32 1.442695, %v2007_v31 }
 0xb94   :  { %v2003_v48 = vpop.xlane.xlu0 %2002 }
 0xb95   :  { %8043 = vpow2.f32 %v2010_v38  ;;  %v2008_v51 = vsub.f32 %v1989_v45, %v2003_v48 }
 0xb97   :  { %v2012_v40 = vmul.f32 1.442695, %v2008_v51 }
 0xb98   :  { %v2006_v59 = vpop.xlane.xlu0 %2005 }
 0xb99   :  { %8045 = vpow2.f32 %v2012_v40  ;;  %v2009_v58 = vsub.f32 %v9263_v0, %v2006_v59 }
 0xb9b   :  { %v2014_v63 = vmul.f32 1.442695, %v2009_v58 }
 0xb9c   :  { %v2236_v60 = vpop.xlane.xlu0 %2235 }
 0xb9d   :  { %v2243_v61 = vsub.f32 %v9267_v6, %v2236_v60  ;;  %8047 = vpow2.f32 %v2014_v63 }
 0xb9f   :  { %v2246_v62 = vmul.f32 1.442695, %v2243_v61 }
 0xba0   :  { %v2239_v45 = vpop.xlane.xlu1 %2238 }
 0xba1   :  { %v2244_v5 = vsub.f32 %v2225_v7, %v2239_v45  ;;  %8049 = vpow2.f32 %v2246_v62 }
 0xba2   :  { %v9302_v53 = vpop.eup %8043 }
 0xba3   :  { %v2016_v54 = vsel %vm514_vm6, %v9302_v53, 0.0  ;;  %v2248_v8 = vmul.f32 1.442695, %v2244_v5 }
 0xba4   :  { %2017 = vadd.xlane.f32.xlu1 %v2016_v54  ;;  %v2242_v4 = vpop.xlane.xlu0 %2241 }
 0xba5   :  { %v2245_v9 = vsub.f32 %v9272_v12, %v2242_v4  ;;  %8051 = vpow2.f32 %v2248_v8 }
 0xba6   :  { %v9306_v10 = vpop.eup %8045 }
 0xba7   :  { %v2019_v25 = vsel %vm514_vm6, %v9306_v10, 0.0  ;;  %v2250_v16 = vmul.f32 1.442695, %v2245_v9 }
 0xba8   :  { %2020 = vadd.xlane.f32.xlu0 %v2019_v25  ;;  %v2472_v11 = vpop.xlane.xlu1 %2471 }
 0xba9   :  { %v2479_v21 = vsub.f32 %v9276_v22, %v2472_v11  ;;  %8053 = vpow2.f32 %v2250_v16 }
 0xbaa   :  { %v9318_v24 = vpop.eup %8047 }
 0xbab   :  { %v2482_v29 = vmul.f32 1.442695, %v2479_v21  ;;  %v2022_v27 = vsel %vm521_vm7, %v9318_v24, 0.0 }
 0xbac   :  { %v2475_v26 = vpop.xlane.xlu0 %2474 }
 0xbad   :  { %8055 = vpow2.f32 %v2482_v29  ;;  %v2480_v58 = vsub.f32 %v9280_v30, %v2475_v26 }
 0xbae   :  { %v9320_v37 = vpop.eup %8049 }
 0xbaf   :  { %v2484_v61 = vmul.f32 1.442695, %v2480_v58 }
 0xbb0   :  { %v2478_v0 = vpop.xlane.xlu1 %2477 }
 0xbb1   :  { %v2481_v19 = vsub.f32 %v2466_v35, %v2478_v0  ;;  %v2252_v35 = vsel %vm514_vm6, %v9320_v37, 0.0 }
 0xbb2   :  { %v9324_v39 = vpop.eup %8051 }
 0xbb3   :  { %v2486_v7 = vmul.f32 1.442695, %v2481_v19  ;;  %v2255_v22 = vsel %vm514_vm6, %v9324_v39, 0.0 }
 0xbb4   :  { %v2708_v6 = vpop.xlane.xlu0 %2707  ;;  %v2268_v25 = vpop.permute.xlu1 %2267 }
 0xbb5   :  { %2503 = vrot.lane.b32.xlu1 %v9122_v2, %s8334_s15  ;;  %v2715_v23 = vsub.f32 %v2692_v46, %v2708_v6  ;;  %8057 = vpow2.f32 %v2486_v7 }
 0xbb6   :  { %v9330_v46 = vpop.eup %8053 }
 0xbb7   :  { %v2718_v12 = vmul.f32 1.442695, %v2715_v23  ;;  %v2258_v18 = vsel %vm521_vm7, %v9330_v46, 0.0 }
 0xbb8   :  { %v2270_v17 = vpop.permute.xlu0 %2269  ;;  %v2508_v59 = vpop.permute.xlu1 %2507 }
 0xbb9   :  { %8059 = vpow2.f32 %v2718_v12 }
 0xbba   :  { %v9334_v47 = vpop.eup %8055 }
 0xbbb   :  { %v2488_v49 = vsel %vm514_vm6, %v9334_v47, 0.0 }
 0xbbe   :  { %2505 = vrot.lane.b32.xlu0 %v9118_v56, %s8334_s15 }
 0xbc2   :  { %v9338_v13 = vpop.eup %8057 }
 0xbc3   :  { %v2494_v31 = vsel %vm521_vm7, %v9338_v13, 0.0 }
 0xbc6   :  { %v9342_v38 = vpop.eup %8059 }
 0xbc7   :  { %v2724_v54 = vsel %vm514_vm6, %v9342_v38, 0.0 }
 0xbd9   :  { %2023 = vadd.xlane.f32.xlu1 %v2022_v27 }
 0xbdd   :  { %2256 = vadd.xlane.f32.xlu1 %v2255_v22  ;;  %2253 = vadd.xlane.f32.xlu0 %v2252_v35 }
 0xbe1   :  { %2259 = vadd.xlane.f32.xlu0 %v2258_v18 }
 0xbe5   :  { %2489 = vadd.xlane.f32.xlu0 %v2488_v49 }
 0xbe9   :  { %2495 = vadd.xlane.f32.xlu0 %v2494_v31  ;;  %v2714_v48 = vpop.xlane.xlu0 %2713  ;;  %v2711_v60 = vpop.xlane.xlu1 %2710 }
 0xbea   :  { %v2717_v51 = vsub.f32 %v9288_v44, %v2714_v48  ;;  %v2716_v63 = vsub.f32 %v9286_v42, %v2711_v60  ;;  %v8253_v60 = vld [vmem:[%s10711_s5 + $0x18] sm:$0xff] }
 0xbec   :  { %v2722_v40 = vmul.f32 1.442695, %v2717_v51  ;;  %v2720_v5 = vmul.f32 1.442695, %v2716_v63  ;;  %v8255_v63 = vld [vmem:[%s10711_s5 + $0x8] sm:$0xff] }
 0xbed   :  { %2725 = vadd.xlane.f32.xlu0 %v2724_v54 }
 0xbee   :  { %2743 = vrot.lane.b32.xlu1 %v9124_v3, %s8335_s16  ;;  %8061 = vpow2.f32 %v2722_v40 }
 0xbef   :  { %8063 = vpow2.f32 %v2484_v61 }
 0xbf0   :  { %8065 = vpow2.f32 %v2720_v5  ;;  %v8256_v5 = vld [vmem:[%s10711_s5] sm:$0xff] }
 0xbfb   :  { %v9350_v45 = vpop.eup %8061 }
 0xbfc   :  { %v2730_v44 = vsel %vm521_vm7, %v9350_v45, 0.0  ;;  %v9355_v4 = vpop.eup %8063 }
 0xbfd   :  { %2731 = vadd.xlane.f32.xlu0 %v2730_v44  ;;  %v2491_v3 = vsel %vm514_vm6, %v9355_v4, 0.0  ;;  %v9359_v62 = vpop.eup %8065 }
 0xbfe   :  { %v2727_v30 = vsel %vm514_vm6, %v9359_v62, 0.0 }
 0xc12   :  { %2492 = vadd.xlane.f32.xlu1 %v2491_v3 }
 0xc13   :  { %2739 = vrot.lane.b32.xlu0 %v9122_v2, %s8335_s16 }
 0xc16   :  { %2728 = vadd.xlane.f32.xlu1 %v2727_v30 }
 0xc27   :  { %2741 = vrot.lane.b32.xlu1 %v9118_v56, %s8335_s16 }
 0xc2d   :  { %v2018_v42 = vpop.xlane.xlu1 %2017 }
 0xc2e   :  { %8067 = vrcp.f32 %v2018_v42 }
 0xc31   :  { %v2021_v8 = vpop.xlane.xlu0 %2020  ;;  %v2504_v2 = vpop.permute.xlu1 %2503 }
 0xc32   :  { %8069 = vrcp.f32 %v2021_v8 }
 0xc3b   :  { %v8068_v9 = vpop.eup %8067 }
 0xc3c   :  { %v2026_v11 = vmul.f32 %v8068_v9, %v9302_v53 }
 0xc3e   :  { %7329 = vmatmul.mubr.msk.f32.vlgmr.msra.gmra.mxu1 %vm514_vm6, %v2026_v11 }
 0xc3f   :  { %v8070_v16 = vpop.eup %8069  ;;  %7353 = vmatpush3.msk.msra.mxu1 %vm566_vm5, %v9300_v41  ;;  %7331 = vmatprep.mubr.msk.f32.mxu1 %vm8324_vm0, %v8323_v1  ;;  %v2506_v41 = vpop.permute.xlu0 %2505 }
 0xc40   :  { %7354 = vmatprep.subr.mxu1 %v8323_v1  ;;  %v2028_v56 = vmul.f32 %v8070_v16, %v9306_v10 }
 0xc41   :  { %7355 = vmatpush3.msra.mxu1 %v2270_v17 }
 0xc42   :  { %7356 = vmatprep.subr.mxu1 %v8323_v1  ;;  %7332 = vmatmul.mubr.msk.f32.gmra.mxu1 %vm514_vm6, %v2028_v56 }
 0xc43   :  { %7357 = vmatpush3.msra.mxu1 %v2268_v25  ;;  %7334 = vmatprep.mubr.msk.f32.mxu1 %vm8324_vm0, %v8323_v1 }
 0xc44   :  { %7382 = vmatprep.subr.mxu1 %v8323_v1 }
 0xc62   :  { %v2024_v53 = vpop.xlane.xlu1 %2023 }
 0xc63   :  { %8071 = vrcp.f32 %v2024_v53 }
 0xc66   :  { %v2254_v21 = vpop.xlane.xlu0 %2253  ;;  %v2257_v26 = vpop.xlane.xlu1 %2256 }
 0xc67   :  { %8073 = vrcp.f32 %v2254_v21 }
 0xc68   :  { %8075 = vrcp.f32 %v2257_v26 }
 0xc6a   :  { %v2260_v10 = vpop.xlane.xlu0 %2259  ;;  %v2744_v22 = vpop.permute.xlu1 %2743 }
 0xc6b   :  { %8077 = vrcp.f32 %v2260_v10 }
 0xc6e   :  { %v2490_v0 = vpop.xlane.xlu0 %2489 }
 0xc6f   :  { %8079 = vrcp.f32 %v2490_v0 }
 0xc70   :  { %v8072_v29 = vpop.eup %8071 }
 0xc71   :  { %v2030_v19 = vmul.f32 %v8072_v29, %v9318_v24 }
 0xc72   :  { %v2496_v35 = vpop.xlane.xlu0 %2495 }
 0xc73   :  { %7335 = vmatmul.mubr.msk.f32.gmra.mxu1 %vm514_vm6, %v2030_v19 }
 0xc74   :  { %7358 = vmatprep.mubr.msk.f32.mxu1 %vm8324_vm0, %v8323_v1  ;;  %v8074_v6 = vpop.eup %8073 }
 0xc75   :  { %v2262_v7 = vmul.f32 %v8074_v6, %v9320_v37  ;;  %v8076_v23 = vpop.eup %8075 }
 0xc76   :  { %v2264_v24 = vmul.f32 %v8076_v23, %v9324_v39 }
 0xc77   :  { %7359 = vmatmul.mubr.msk.f32.vlgmr.msra.gmra.mxu1 %vm514_vm6, %v2262_v7 }
 0xc78   :  { %7383 = vmatpush3.msk.msra.mxu1 %vm566_vm5, %v2508_v59  ;;  %7361 = vmatprep.mubr.msk.f32.mxu1 %vm8324_vm0, %v8323_v1  ;;  %v8078_v12 = vpop.eup %8077 }
 0xc79   :  { %7384 = vmatprep.subr.mxu1 %v8323_v1  ;;  %v2266_v37 = vmul.f32 %v8078_v12, %v9330_v46  ;;  %v2726_v46 = vpop.xlane.xlu0 %2725 }
 0xc7a   :  { %7385 = vmatpush3.msra.mxu1 %v2506_v41 }
 0xc7b   :  { %7386 = vmatprep.subr.mxu1 %v8323_v1  ;;  %7362 = vmatmul.mubr.msk.f32.gmra.mxu1 %vm514_vm6, %v2264_v24 }
 0xc7c   :  { %7387 = vmatpush3.msra.mxu1 %v2504_v2  ;;  %7364 = vmatprep.mubr.msk.f32.mxu1 %vm8324_vm0, %v8323_v1  ;;  %v8080_v27 = vpop.eup %8079 }
 0xc7d   :  { %7412 = vmatprep.subr.mxu1 %v8323_v1  ;;  %v2498_v39 = vmul.f32 %v8080_v27, %v9334_v47 }
 0xc7f   :  { %7365 = vmatmul.mubr.msk.f32.gmra.mxu1 %vm514_vm6, %v2266_v37 }
 0xc80   :  { %7388 = vmatprep.mubr.msk.f32.mxu1 %vm8324_vm0, %v8323_v1 }
 0xc83   :  { %7389 = vmatmul.mubr.msk.f32.vlgmr.msra.gmra.mxu1 %vm514_vm6, %v2498_v39 }
 0xc84   :  { %7413 = vmatpush3.msk.msra.mxu1 %vm566_vm5, %v2744_v22  ;;  %7391 = vmatprep.mubr.msk.f32.mxu1 %vm8324_vm0, %v8323_v1 }
 0xc85   :  { %7414 = vmatprep.subr.mxu1 %v8323_v1 }
 0xc86   :  { %v2732_v49 = vpop.xlane.xlu0 %2731 }
 0xc8a   :  { %v2740_v47 = vpop.permute.xlu0 %2739 }
 0xc9b   :  { %v2493_v18 = vpop.xlane.xlu1 %2492 }
 0xc9c   :  { %8081 = vrcp.f32 %v2493_v18 }
 0xc9d   :  { %8083 = vrcp.f32 %v2496_v35 }
 0xc9e   :  { %8085 = vrcp.f32 %v2726_v46 }
 0xc9f   :  { %v2729_v17 = vpop.xlane.xlu1 %2728 }
 0xca0   :  { %8087 = vrcp.f32 %v2729_v17 }
 0xca1   :  { %8089 = vrcp.f32 %v2732_v49 }
 0xca3   :  { %v2742_v31 = vpop.permute.xlu1 %2741 }
 0xca4   :  { %7415 = vmatpush3.msra.mxu1 %v2742_v31 }
 0xca5   :  { %7416 = vmatprep.subr.mxu1 %v8323_v1 }
 0xca6   :  { %7417 = vmatpush3.msra.mxu1 %v2740_v47 }
 0xca7   :  { %7444 = vmatprep.subr.mxu1 %v8323_v1 }
 0xca9   :  { %v8082_v48 = vpop.eup %8081 }
 0xcaa   :  { %v2500_v51 = vmul.f32 %v8082_v48, %v9355_v4  ;;  %v8084_v40 = vpop.eup %8083 }
 0xcab   :  { %v2502_v54 = vmul.f32 %v8084_v40, %v9338_v13  ;;  %v8086_v25 = vpop.eup %8085 }
 0xcac   :  { %7392 = vmatmul.mubr.msk.f32.gmra.mxu1 %vm514_vm6, %v2500_v51  ;;  %v2734_v59 = vmul.f32 %v8086_v25, %v9342_v38  ;;  %v8254_v38 = vld [vmem:[%s10711_s5 + $0x10] sm:$0xff] }
 0xcad   :  { %7394 = vmatprep.mubr.msk.f32.mxu1 %vm8324_vm0, %v8323_v1  ;;  %v8088_v58 = vpop.eup %8087  ;;  %v8257_v51 = vld [vmem:[%s10712_s6 + $0x70] sm:$0xff] }
 0xcae   :  { %v2736_v13 = vmul.f32 %v8088_v58, %v9359_v62  ;;  %v8090_v61 = vpop.eup %8089  ;;  %v8259_v58 = vld [vmem:[%s10712_s6 + $0x60] sm:$0xff] }
 0xcaf   :  { %v2738_v44 = vmul.f32 %v8090_v61, %v9350_v45  ;;  %v8261_v61 = vld [vmem:[%s10712_s6 + $0x50] sm:$0xff] }
 0xcb0   :  { %7395 = vmatmul.mubr.msk.f32.gmra.mxu1 %vm514_vm6, %v2502_v54 }
 0xcb1   :  { %7418 = vmatprep.mubr.msk.f32.mxu1 %vm8324_vm0, %v8323_v1 }
 0xcb4   :  { %7419 = vmatmul.mubr.msk.f32.vlgmr.msra.gmra.mxu1 %vm514_vm6, %v2734_v59 }
 0xcb5   :  { %7421 = vmatprep.mubr.msk.f32.mxu1 %vm8324_vm0, %v8323_v1  ;;  %7445 = vmatpush3.msra.mxu1 %v8253_v60 }
 0xcb6   :  { %7446 = vmatprep.subr.mxu1 %v8323_v1 }
 0xcb7   :  { %7447 = vmatpush3.msra.mxu1 %v8254_v38  ;;  %v8262_v38 = vld [vmem:[%s10712_s6 + $0x48] sm:$0xff] }
 0xcb8   :  { %7422 = vmatmul.mubr.msk.f32.gmra.mxu1 %vm514_vm6, %v2736_v13  ;;  %7448 = vmatprep.subr.mxu1 %v8323_v1  ;;  %v8260_v13 = vld [vmem:[%s10712_s6 + $0x58] sm:$0xff] }
 0xcb9   :  { %7424 = vmatprep.mubr.msk.f32.mxu1 %vm8324_vm0, %v8323_v1  ;;  %7449 = vmatpush3.msra.mxu1 %v8255_v63  ;;  %v8263_v63 = vld [vmem:[%s10712_s6 + $0x40] sm:$0xff] }
 0xcba   :  { %7450 = vmatprep.subr.mxu1 %v8323_v1 }
 0xcbb   :  { %7451 = vmatpush3.msra.mxu1 %v8256_v5  ;;  %v8265_v5 = vld [vmem:[%s10712_s6 + $0x30] sm:$0xff] }
 0xcbc   :  { %7425 = vmatmul.mubr.msk.f32.gmra.mxu1 %vm514_vm6, %v2738_v44  ;;  %7502 = vmatprep.subr.mxu1 %v8323_v1  ;;  %v8264_v44 = vld [vmem:[%s10712_s6 + $0x38] sm:$0xff] }
 0xcbd   :  { %7452 = vmatprep.mubr.msk.f32.mxu1 %vm8324_vm0, %v8323_v1 }
 0xcfe   :  { %v2116_v4 = vpop.f32.mrf.mxu1 }
 0xd00   :  { %v7330_v3 = vpop.f32.mrf.mxu1 }
 0xd01   :  { %v8267_v3 = vld [vmem:[%s10712_s6 + $0x20] sm:$0xff] }
 0xd02   :  { %v2121_v62 = vpop.f32.mrf.mxu1 }
 0xd04   :  { %v7333_v30 = vpop.f32.mrf.mxu1 }
 0xd33   :  { %v2126_v42 = vpop.f32.mrf.mxu1 }
 0xd35   :  { %v7336_v45 = vpop.f32.mrf.mxu1 }
 0xd37   :  { %v2352_v8 = vpop.f32.mrf.mxu1 }
 0xd38   :  { %2841 = vrot.lane.b32.xlu1 %v2352_v8, %s8336_s17 }
 0xd39   :  { %v7360_v9 = vpop.f32.mrf.mxu1 }
 0xd3b   :  { %v2357_v11 = vpop.f32.mrf.mxu1 }
 0xd3c   :  { %2843 = vrot.lane.b32.xlu0 %v2357_v11, %s8336_s17 }
 0xd3d   :  { %v7363_v16 = vpop.f32.mrf.mxu1 }
 0xd3f   :  { %v2362_v56 = vpop.f32.mrf.mxu1 }
 0xd41   :  { %v7366_v2 = vpop.f32.mrf.mxu1 }
 0xd42   :  { %v6458_v2 = vld [vmem:[%s10707_s1 + $0x18] ss:$0 sm:$0xff] }
 0xd43   :  { %v2588_v41 = vpop.f32.mrf.mxu1 }
 0xd44   :  { %2853 = vrot.lane.b32.xlu0 %v2588_v41, %s8337_s18 }
 0xd45   :  { %v7390_v53 = vpop.f32.mrf.mxu1 }
 0xd6c   :  { %v2593_v21 = vpop.f32.mrf.mxu1 }
 0xd6d   :  { %2855 = vrot.lane.b32.xlu1 %v2593_v21, %s8337_s18 }
 0xd6e   :  { %v7393_v26 = vpop.f32.mrf.mxu1 }
 0xd70   :  { %v2598_v10 = vpop.f32.mrf.mxu1 }
 0xd72   :  { %v7396_v0 = vpop.f32.mrf.mxu1 }
 0xd73   :  { %v1754_v0 = vadd.f32 %v9257_v57, %v8899_v28 }
 0xd74   :  { %v2824_v29 = vpop.f32.mrf.mxu1 }
 0xd75   :  { %2865 = vrot.lane.b32.xlu1 %v2824_v29, %s8338_s26 }
 0xd76   :  { %v7420_v19 = vpop.f32.mrf.mxu1 }
 0xd78   :  { %v2829_v6 = vpop.f32.mrf.mxu1 }
 0xd79   :  { %2845 = vrot.lane.b32.xlu1 %v2362_v56, %s8336_s17  ;;  %2867 = vrot.lane.b32.xlu0 %v2829_v6, %s8338_s26 }
 0xd7a   :  { %v7423_v7 = vpop.f32.mrf.mxu1 }
 0xd7c   :  { %v2834_v23 = vpop.f32.mrf.mxu1 }
 0xd7d   :  { %2857 = vrot.lane.b32.xlu0 %v2598_v10, %s8337_s18  ;;  %2869 = vrot.lane.b32.xlu1 %v2834_v23, %s8338_s26 }
 0xd7e   :  { %v7426_v24 = vpop.f32.mrf.mxu1 }
 0xdaa   :  { %v2842_v12 = vpop.permute.xlu1 %2841 }
 0xdab   :  { %v2874_v22 = vsel %vm421_vm4, %v2116_v4, %v2842_v12  ;;  %v8266_v4 = vld [vmem:[%s10712_s6 + $0x28] sm:$0xff] }
 0xdae   :  { %v2844_v37 = vpop.permute.xlu0 %2843 }
 0xdaf   :  { %v2875_v49 = vsel %vm421_vm4, %v2121_v62, %v2844_v37  ;;  %v8268_v62 = vld [vmem:[%s10712_s6 + $0x18] sm:$0xff] }
 0xdb6   :  { %v2854_v39 = vpop.permute.xlu0 %2853 }
 0xdb7   :  { %v2877_v35 = vsel %vm1396_vm8, %v2874_v22, %v2854_v39 }
 0xddf   :  { %v2856_v27 = vpop.permute.xlu1 %2855 }
 0xde0   :  { %v2878_v17 = vsel %vm1396_vm8, %v2875_v49, %v2856_v27 }
 0xde7   :  { %v2866_v46 = vpop.permute.xlu1 %2865 }
 0xde8   :  { %v2880_v18 = vsel %vm1400_vm9, %v2877_v35, %v2866_v46 }
 0xde9   :  { %7436 = vmatmul.mubr.msk.f32.vlgmr.msra.gmra.mxu0 %vm263_vm2, %v2880_v18 }
 0xdea   :  { %7438 = vmatprep.mubr.msk.f32.mxu0 %vm8324_vm0, %v8323_v1  ;;  %7462 = vmatpush3.msra.mxu0 %v9039_v55  ;;  %v8258_v55 = vld [vmem:[%s10712_s6 + $0x68] sm:$0xff] }
 0xdeb   :  { %v2846_v31 = vpop.permute.xlu1 %2845  ;;  %v2868_v47 = vpop.permute.xlu0 %2867  ;;  %7463 = vmatprep.subr.mxu0 %v8323_v1 }
 0xdec   :  { %v2881_v48 = vsel %vm1400_vm9, %v2878_v17, %v2868_v47  ;;  %7464 = vmatpush3.msra.mxu0 %v8257_v51  ;;  %v2876_v40 = vsel %vm421_vm4, %v2126_v42, %v2846_v31  ;;  %v8269_v42 = vld [vmem:[%s10707_s1 + $0x14] ss:$0 sm:$0xff] }
 0xded   :  { %7439 = vmatmul.mubr.msk.f32.gmra.mxu0 %vm263_vm2, %v2881_v48  ;;  %7465 = vmatprep.subr.mxu0 %v8323_v1 }
 0xdee   :  { %7441 = vmatprep.mubr.msk.f32.mxu0 %vm8324_vm0, %v8323_v1  ;;  %7466 = vmatpush3.msra.mxu0 %v8258_v55 }
 0xdef   :  { %v2870_v54 = vpop.permute.xlu1 %2869  ;;  %v2858_v25 = vpop.permute.xlu0 %2857  ;;  %7467 = vmatprep.subr.mxu0 %v8323_v1 }
 0xdf0   :  { %v2879_v59 = vsel %vm1396_vm8, %v2876_v40, %v2858_v25  ;;  %7468 = vmatpush3.msra.mxu0 %v8259_v58 }
 0xdf1   :  { %v2882_v60 = vsel %vm1400_vm9, %v2879_v59, %v2870_v54  ;;  %7469 = vmatprep.subr.mxu0 %v8323_v1 }
 0xdf2   :  { %7442 = vmatmul.mubr.msk.f32.gmra.mxu0 %vm263_vm2, %v2882_v60 }
 0xdf3   :  { %7470 = vmatpush3.msra.mxu0 %v8260_v13  ;;  %7493 = vmatprep.mubr.msk.f32.mxu0 %vm8324_vm0, %v8323_v1 }
 0xdf4   :  { %7471 = vmatprep.subr.mxu0 %v8323_v1 }
 0xdf5   :  { %7472 = vmatpush3.msra.mxu0 %v8261_v61 }
 0xdf6   :  { %7473 = vmatprep.subr.mxu0 %v8323_v1 }
 0xdf7   :  { %7474 = vmatpush3.msra.mxu0 %v8262_v38 }
 0xdf8   :  { %7475 = vmatprep.subr.mxu0 %v8323_v1 }
 0xdf9   :  { %7476 = vmatpush3.msra.mxu0 %v8263_v63 }
 0xdfa   :  { %7477 = vmatprep.subr.mxu0 %v8323_v1 }
 0xdfb   :  { %7478 = vmatpush3.msra.mxu0 %v8264_v44 }
 0xdfc   :  { %7479 = vmatprep.subr.mxu0 %v8323_v1 }
 0xdfd   :  { %7480 = vmatpush3.msra.mxu0 %v8265_v5 }
 0xdfe   :  { %7481 = vmatprep.subr.mxu0 %v8323_v1 }
 0xdff   :  { %7482 = vmatpush3.msra.mxu0 %v8266_v4 }
 0xe00   :  { %7483 = vmatprep.subr.mxu0 %v8323_v1 }
 0xe01   :  { %7484 = vmatpush3.msra.mxu0 %v8267_v3 }
 0xe02   :  { %7485 = vmatprep.subr.mxu0 %v8323_v1 }
 0xe03   :  { %7486 = vmatpush3.msra.mxu0 %v8268_v62 }
 0xe04   :  { %7487 = vmatprep.subr.mxu0 %v8323_v1 }
 0xe05   :  { %7488 = vmatpush3.msra.mxu0 %v9094_v14 }
 0xe06   :  { %7489 = vmatprep.subr.mxu0 %v8323_v1 }
 0xe07   :  { %7490 = vmatpush3.msra.mxu0 %v9101_v32  ;;  %v1755_v32 = vadd.f32 %v9259_v52, %v8910_v34  ;;  %v1753_v34 = vadd.f32 %v9255_v43, %v8894_v15  ;;  %v9560_v15 = vadd.f32 %v6458_v2, %v1754_v0  ;;  %v8271_v0 = vld [vmem:[%s10707_s1 + $0x16] ss:$0 sm:$0xff] }
 0xe08   :  { %7491 = vmatprep.subr.mxu0 %v8323_v1 }
 0xe09   :  { %7492 = vmatpush3.msra.mxu0 %v9106_v33  ;;  %v9543_v41 = vadd.f32 %v6458_v2, %v1755_v32  ;;  %v9554_v10 = vadd.f32 %v6458_v2, %v1753_v34 }
 0xe0a   :  { %7534 = vmatprep.subr.mxu0 %v8323_v1 }
 0xe0b   :  { %v3262_v43 = vsel %vm263_vm2, %v9554_v10, 0.0 }
 0xea9   :  { %v2958_v30 = vpop.f32.mrf.mxu0 }
 0xeaa   :  { %v2959_v45 = vadd.f32 %v8269_v42, %v2958_v30 }
 0xeab   :  { %v7437_v8 = vpop.f32.mrf.mxu0 }
 0xeac   :  { %v9531_v9 = vadd.f32 %v2959_v45, %v8918_v50 }
 0xead   :  { %v2963_v14 = vpop.f32.mrf.mxu0 }
 0xeae   :  { %v2964_v11 = vadd.f32 %v8269_v42, %v2963_v14  ;;  %v2975_v33 = vsel %vm263_vm2, %v9531_v9, 0.0 }
 0xeaf   :  { %2976 = vadd.xlane.f32.xlu0 %v2975_v33  ;;  %v7440_v16 = vpop.f32.mrf.mxu0 }
 0xeb0   :  { %v9538_v56 = vadd.f32 %v2964_v11, %v8926_v36  ;;  %v3268_v36 = vsel %vm270_vm3, %v9543_v41, 0.0 }
 0xeb2   :  { %v2968_v50 = vpop.f32.mrf.mxu0  ;;  %v2978_v53 = vsel %vm263_vm2, %v9538_v56, 0.0 }
 0xeb3   :  { %v2969_v52 = vadd.f32 %v8269_v42, %v2968_v50  ;;  %2979 = vadd.xlane.f32.xlu1 %v2978_v53 }
 0xeb4   :  { %v7443_v21 = vpop.f32.mrf.mxu0 }
 0xeb5   :  { %v9550_v26 = vadd.f32 %v2969_v52, %v8905_v20  ;;  %v3265_v20 = vsel %vm263_vm2, %v9560_v15, 0.0  ;;  %v8270_v52 = vld [vmem:[%s10707_s1 + $0x15] ss:$0 sm:$0xff] }
 0xeb7   :  { %3269 = vadd.xlane.f32.xlu1 %v3268_v36  ;;  %v2981_v29 = vsel %vm270_vm3, %v9550_v26, 0.0 }
 0xeb8   :  { %2982 = vadd.xlane.f32.xlu0 %v2981_v29 }
 0xebc   :  { %3263 = vadd.xlane.f32.xlu0 %v3262_v43  ;;  %v6511_v43 = vld [vmem:[%s10709_s3 + $0x38] sm:$0xff] }
 0xec0   :  { %3266 = vadd.xlane.f32.xlu0 %v3265_v20 }
 0xf38   :  { %v2977_v19 = vpop.xlane.xlu0 %2976 }
 0xf39   :  { %v2984_v6 = vmul.f32 0.03125, %v2977_v19 }
 0xf3b   :  { %v2987_v7 = vsub.f32 %v9531_v9, %v2984_v6  ;;  %v6510_v6 = vld [vmem:[%s10709_s3 + $0x30] sm:$0xff] }
 0xf3c   :  { %v2980_v28 = vpop.xlane.xlu1 %2979 }
 0xf3d   :  { %v2985_v57 = vmul.f32 0.03125, %v2980_v28  ;;  %v2990_v23 = vmul.f32 %v2987_v7, %v2987_v7 }
 0xf3f   :  { %v2988_v24 = vsub.f32 %v9538_v56, %v2985_v57  ;;  %v2993_v12 = vsel %vm263_vm2, %v2990_v23, 0.0  ;;  %v6509_v57 = vld [vmem:[%s10709_s3 + $0x28] sm:$0xff] }
 0xf40   :  { %2994 = vadd.xlane.f32.xlu0 %v2993_v12  ;;  %v3270_v37 = vpop.xlane.xlu1 %3269 }
 0xf41   :  { %v2983_v27 = vpop.xlane.xlu0 %2982  ;;  %v2991_v39 = vmul.f32 %v2988_v24, %v2988_v24  ;;  %v3273_v46 = vmul.f32 0.03125, %v3270_v37 }
 0xf42   :  { %v2986_v22 = vmul.f32 0.03125, %v2983_v27  ;;  %v6536_v27 = vld [vmem:[%s10707_s1 + $0x19] ss:$0 sm:$0xff] }
 0xf43   :  { %v2996_v35 = vsel %vm263_vm2, %v2991_v39, 0.0  ;;  %v9576_v47 = vsub.f32 %v9543_v41, %v3273_v46 }
 0xf44   :  { %v9571_v18 = vsub.f32 %v9550_v26, %v2986_v22  ;;  %2997 = vadd.xlane.f32.xlu1 %v2996_v35  ;;  %v6537_v35 = vld [vmem:[%s10707_s1 + $0x1a] ss:$0 sm:$0xff] }
 0xf45   :  { %v3264_v49 = vpop.xlane.xlu0 %3263  ;;  %v3279_v58 = vmul.f32 %v9576_v47, %v9576_v47 }
 0xf46   :  { %v3271_v17 = vmul.f32 0.03125, %v3264_v49  ;;  %v2992_v31 = vmul.f32 %v9571_v18, %v9571_v18 }
 0xf47   :  { %v3286_v13 = vsel %vm270_vm3, %v3279_v58, 0.0 }
 0xf48   :  { %v9579_v48 = vsub.f32 %v9554_v10, %v3271_v17  ;;  %v2999_v51 = vsel %vm270_vm3, %v2992_v31, 0.0 }
 0xf49   :  { %3000 = vadd.xlane.f32.xlu0 %v2999_v51  ;;  %v3267_v55 = vpop.xlane.xlu0 %3266 }
 0xf4a   :  { %v3272_v40 = vmul.f32 0.03125, %v3267_v55  ;;  %v3277_v54 = vmul.f32 %v9579_v48, %v9579_v48 }
 0xf4c   :  { %v9585_v25 = vsub.f32 %v9560_v15, %v3272_v40  ;;  %v3280_v59 = vsel %vm263_vm2, %v3277_v54, 0.0 }
 0xf4d   :  { %3281 = vadd.xlane.f32.xlu1 %v3280_v59 }
 0xf4e   :  { %v3278_v60 = vmul.f32 %v9585_v25, %v9585_v25 }
 0xf50   :  { %v3283_v61 = vsel %vm263_vm2, %v3278_v60, 0.0 }
 0xf51   :  { %3287 = vadd.xlane.f32.xlu1 %v3286_v13  ;;  %3284 = vadd.xlane.f32.xlu0 %v3283_v61 }
 0xfc9   :  { %v2995_v38 = vpop.xlane.xlu0 %2994 }
 0xfca   :  { %v3002_v63 = vmul.f32 0.03125, %v2995_v38 }
 0xfcc   :  { %v3005_v44 = vadd.f32 1e-05, %v3002_v63 }
 0xfcd   :  { %v2998_v5 = vpop.xlane.xlu1 %2997 }
 0xfce   :  { %8091 = vrsqrt.f32 %v3005_v44  ;;  %v3003_v4 = vmul.f32 0.03125, %v2998_v5 }
 0xfd0   :  { %v3006_v3 = vadd.f32 1e-05, %v3003_v4 }
 0xfd2   :  { %8093 = vrsqrt.f32 %v3006_v3  ;;  %v3001_v62 = vpop.xlane.xlu0 %3000 }
 0xfd3   :  { %v3004_v30 = vmul.f32 0.03125, %v3001_v62 }
 0xfd5   :  { %v3007_v42 = vadd.f32 1e-05, %v3004_v30 }
 0xfd6   :  { %v3282_v45 = vpop.xlane.xlu1 %3281 }
 0xfd7   :  { %8095 = vrsqrt.f32 %v3007_v42  ;;  %v3289_v8 = vmul.f32 0.03125, %v3282_v45 }
 0xfd9   :  { %v3292_v14 = vadd.f32 1e-05, %v3289_v8 }
 0xfda   :  { %v3288_v32 = vpop.xlane.xlu1 %3287  ;;  %v3285_v11 = vpop.xlane.xlu0 %3284 }
 0xfdb   :  { %v8092_v33 = vpop.eup %8091  ;;  %8097 = vrsqrt.f32 %v3292_v14  ;;  %v3291_v16 = vmul.f32 0.03125, %v3288_v32  ;;  %v3290_v2 = vmul.f32 0.03125, %v3285_v11 }
 0xfdc   :  { %v3011_v50 = vmul.f32 %v8092_v33, %v2987_v7 }
 0xfdd   :  { %v3294_v53 = vadd.f32 1e-05, %v3291_v16  ;;  %v3293_v34 = vadd.f32 1e-05, %v3290_v2 }
 0xfde   :  { %v3014_v21 = vmul.f32 %v8270_v52, %v3011_v50 }
 0xfdf   :  { %v8094_v36 = vpop.eup %8093  ;;  %8099 = vrsqrt.f32 %v3294_v53 }
 0xfe0   :  { %8101 = vrsqrt.f32 %v3293_v34  ;;  %v3017_v29 = vadd.f32 %v8271_v0, %v3014_v21  ;;  %v3012_v20 = vmul.f32 %v8094_v36, %v2988_v24  ;;  %v6508_v24 = vld [vmem:[%s10709_s3 + $0x20] sm:$0xff]  ;;  %v6538_v34 = vld [vmem:[%s10707_s1 + $0x1b] ss:$0 sm:$0xff] }
 0xfe2   :  { %7453 = vmatmul.mubr.msk.f32.vlgmr.msra.gmra.mxu1 %vm263_vm2, %v3017_v29  ;;  %v3015_v19 = vmul.f32 %v8270_v52, %v3012_v20 }
 0xfe3   :  { %7503 = vmatpush3.msra.mxu1 %v6511_v43  ;;  %7455 = vmatprep.mubr.msk.f32.mxu1 %vm8324_vm0, %v8323_v1 }
 0xfe4   :  { %v8096_v7 = vpop.eup %8095  ;;  %v3018_v28 = vadd.f32 %v8271_v0, %v3015_v19  ;;  %7504 = vmatprep.subr.mxu1 %v8323_v1 }
 0xfe5   :  { %7505 = vmatpush3.msra.mxu1 %v6510_v6  ;;  %v3013_v23 = vmul.f32 %v8096_v7, %v9571_v18 }
 0xfe6   :  { %7456 = vmatmul.mubr.msk.f32.gmra.mxu1 %vm263_vm2, %v3018_v28  ;;  %7506 = vmatprep.subr.mxu1 %v8323_v1 }
 0xfe7   :  { %7458 = vmatprep.mubr.msk.f32.mxu1 %vm8324_vm0, %v8323_v1  ;;  %7507 = vmatpush3.msra.mxu1 %v6509_v57  ;;  %v3016_v12 = vmul.f32 %v8270_v52, %v3013_v23 }
 0xfe8   :  { %v8098_v37 = vpop.eup %8097  ;;  %7508 = vmatprep.subr.mxu1 %v8323_v1 }
 0xfe9   :  { %v3298_v39 = vmul.f32 %v8098_v37, %v9579_v48  ;;  %v3019_v22 = vadd.f32 %v8271_v0, %v3016_v12  ;;  %7509 = vmatpush3.msra.mxu1 %v6508_v24 }
 0xfea   :  { %7519 = vmatprep.subr.mxu1 %v8323_v1 }
 0xfeb   :  { %v3305_v46 = vmul.f32 %v6536_v27, %v3298_v39  ;;  %7459 = vmatmul.mubr.msk.f32.gmra.mxu1 %vm263_vm2, %v3019_v22 }
 0xfec   :  { %v8100_v18 = vpop.eup %8099  ;;  %7510 = vmatprep.mubr.msk.f32.mxu1 %vm8324_vm0, %v8323_v1 }
 0xfed   :  { %v8102_v49 = vpop.eup %8101  ;;  %v3312_v17 = vadd.f32 %v6537_v35, %v3305_v46  ;;  %v3300_v48 = vmul.f32 %v8100_v18, %v9576_v47 }
 0xfee   :  { %v3299_v31 = vmul.f32 %v8102_v49, %v9585_v25  ;;  %v8272_v25 = vld [vmem:[%s10707_s1 + $0x17] ss:$0 sm:$0xff] }
 0xfef   :  { %7511 = vmatmul.mubr.msk.f32.vlgmr.msra.gmra.mxu1 %vm263_vm2, %v3312_v17  ;;  %v3307_v40 = vmul.f32 %v6536_v27, %v3300_v48 }
 0xff0   :  { %7513 = vmatprep.mubr.msk.f32.mxu1 %vm8324_vm0, %v8323_v1  ;;  %v3306_v51 = vmul.f32 %v6536_v27, %v3299_v31 }
 0xff1   :  { %v3314_v54 = vadd.f32 %v6537_v35, %v3307_v40 }
 0xff2   :  { %v3313_v55 = vadd.f32 %v6537_v35, %v3306_v51 }
 0xff4   :  { %7514 = vmatmul.mubr.msk.f32.gmra.mxu1 %vm263_vm2, %v3313_v55 }
 0xff5   :  { %7516 = vmatprep.mubr.msk.f32.mxu1 %vm8324_vm0, %v8323_v1 }
 0xff8   :  { %7517 = vmatmul.mubr.msk.f32.gmra.mxu1 %vm263_vm2, %v3314_v54 }
 0xff9   :  { %7525 = vmatprep.mubr.msk.f32.mxu1 %vm8324_vm0, %v8323_v1 }
0x10a2   :  { %v3095_v47 = vpop.f32.mrf.mxu1 }
0x10a3   :  { %v3096_v59 = vadd.f32 %v8272_v25, %v3095_v47 }
0x10a4   :  { %v7454_v58 = vpop.f32.mrf.mxu1 }
0x10a5   :  { %v3109_v60 = vmul.f32 %v3096_v59, %v3096_v59 }
0x10a6   :  { %v3100_v13 = vpop.f32.mrf.mxu1 }
0x10a7   :  { %v3112_v61 = vmul.f32 %v3109_v60, %v3096_v59  ;;  %v3101_v38 = vadd.f32 %v8272_v25, %v3100_v13 }
0x10a8   :  { %v7457_v63 = vpop.f32.mrf.mxu1 }
0x10a9   :  { %v3115_v44 = vmul.f32 0.044715, %v3112_v61  ;;  %v3110_v5 = vmul.f32 %v3101_v38, %v3101_v38 }
0x10ab   :  { %v3118_v4 = vadd.f32 %v3115_v44, %v3096_v59  ;;  %v3113_v3 = vmul.f32 %v3110_v5, %v3101_v38  ;;  %v3105_v62 = vpop.f32.mrf.mxu1 }
0x10ac   :  { %v3106_v30 = vadd.f32 %v8272_v25, %v3105_v62 }
0x10ad   :  { %v3121_v42 = vmul.f32 0.7978846, %v3118_v4  ;;  %v3116_v45 = vmul.f32 0.044715, %v3113_v3  ;;  %v7460_v8 = vpop.f32.mrf.mxu1 }
0x10ae   :  { %v3111_v14 = vmul.f32 %v3106_v30, %v3106_v30 }
0x10af   :  { %8103 = vtanh.f32 %v3121_v42  ;;  %v3119_v32 = vadd.f32 %v3116_v45, %v3101_v38  ;;  %v3394_v11 = vpop.f32.mrf.mxu1 }
0x10b0   :  { %v3114_v33 = vmul.f32 %v3111_v14, %v3106_v30  ;;  %v9654_v43 = vadd.f32 %v6538_v34, %v3394_v11 }
0x10b1   :  { %v3122_v16 = vmul.f32 0.7978846, %v3119_v32  ;;  %v7512_v2 = vpop.f32.mrf.mxu1 }
0x10b2   :  { %v3117_v50 = vmul.f32 0.044715, %v3114_v33 }
0x10b3   :  { %8105 = vtanh.f32 %v3122_v16 }
0x10b4   :  { %v3120_v53 = vadd.f32 %v3117_v50, %v3106_v30  ;;  %v3399_v52 = vpop.f32.mrf.mxu1 }
0x10b5   :  { %v9650_v21 = vadd.f32 %v6538_v34, %v3399_v52 }
0x10b6   :  { %v3123_v36 = vmul.f32 0.7978846, %v3120_v53  ;;  %v7515_v0 = vpop.f32.mrf.mxu1 }
0x10b7   :  { %3413 = vrot.lane.b32.xlu1 %v9650_v21, %s8325_s29 }
0x10b8   :  { %8107 = vtanh.f32 %v3123_v36  ;;  %v3404_v29 = vpop.f32.mrf.mxu1 }
0x10b9   :  { %v9656_v20 = vadd.f32 %v6538_v34, %v3404_v29 }
0x10ba   :  { %v7518_v19 = vpop.f32.mrf.mxu1 }
0x10bb   :  { %3411 = vrot.lane.b32.xlu1 %v9654_v43, %s8325_s29  ;;  %3415 = vrot.lane.b32.xlu0 %v9656_v20, %s8325_s29 }
0x10bc   :  { %v8104_v6 = vpop.eup %8103 }
0x10bd   :  { %v3127_v7 = vadd.f32 1.0, %v8104_v6 }
0x10bf   :  { %v3130_v28 = vmul.f32 0.5, %v3127_v7  ;;  %3651 = vrot.lane.b32.xlu1 %v9656_v20, %s8326_s0  ;;  %3649 = vrot.lane.b32.xlu0 %v9650_v21, %s8326_s0 }
0x10c0   :  { %v8106_v57 = vpop.eup %8105 }
0x10c1   :  { %v3133_v23 = vmul.f32 %v3130_v28, %v3096_v59  ;;  %v3128_v24 = vadd.f32 1.0, %v8106_v57 }
0x10c3   :  { %3647 = vrot.lane.b32.xlu1 %v9654_v43, %s8326_s0  ;;  %3641 = vrot.lane.b32.xlu0 %v9654_v43, %s8327_s30  ;;  %v3131_v12 = vmul.f32 0.5, %v3128_v24 }
0x10c4   :  { %7494 = vmatmul.mubr.f32.vlgmr.msra.gmra.mxu0 %v3133_v23 }
0x10c5   :  { %v8108_v37 = vpop.eup %8107  ;;  %7496 = vmatprep.mubr.msk.f32.mxu0 %vm8324_vm0, %v8323_v1  ;;  %v3134_v27 = vmul.f32 %v3131_v12, %v3101_v38 }
0x10c6   :  { %v3129_v39 = vadd.f32 1.0, %v8108_v37 }
0x10c7   :  { %3887 = vrot.lane.b32.xlu1 %v9656_v20, %s8328_s9  ;;  %3643 = vrot.lane.b32.xlu0 %v9650_v21, %s8327_s30 }
0x10c8   :  { %7497 = vmatmul.mubr.f32.gmra.mxu0 %v3134_v27  ;;  %v3132_v22 = vmul.f32 0.5, %v3129_v39 }
0x10c9   :  { %7499 = vmatprep.mubr.msk.f32.mxu0 %vm8324_vm0, %v8323_v1 }
0x10ca   :  { %v3135_v35 = vmul.f32 %v3132_v22, %v3106_v30 }
0x10cb   :  { %3885 = vrot.lane.b32.xlu1 %v9650_v21, %s8328_s9  ;;  %3645 = vrot.lane.b32.xlu0 %v9656_v20, %s8327_s30 }
0x10cc   :  { %7500 = vmatmul.mubr.f32.gmra.mxu0 %v3135_v35 }
0x10cd   :  { %7540 = vmatprep.mubr.msk.f32.mxu0 %vm8324_vm0, %v8323_v1 }
0x10cf   :  { %3883 = vrot.lane.b32.xlu1 %v9654_v43, %s8328_s9  ;;  %3877 = vrot.lane.b32.xlu0 %v9654_v43, %s8329_s10 }
0x10d3   :  { %4123 = vrot.lane.b32.xlu1 %v9656_v20, %s8330_s11  ;;  %3879 = vrot.lane.b32.xlu0 %v9650_v21, %s8329_s10 }
0x10d7   :  { %4121 = vrot.lane.b32.xlu1 %v9650_v21, %s8330_s11  ;;  %3881 = vrot.lane.b32.xlu0 %v9656_v20, %s8329_s10 }
0x10db   :  { %4119 = vrot.lane.b32.xlu1 %v9654_v43, %s8330_s11  ;;  %4113 = vrot.lane.b32.xlu0 %v9654_v43, %s8331_s12 }
0x10df   :  { %4115 = vrot.lane.b32.xlu1 %v9650_v21, %s8331_s12  ;;  %4117 = vrot.lane.b32.xlu0 %v9656_v20, %s8331_s12 }
0x10e3   :  { %3542 = vrot.lane.b32.xlu1 %v9654_v43, %s8332_s13  ;;  %3544 = vrot.lane.b32.xlu0 %v9650_v21, %s8332_s13 }
0x10e7   :  { %3546 = vrot.lane.b32.xlu1 %v9656_v20, %s8332_s13 }
0x10eb   :  { %3782 = vrot.lane.b32.xlu1 %v9656_v20, %s8333_s14 }
0x1129   :  { %v3414_v46 = vpop.permute.xlu1 %3413 }
0x112d   :  { %v3412_v18 = vpop.permute.xlu1 %3411  ;;  %v3416_v49 = vpop.permute.xlu0 %3415 }
0x112e   :  { %7520 = vmatpush3.xpose.msk.msra.mxu1 %vm421_vm4, %v3416_v49 }
0x112f   :  { %7521 = vmatprep.subr.mxu1 %v8323_v1 }
0x1131   :  { %v3652_v17 = vpop.permute.xlu1 %3651  ;;  %v3650_v31 = vpop.permute.xlu0 %3649 }
0x1132   :  { %7522 = vmatpush3.xpose.msk.msra.mxu1 %vm421_vm4, %v3414_v46 }
0x1133   :  { %7523 = vmatprep.subr.mxu1 %v8323_v1 }
0x1135   :  { %v3648_v48 = vpop.permute.xlu1 %3647  ;;  %v3642_v51 = vpop.permute.xlu0 %3641 }
0x1136   :  { %7524 = vmatpush3.xpose.msk.msra.mxu1 %vm421_vm4, %v3412_v18 }
0x1137   :  { %7549 = vmatprep.subr.mxu1 %v8323_v1 }
0x1139   :  { %v3888_v55 = vpop.permute.xlu1 %3887  ;;  %7526 = vmatmul.mubr.msk.f32.vlgmr.msra.gmra.mxu1 %vm421_vm4, %v9654_v43  ;;  %v3644_v40 = vpop.permute.xlu0 %3643 }
0x113a   :  { %7550 = vmatpush3.xpose.msk.msra.mxu1 %vm421_vm4, %v3652_v17  ;;  %7528 = vmatprep.mubr.msk.f32.mxu1 %vm8324_vm0, %v8323_v1 }
0x113b   :  { %7551 = vmatprep.subr.mxu1 %v8323_v1 }
0x113d   :  { %v3886_v54 = vpop.permute.xlu1 %3885  ;;  %7529 = vmatmul.mubr.msk.f32.gmra.mxu1 %vm421_vm4, %v9650_v21  ;;  %v3646_v47 = vpop.permute.xlu0 %3645 }
0x113e   :  { %7552 = vmatpush3.xpose.msk.msra.mxu1 %vm421_vm4, %v3650_v31  ;;  %7531 = vmatprep.mubr.msk.f32.mxu1 %vm8324_vm0, %v8323_v1 }
0x113f   :  { %7553 = vmatprep.subr.mxu1 %v8323_v1 }
0x1141   :  { %v3884_v25 = vpop.permute.xlu1 %3883  ;;  %7532 = vmatmul.mubr.msk.f32.gmra.mxu1 %vm421_vm4, %v9656_v20  ;;  %v3878_v59 = vpop.permute.xlu0 %3877 }
0x1142   :  { %7554 = vmatpush3.xpose.msk.msra.mxu1 %vm421_vm4, %v3648_v48  ;;  %7555 = vmatprep.mubr.msk.f32.mxu1 %vm8324_vm0, %v8323_v1 }
0x1143   :  { %7579 = vmatprep.subr.mxu1 %v8323_v1 }
0x1145   :  { %v4124_v58 = vpop.permute.xlu1 %4123  ;;  %7556 = vmatmul.mubr.msk.f32.vlgmr.msra.gmra.mxu1 %vm421_vm4, %v3642_v51  ;;  %v3880_v60 = vpop.permute.xlu0 %3879 }
0x1146   :  { %7580 = vmatpush3.xpose.msk.msra.mxu1 %vm421_vm4, %v3888_v55  ;;  %7558 = vmatprep.mubr.msk.f32.mxu1 %vm8324_vm0, %v8323_v1 }
0x1147   :  { %7581 = vmatprep.subr.mxu1 %v8323_v1 }
0x1149   :  { %v4122_v13 = vpop.permute.xlu1 %4121  ;;  %7559 = vmatmul.mubr.msk.f32.gmra.mxu1 %vm421_vm4, %v3644_v40  ;;  %v3882_v61 = vpop.permute.xlu0 %3881 }
0x114a   :  { %7582 = vmatpush3.xpose.msk.msra.mxu1 %vm421_vm4, %v3886_v54  ;;  %7561 = vmatprep.mubr.msk.f32.mxu1 %vm8324_vm0, %v8323_v1 }
0x114b   :  { %7583 = vmatprep.subr.mxu1 %v8323_v1 }
0x114d   :  { %v4120_v38 = vpop.permute.xlu1 %4119  ;;  %7562 = vmatmul.mubr.msk.f32.gmra.mxu1 %vm421_vm4, %v3646_v47  ;;  %v4114_v63 = vpop.permute.xlu0 %4113 }
0x114e   :  { %7584 = vmatpush3.xpose.msk.msra.mxu1 %vm421_vm4, %v3884_v25  ;;  %7585 = vmatprep.mubr.msk.f32.mxu1 %vm8324_vm0, %v8323_v1 }
0x114f   :  { %7609 = vmatprep.subr.mxu1 %v8323_v1 }
0x1151   :  { %v4116_v44 = vpop.permute.xlu1 %4115  ;;  %7586 = vmatmul.mubr.msk.f32.vlgmr.msra.gmra.mxu1 %vm421_vm4, %v3878_v59  ;;  %v4118_v5 = vpop.permute.xlu0 %4117 }
0x1152   :  { %7610 = vmatpush3.xpose.msk.msra.mxu1 %vm421_vm4, %v4124_v58  ;;  %7588 = vmatprep.mubr.msk.f32.mxu1 %vm8324_vm0, %v8323_v1 }
0x1153   :  { %7611 = vmatprep.subr.mxu1 %v8323_v1 }
0x1155   :  { %v3543_v4 = vpop.permute.xlu1 %3542  ;;  %7589 = vmatmul.mubr.msk.f32.gmra.mxu1 %vm421_vm4, %v3880_v60  ;;  %v3545_v62 = vpop.permute.xlu0 %3544 }
0x1156   :  { %7612 = vmatpush3.xpose.msk.msra.mxu1 %vm421_vm4, %v4122_v13  ;;  %7591 = vmatprep.mubr.msk.f32.mxu1 %vm8324_vm0, %v8323_v1 }
0x1157   :  { %7613 = vmatprep.subr.mxu1 %v8323_v1 }
0x1159   :  { %v3547_v3 = vpop.permute.xlu1 %3546  ;;  %7592 = vmatmul.mubr.msk.f32.gmra.mxu1 %vm421_vm4, %v3882_v61 }
0x115a   :  { %7535 = vmatpush3.msk.msra.mxu0 %vm566_vm5, %v3547_v3  ;;  %7614 = vmatpush3.xpose.msk.msra.mxu1 %vm421_vm4, %v4120_v38 }
0x115b   :  { %7536 = vmatprep.subr.mxu0 %v8323_v1  ;;  %7615 = vmatprep.mubr.msk.f32.mxu1 %vm8324_vm0, %v8323_v1 }
0x115c   :  { %7537 = vmatpush3.msra.mxu0 %v3545_v62  ;;  %7639 = vmatprep.subr.mxu1 %v8323_v1 }
0x115d   :  { %7538 = vmatprep.subr.mxu0 %v8323_v1  ;;  %7616 = vmatmul.mubr.msk.f32.vlgmr.msra.gmra.mxu1 %vm421_vm4, %v4114_v63  ;;  %v9824_v59 = vpop.permute.xlu1 %3782 }
0x115e   :  { %7539 = vmatpush3.msra.mxu0 %v3543_v4  ;;  %7618 = vmatprep.mubr.msk.f32.mxu1 %vm8324_vm0, %v8323_v1 }
0x115f   :  { %7564 = vmatprep.subr.mxu0 %v8323_v1 }
0x1161   :  { %7619 = vmatmul.mubr.msk.f32.gmra.mxu1 %vm421_vm4, %v4116_v44 }
0x1162   :  { %7621 = vmatprep.mubr.msk.f32.mxu1 %vm8324_vm0, %v8323_v1 }
0x1165   :  { %7622 = vmatmul.mubr.msk.f32.gmra.mxu1 %vm421_vm4, %v4118_v5 }
0x1166   :  { %7647 = vmatprep.mubr.msk.f32.mxu1 %vm8324_vm0, %v8323_v1 }
0x1184   :  { %v9779_v30 = vpop.f32.mrf.mxu0 }
0x1186   :  { %v7495_v42 = vpop.f32.mrf.mxu0 }
0x1188   :  { %v9781_v45 = vpop.f32.mrf.mxu0 }
0x118a   :  { %v7498_v8 = vpop.f32.mrf.mxu0 }
0x118c   :  { %v9783_v14 = vpop.f32.mrf.mxu0 }
0x118e   :  { %v7501_v32 = vpop.f32.mrf.mxu0 }
0x11f9   :  { %v3495_v11 = vpop.f32.mrf.mxu1 }
0x11fa   :  { %v3509_v33 = vsel %vm514_vm6, %v3495_v11, -inf }
0x11fb   :  { %3510 = vmax.xlane.f32.xlu1 %v3509_v33  ;;  %v7527_v16 = vpop.f32.mrf.mxu1 }
0x11fd   :  { %v3500_v2 = vpop.f32.mrf.mxu1 }
0x11fe   :  { %v3512_v50 = vsel %vm514_vm6, %v3500_v2, -inf }
0x11ff   :  { %3513 = vmax.xlane.f32.xlu0 %v3512_v50  ;;  %v7530_v53 = vpop.f32.mrf.mxu1 }
0x1201   :  { %v9787_v34 = vpop.f32.mrf.mxu1 }
0x1202   :  { %v3515_v52 = vsel %vm521_vm7, %v9787_v34, -inf }
0x1203   :  { %3516 = vmax.xlane.f32.xlu0 %v3515_v52  ;;  %v7533_v36 = vpop.f32.mrf.mxu1 }
0x1205   :  { %v9791_v0 = vpop.f32.mrf.mxu1 }
0x1206   :  { %v3745_v29 = vsel %vm514_vm6, %v9791_v0, -inf }
0x1207   :  { %3746 = vmax.xlane.f32.xlu0 %v3745_v29  ;;  %v7557_v19 = vpop.f32.mrf.mxu1 }
0x1209   :  { %v3736_v6 = vpop.f32.mrf.mxu1 }
0x120a   :  { %v3748_v7 = vsel %vm514_vm6, %v3736_v6, -inf }
0x120b   :  { %3749 = vmax.xlane.f32.xlu1 %v3748_v7  ;;  %v7560_v28 = vpop.f32.mrf.mxu1 }
0x120d   :  { %v9796_v57 = vpop.f32.mrf.mxu1 }
0x120e   :  { %v3751_v23 = vsel %vm521_vm7, %v9796_v57, -inf }
0x120f   :  { %3752 = vmax.xlane.f32.xlu0 %v3751_v23  ;;  %v7563_v24 = vpop.f32.mrf.mxu1 }
0x1211   :  { %v9800_v12 = vpop.f32.mrf.mxu1 }
0x1212   :  { %v3981_v37 = vsel %vm514_vm6, %v9800_v12, -inf }
0x1213   :  { %3982 = vmax.xlane.f32.xlu1 %v3981_v37  ;;  %v7587_v27 = vpop.f32.mrf.mxu1 }
0x1215   :  { %v9804_v39 = vpop.f32.mrf.mxu1 }
0x1216   :  { %v3984_v22 = vsel %vm514_vm6, %v9804_v39, -inf }
0x1217   :  { %3985 = vmax.xlane.f32.xlu0 %v3984_v22  ;;  %v7590_v35 = vpop.f32.mrf.mxu1 }
0x1219   :  { %v3977_v46 = vpop.f32.mrf.mxu1 }
0x121a   :  { %v3987_v18 = vsel %vm521_vm7, %v3977_v46, -inf }
0x121b   :  { %3988 = vmax.xlane.f32.xlu1 %v3987_v18  ;;  %v7593_v49 = vpop.f32.mrf.mxu1 }
0x121d   :  { %v4203_v17 = vpop.f32.mrf.mxu1 }
0x121e   :  { %v4217_v31 = vsel %vm514_vm6, %v4203_v17, -inf }
0x121f   :  { %4218 = vmax.xlane.f32.xlu0 %v4217_v31  ;;  %v7617_v48 = vpop.f32.mrf.mxu1 }
0x1221   :  { %v9810_v51 = vpop.f32.mrf.mxu1 }
0x1222   :  { %v4220_v47 = vsel %vm514_vm6, %v9810_v51, -inf }
0x1223   :  { %v7620_v55 = vpop.f32.mrf.mxu1 }
0x1225   :  { %v9812_v40 = vpop.f32.mrf.mxu1 }
0x1226   :  { %v4223_v25 = vsel %vm521_vm7, %v9812_v40, -inf }
0x1227   :  { %v7623_v54 = vpop.f32.mrf.mxu1 }
0x122c   :  { %3778 = vrot.lane.b32.xlu1 %v9654_v43, %s8333_s14 }
0x1230   :  { %4018 = vrot.lane.b32.xlu1 %v9656_v20, %s8334_s15 }
0x1235   :  { %3780 = vrot.lane.b32.xlu0 %v9650_v21, %s8333_s14 }
0x1254   :  { %4221 = vmax.xlane.f32.xlu1 %v4220_v47  ;;  %4224 = vmax.xlane.f32.xlu0 %v4223_v25 }
0x1284   :  { %v3511_v58 = vpop.xlane.xlu1 %3510 }
0x1285   :  { %v3518_v60 = vsub.f32 %v3495_v11, %v3511_v58 }
0x1287   :  { %v3521_v13 = vmul.f32 1.442695, %v3518_v60 }
0x1288   :  { %v3514_v61 = vpop.xlane.xlu0 %3513 }
0x1289   :  { %8109 = vpow2.f32 %v3521_v13  ;;  %v3519_v38 = vsub.f32 %v3500_v2, %v3514_v61 }
0x128b   :  { %v3523_v63 = vmul.f32 1.442695, %v3519_v38 }
0x128c   :  { %v3517_v62 = vpop.xlane.xlu0 %3516 }
0x128d   :  { %8111 = vpow2.f32 %v3523_v63  ;;  %v3520_v42 = vsub.f32 %v9787_v34, %v3517_v62 }
0x128f   :  { %v3525_v33 = vmul.f32 1.442695, %v3520_v42 }
0x1290   :  { %v3747_v8 = vpop.xlane.xlu0 %3746 }
0x1291   :  { %v3754_v11 = vsub.f32 %v9791_v0, %v3747_v8  ;;  %8113 = vpow2.f32 %v3525_v33 }
0x1293   :  { %v3757_v50 = vmul.f32 1.442695, %v3754_v11 }
0x1294   :  { %v3750_v32 = vpop.xlane.xlu1 %3749 }
0x1295   :  { %v3755_v16 = vsub.f32 %v3736_v6, %v3750_v32  ;;  %8115 = vpow2.f32 %v3757_v50 }
0x1296   :  { %v9826_v44 = vpop.eup %8109 }
0x1297   :  { %v3527_v5 = vsel %vm514_vm6, %v9826_v44, 0.0  ;;  %v3759_v53 = vmul.f32 1.442695, %v3755_v16 }
0x1298   :  { %3528 = vadd.xlane.f32.xlu1 %v3527_v5  ;;  %v3753_v2 = vpop.xlane.xlu0 %3752 }
0x1299   :  { %v3756_v52 = vsub.f32 %v9796_v57, %v3753_v2  ;;  %8117 = vpow2.f32 %v3759_v53 }
0x129a   :  { %v9830_v4 = vpop.eup %8111 }
0x129b   :  { %v3530_v3 = vsel %vm514_vm6, %v9830_v4, 0.0  ;;  %v3761_v29 = vmul.f32 1.442695, %v3756_v52 }
0x129c   :  { %3531 = vadd.xlane.f32.xlu0 %v3530_v3  ;;  %v3983_v36 = vpop.xlane.xlu1 %3982 }
0x129d   :  { %v3990_v19 = vsub.f32 %v9800_v12, %v3983_v36  ;;  %8119 = vpow2.f32 %v3761_v29 }
0x129e   :  { %v9842_v37 = vpop.eup %8113 }
0x129f   :  { %v3993_v28 = vmul.f32 1.442695, %v3990_v19  ;;  %v3533_v22 = vsel %vm521_vm7, %v9842_v37, 0.0 }
0x12a0   :  { %v3986_v7 = vpop.xlane.xlu0 %3985 }
0x12a1   :  { %8121 = vpow2.f32 %v3993_v28  ;;  %v3991_v63 = vsub.f32 %v9804_v39, %v3986_v7 }
0x12a2   :  { %v9844_v27 = vpop.eup %8115 }
0x12a3   :  { %v3995_v62 = vmul.f32 1.442695, %v3991_v63 }
0x12a4   :  { %v3989_v34 = vpop.xlane.xlu1 %3988 }
0x12a5   :  { %v3992_v23 = vsub.f32 %v3977_v46, %v3989_v34  ;;  %v3763_v46 = vsel %vm514_vm6, %v9844_v27, 0.0 }
0x12a6   :  { %v9848_v35 = vpop.eup %8117 }
0x12a7   :  { %v3997_v6 = vmul.f32 1.442695, %v3992_v23  ;;  %v3766_v12 = vsel %vm514_vm6, %v9848_v35, 0.0 }
0x12a8   :  { %v4219_v0 = vpop.xlane.xlu0 %4218  ;;  %v3779_v61 = vpop.permute.xlu1 %3778 }
0x12a9   :  { %4014 = vrot.lane.b32.xlu1 %v9654_v43, %s8334_s15  ;;  %v4226_v24 = vsub.f32 %v4203_v17, %v4219_v0  ;;  %8123 = vpow2.f32 %v3997_v6 }
0x12aa   :  { %v9854_v18 = vpop.eup %8119 }
0x12ab   :  { %v4229_v57 = vmul.f32 1.442695, %v4226_v24  ;;  %v3769_v49 = vsel %vm521_vm7, %v9854_v18, 0.0 }
0x12ac   :  { %v3781_v55 = vpop.permute.xlu0 %3780  ;;  %v4019_v38 = vpop.permute.xlu1 %4018 }
0x12ad   :  { %8125 = vpow2.f32 %v4229_v57 }
0x12ae   :  { %v9858_v17 = vpop.eup %8121 }
0x12af   :  { %v3999_v31 = vsel %vm514_vm6, %v9858_v17, 0.0 }
0x12b2   :  { %4016 = vrot.lane.b32.xlu0 %v9650_v21, %s8334_s15 }
0x12b6   :  { %v9862_v48 = vpop.eup %8123 }
0x12b7   :  { %v4005_v54 = vsel %vm521_vm7, %v9862_v48, 0.0 }
0x12ba   :  { %v9866_v47 = vpop.eup %8125 }
0x12bb   :  { %v4235_v13 = vsel %vm514_vm6, %v9866_v47, 0.0 }
0x12cd   :  { %3534 = vadd.xlane.f32.xlu1 %v3533_v22 }
0x12d1   :  { %3767 = vadd.xlane.f32.xlu1 %v3766_v12  ;;  %3764 = vadd.xlane.f32.xlu0 %v3763_v46 }
0x12d5   :  { %3770 = vadd.xlane.f32.xlu0 %v3769_v49 }
0x12d9   :  { %4000 = vadd.xlane.f32.xlu0 %v3999_v31 }
0x12dd   :  { %4006 = vadd.xlane.f32.xlu0 %v4005_v54  ;;  %v4225_v25 = vpop.xlane.xlu0 %4224  ;;  %v4222_v5 = vpop.xlane.xlu1 %4221 }
0x12de   :  { %v4228_v58 = vsub.f32 %v9812_v40, %v4225_v25  ;;  %v4227_v42 = vsub.f32 %v9810_v51, %v4222_v5 }
0x12e0   :  { %v4233_v60 = vmul.f32 1.442695, %v4228_v58  ;;  %v4231_v8 = vmul.f32 1.442695, %v4227_v42 }
0x12e1   :  { %4236 = vadd.xlane.f32.xlu0 %v4235_v13 }
0x12e2   :  { %4254 = vrot.lane.b32.xlu1 %v9656_v20, %s8335_s16  ;;  %8127 = vpow2.f32 %v4233_v60 }
0x12e3   :  { %8129 = vpow2.f32 %v3995_v62 }
0x12e4   :  { %8131 = vpow2.f32 %v4231_v8  ;;  %v9955_v8 = vld [vmem:[%s10710_s4 + $0x38] sm:$0xff] }
0x12e5   :  { %7640 = vmatpush3.msra.mxu1 %v9955_v8 }
0x12e6   :  { %7641 = vmatprep.subr.mxu1 %v8323_v1 }
0x12ef   :  { %v9874_v3 = vpop.eup %8127 }
0x12f0   :  { %v4241_v40 = vsel %vm521_vm7, %v9874_v3, 0.0  ;;  %v9879_v32 = vpop.eup %8129 }
0x12f1   :  { %4242 = vadd.xlane.f32.xlu0 %v4241_v40  ;;  %v4002_v20 = vsel %vm514_vm6, %v9879_v32, 0.0  ;;  %v9883_v11 = vpop.eup %8131 }
0x12f2   :  { %v4238_v39 = vsel %vm514_vm6, %v9883_v11, 0.0 }
0x1306   :  { %4003 = vadd.xlane.f32.xlu1 %v4002_v20 }
0x1307   :  { %4250 = vrot.lane.b32.xlu0 %v9654_v43, %s8335_s16 }
0x130a   :  { %4239 = vadd.xlane.f32.xlu1 %v4238_v39 }
0x131b   :  { %4252 = vrot.lane.b32.xlu1 %v9650_v21, %s8335_s16 }
0x1321   :  { %v3529_v51 = vpop.xlane.xlu1 %3528 }
0x1322   :  { %8133 = vrcp.f32 %v3529_v51 }
0x1325   :  { %v3532_v33 = vpop.xlane.xlu0 %3531  ;;  %v4015_v43 = vpop.permute.xlu1 %4014 }
0x1326   :  { %8135 = vrcp.f32 %v3532_v33 }
0x132f   :  { %v8134_v16 = vpop.eup %8133 }
0x1330   :  { %v3537_v2 = vmul.f32 %v8134_v16, %v9826_v44  ;;  %v9965_v16 = vld [vmem:[%s10710_s4 + $0x30] sm:$0xff] }
0x1331   :  { %7642 = vmatpush3.msra.mxu1 %v9965_v16 }
0x1332   :  { %7541 = vmatmul.mubr.msk.f32.vlgmr.msra.gmra.mxu0 %vm514_vm6, %v3537_v2  ;;  %v9970_v2 = vld [vmem:[%s10710_s4 + $0x28] sm:$0xff]  ;;  %7643 = vmatprep.subr.mxu1 %v8323_v1 }
0x1333   :  { %v8136_v50 = vpop.eup %8135  ;;  %7565 = vmatpush3.msk.msra.mxu0 %vm566_vm5, %v9824_v59  ;;  %7543 = vmatprep.mubr.msk.f32.mxu0 %vm8324_vm0, %v8323_v1  ;;  %v4017_v59 = vpop.permute.xlu0 %4016 }
0x1334   :  { %7566 = vmatprep.subr.mxu0 %v8323_v1  ;;  %v3539_v21 = vmul.f32 %v8136_v50, %v9830_v4  ;;  %7644 = vmatpush3.msra.mxu1 %v9970_v2  ;;  %v9979_v50 = vld [vmem:[%s10710_s4 + $0x20] sm:$0xff] }
0x1335   :  { %7567 = vmatpush3.msra.mxu0 %v3781_v55  ;;  %7645 = vmatprep.subr.mxu1 %v8323_v1 }
0x1336   :  { %7568 = vmatprep.subr.mxu0 %v8323_v1  ;;  %7544 = vmatmul.mubr.msk.f32.gmra.mxu0 %vm514_vm6, %v3539_v21 }
0x1337   :  { %7569 = vmatpush3.msra.mxu0 %v3779_v61  ;;  %7546 = vmatprep.mubr.msk.f32.mxu0 %vm8324_vm0, %v8323_v1 }
0x1338   :  { %7594 = vmatprep.subr.mxu0 %v8323_v1  ;;  %7646 = vmatpush3.msra.mxu1 %v9979_v50 }
0x1339   :  { %7673 = vmatprep.subr.mxu1 %v8323_v1 }
0x1356   :  { %v3535_v44 = vpop.xlane.xlu1 %3534 }
0x1357   :  { %8137 = vrcp.f32 %v3535_v44 }
0x135a   :  { %v3765_v53 = vpop.xlane.xlu0 %3764  ;;  %v3768_v52 = vpop.xlane.xlu1 %3767 }
0x135b   :  { %8139 = vrcp.f32 %v3765_v53 }
0x135c   :  { %8141 = vrcp.f32 %v3768_v52 }
0x135e   :  { %v3771_v4 = vpop.xlane.xlu0 %3770 }
0x135f   :  { %8143 = vrcp.f32 %v3771_v4 }
0x1362   :  { %v4001_v36 = vpop.xlane.xlu0 %4000 }
0x1363   :  { %8145 = vrcp.f32 %v4001_v36 }
0x1364   :  { %v8138_v29 = vpop.eup %8137 }
0x1365   :  { %v3541_v19 = vmul.f32 %v8138_v29, %v9842_v37 }
0x1366   :  { %v4007_v57 = vpop.xlane.xlu0 %4006 }
0x1367   :  { %7547 = vmatmul.mubr.msk.f32.gmra.mxu0 %vm514_vm6, %v3541_v19 }
0x1368   :  { %7570 = vmatprep.mubr.msk.f32.mxu0 %vm8324_vm0, %v8323_v1  ;;  %v8140_v7 = vpop.eup %8139 }
0x1369   :  { %v3773_v34 = vmul.f32 %v8140_v7, %v9844_v27  ;;  %v8142_v28 = vpop.eup %8141  ;;  %v4255_v27 = vpop.permute.xlu1 %4254 }
0x136a   :  { %v3775_v23 = vmul.f32 %v8142_v28, %v9848_v35  ;;  %v4237_v22 = vpop.xlane.xlu0 %4236 }
0x136b   :  { %7571 = vmatmul.mubr.msk.f32.vlgmr.msra.gmra.mxu0 %vm514_vm6, %v3773_v34 }
0x136c   :  { %7595 = vmatpush3.msk.msra.mxu0 %vm566_vm5, %v4019_v38  ;;  %7573 = vmatprep.mubr.msk.f32.mxu0 %vm8324_vm0, %v8323_v1  ;;  %v8144_v0 = vpop.eup %8143 }
0x136d   :  { %7596 = vmatprep.subr.mxu0 %v8323_v1  ;;  %v3777_v6 = vmul.f32 %v8144_v0, %v9854_v18 }
0x136e   :  { %7597 = vmatpush3.msra.mxu0 %v4017_v59 }
0x136f   :  { %7598 = vmatprep.subr.mxu0 %v8323_v1  ;;  %7574 = vmatmul.mubr.msk.f32.gmra.mxu0 %vm514_vm6, %v3775_v23 }
0x1370   :  { %7599 = vmatpush3.msra.mxu0 %v4015_v43  ;;  %7576 = vmatprep.mubr.msk.f32.mxu0 %vm8324_vm0, %v8323_v1  ;;  %v8146_v24 = vpop.eup %8145 }
0x1371   :  { %7624 = vmatprep.subr.mxu0 %v8323_v1  ;;  %v4009_v37 = vmul.f32 %v8146_v24, %v9858_v17 }
0x1373   :  { %7577 = vmatmul.mubr.msk.f32.gmra.mxu0 %vm514_vm6, %v3777_v6 }
0x1374   :  { %7600 = vmatprep.mubr.msk.f32.mxu0 %vm8324_vm0, %v8323_v1 }
0x1377   :  { %7601 = vmatmul.mubr.msk.f32.vlgmr.msra.gmra.mxu0 %vm514_vm6, %v4009_v37 }
0x1378   :  { %7625 = vmatpush3.msk.msra.mxu0 %vm566_vm5, %v4255_v27  ;;  %7603 = vmatprep.mubr.msk.f32.mxu0 %vm8324_vm0, %v8323_v1 }
0x1379   :  { %7626 = vmatprep.subr.mxu0 %v8323_v1 }
0x137a   :  { %v4243_v12 = vpop.xlane.xlu0 %4242 }
0x137e   :  { %v4251_v49 = vpop.permute.xlu0 %4250 }
0x138f   :  { %v4004_v35 = vpop.xlane.xlu1 %4003 }
0x1390   :  { %8147 = vrcp.f32 %v4004_v35 }
0x1391   :  { %8149 = vrcp.f32 %v4007_v57 }
0x1392   :  { %8151 = vrcp.f32 %v4237_v22 }
0x1393   :  { %v4240_v46 = vpop.xlane.xlu1 %4239 }
0x1394   :  { %8153 = vrcp.f32 %v4240_v46 }
0x1395   :  { %8155 = vrcp.f32 %v4243_v12 }
0x1397   :  { %v4253_v18 = vpop.permute.xlu1 %4252 }
0x1398   :  { %7627 = vmatpush3.msra.mxu0 %v4253_v18 }
0x1399   :  { %7628 = vmatprep.subr.mxu0 %v8323_v1 }
0x139a   :  { %7629 = vmatpush3.msra.mxu0 %v4251_v49 }
0x139b   :  { %7656 = vmatprep.subr.mxu0 %v8323_v1 }
0x139d   :  { %v8148_v17 = vpop.eup %8147 }
0x139e   :  { %v4011_v31 = vmul.f32 %v8148_v17, %v9879_v32  ;;  %v8150_v55 = vpop.eup %8149 }
0x139f   :  { %v4013_v54 = vmul.f32 %v8150_v55, %v9862_v48  ;;  %v8152_v25 = vpop.eup %8151  ;;  %v6582_v55 = vld [vmem:[%s10707_s1 + $0x1c] ss:$0 sm:$0xff] }
0x13a0   :  { %7604 = vmatmul.mubr.msk.f32.gmra.mxu0 %vm514_vm6, %v4011_v31  ;;  %v4245_v58 = vmul.f32 %v8152_v25, %v9866_v47 }
0x13a1   :  { %7606 = vmatprep.mubr.msk.f32.mxu0 %vm8324_vm0, %v8323_v1  ;;  %v8154_v60 = vpop.eup %8153 }
0x13a2   :  { %v4247_v13 = vmul.f32 %v8154_v60, %v9883_v11  ;;  %v8156_v61 = vpop.eup %8155 }
0x13a3   :  { %v4249_v48 = vmul.f32 %v8156_v61, %v9874_v3  ;;  %v3218_v61 = vadd.f32 %v9783_v14, %v9550_v26 }
0x13a4   :  { %7607 = vmatmul.mubr.msk.f32.gmra.mxu0 %vm514_vm6, %v4013_v54 }
0x13a5   :  { %7630 = vmatprep.mubr.msk.f32.mxu0 %vm8324_vm0, %v8323_v1 }
0x13a8   :  { %7631 = vmatmul.mubr.msk.f32.vlgmr.msra.gmra.mxu0 %vm514_vm6, %v4245_v58 }
0x13a9   :  { %7633 = vmatprep.mubr.msk.f32.mxu0 %vm8324_vm0, %v8323_v1 }
0x13ac   :  { %7634 = vmatmul.mubr.msk.f32.gmra.mxu0 %vm514_vm6, %v4247_v13 }
0x13ad   :  { %7636 = vmatprep.mubr.msk.f32.mxu0 %vm8324_vm0, %v8323_v1 }
0x13b0   :  { %7637 = vmatmul.mubr.msk.f32.gmra.mxu0 %vm514_vm6, %v4249_v48 }
0x13b1   :  { %7664 = vmatprep.mubr.msk.f32.mxu0 %vm8324_vm0, %v8323_v1 }
0x13f2   :  { %v3627_v47 = vpop.f32.mrf.mxu0 }
0x13f4   :  { %v7542_v38 = vpop.f32.mrf.mxu0 }
0x13f6   :  { %v3632_v63 = vpop.f32.mrf.mxu0 }
0x13f8   :  { %v7545_v5 = vpop.f32.mrf.mxu0 }
0x13f9   :  { %v8273_v5 = vld [vmem:[%s10707_s1 + $0x18] ss:$0 sm:$0xff] }
0x1427   :  { %v3637_v62 = vpop.f32.mrf.mxu0 }
0x1429   :  { %v7548_v42 = vpop.f32.mrf.mxu0 }
0x142b   :  { %v3863_v40 = vpop.f32.mrf.mxu0 }
0x142c   :  { %4352 = vrot.lane.b32.xlu1 %v3863_v40, %s8336_s17  ;;  %v3216_v40 = vadd.f32 %v9779_v30, %v9531_v9 }
0x142d   :  { %v7572_v3 = vpop.f32.mrf.mxu0 }
0x142f   :  { %v3868_v32 = vpop.f32.mrf.mxu0 }
0x1430   :  { %4354 = vrot.lane.b32.xlu0 %v3868_v32, %s8336_s17  ;;  %v10028_v32 = vadd.f32 %v8273_v5, %v3216_v40 }
0x1431   :  { %v7575_v20 = vpop.f32.mrf.mxu0 }
0x1432   :  { %v3217_v20 = vadd.f32 %v9781_v45, %v9538_v56  ;;  %v4747_v30 = vsel %vm263_vm2, %v10028_v32, 0.0 }
0x1433   :  { %v3873_v11 = vpop.f32.mrf.mxu0 }
0x1434   :  { %v10034_v9 = vadd.f32 %v8273_v5, %v3217_v20 }
0x1435   :  { %v7578_v39 = vpop.f32.mrf.mxu0 }
0x1437   :  { %v4099_v51 = vpop.f32.mrf.mxu0 }
0x1438   :  { %4364 = vrot.lane.b32.xlu0 %v4099_v51, %s8337_s18 }
0x1439   :  { %v7602_v33 = vpop.f32.mrf.mxu0 }
0x1460   :  { %v4104_v21 = vpop.f32.mrf.mxu0 }
0x1461   :  { %4366 = vrot.lane.b32.xlu1 %v4104_v21, %s8337_s18 }
0x1462   :  { %v7605_v43 = vpop.f32.mrf.mxu0 }
0x1464   :  { %v4109_v59 = vpop.f32.mrf.mxu0 }
0x1466   :  { %v7608_v44 = vpop.f32.mrf.mxu0 }
0x1468   :  { %v4335_v53 = vpop.f32.mrf.mxu0 }
0x1469   :  { %4376 = vrot.lane.b32.xlu1 %v4335_v53, %s8338_s26 }
0x146a   :  { %v7632_v52 = vpop.f32.mrf.mxu0 }
0x146c   :  { %v4340_v4 = vpop.f32.mrf.mxu0 }
0x146d   :  { %4356 = vrot.lane.b32.xlu1 %v3873_v11, %s8336_s17  ;;  %4378 = vrot.lane.b32.xlu0 %v4340_v4, %s8338_s26 }
0x146e   :  { %v7635_v36 = vpop.f32.mrf.mxu0 }
0x1470   :  { %v4345_v29 = vpop.f32.mrf.mxu0 }
0x1471   :  { %4368 = vrot.lane.b32.xlu0 %v4109_v59, %s8337_s18  ;;  %4380 = vrot.lane.b32.xlu1 %v4345_v29, %s8338_s26 }
0x1472   :  { %v7638_v19 = vpop.f32.mrf.mxu0 }
0x149e   :  { %v4353_v7 = vpop.permute.xlu1 %4352 }
0x149f   :  { %v4385_v0 = vsel %vm421_vm4, %v3627_v47, %v4353_v7 }
0x14a2   :  { %v4355_v34 = vpop.permute.xlu0 %4354 }
0x14a3   :  { %v4386_v27 = vsel %vm421_vm4, %v3632_v63, %v4355_v34 }
0x14aa   :  { %v4365_v23 = vpop.permute.xlu0 %4364 }
0x14ab   :  { %v4388_v6 = vsel %vm1396_vm8, %v4385_v0, %v4365_v23 }
0x14d3   :  { %v4367_v28 = vpop.permute.xlu1 %4366 }
0x14d4   :  { %v4389_v57 = vsel %vm1396_vm8, %v4386_v27, %v4367_v28 }
0x14db   :  { %v4377_v24 = vpop.permute.xlu1 %4376 }
0x14dc   :  { %v4391_v37 = vsel %vm1400_vm9, %v4388_v6, %v4377_v24 }
0x14dd   :  { %7648 = vmatmul.mubr.msk.f32.vlgmr.msra.gmra.mxu1 %vm263_vm2, %v4391_v37 }
0x14de   :  { %7650 = vmatprep.mubr.msk.f32.mxu1 %vm8324_vm0, %v8323_v1 }
0x14df   :  { %v4357_v22 = vpop.permute.xlu1 %4356  ;;  %v4379_v35 = vpop.permute.xlu0 %4378 }
0x14e0   :  { %v4392_v12 = vsel %vm1400_vm9, %v4389_v57, %v4379_v35  ;;  %v4387_v46 = vsel %vm421_vm4, %v3637_v62, %v4357_v22  ;;  %v10018_v62 = vadd.f32 %v8273_v5, %v3218_v61 }
0x14e1   :  { %7651 = vmatmul.mubr.msk.f32.gmra.mxu1 %vm263_vm2, %v4392_v12 }
0x14e2   :  { %7653 = vmatprep.mubr.msk.f32.mxu1 %vm8324_vm0, %v8323_v1 }
0x14e3   :  { %v4369_v18 = vpop.permute.xlu0 %4368  ;;  %v4381_v49 = vpop.permute.xlu1 %4380 }
0x14e4   :  { %v4390_v17 = vsel %vm1396_vm8, %v4387_v46, %v4369_v18 }
0x14e5   :  { %v4393_v31 = vsel %vm1400_vm9, %v4390_v17, %v4381_v49  ;;  %v6519_v49 = vld [vmem:[%s10711_s5 + $0x38] sm:$0xff]  ;;  %v6518_v17 = vld [vmem:[%s10711_s5 + $0x30] sm:$0xff] }
0x14e6   :  { %7654 = vmatmul.mubr.msk.f32.gmra.mxu1 %vm263_vm2, %v4393_v31  ;;  %7657 = vmatpush3.msra.mxu0 %v6519_v49  ;;  %v6517_v31 = vld [vmem:[%s10711_s5 + $0x28] sm:$0xff] }
0x14e7   :  { %7705 = vmatprep.mubr.msk.f32.mxu1 %vm8324_vm0, %v8323_v1  ;;  %7658 = vmatprep.subr.mxu0 %v8323_v1 }
0x14e8   :  { %7659 = vmatpush3.msra.mxu0 %v6518_v17  ;;  %v6533_v17 = vld [vmem:[%s10712_s6 + $0xe8] sm:$0xff] }
0x14e9   :  { %7660 = vmatprep.subr.mxu0 %v8323_v1 }
0x14ea   :  { %7661 = vmatpush3.msra.mxu0 %v6517_v31  ;;  %v6532_v31 = vld [vmem:[%s10712_s6 + $0xe0] sm:$0xff] }
0x14eb   :  { %7662 = vmatprep.subr.mxu0 %v8323_v1 }
0x159d   :  { %v4473_v54 = vpop.f32.mrf.mxu1 }
0x159e   :  { %v4474_v25 = vadd.f32 %v6582_v55, %v4473_v54 }
0x159f   :  { %v7649_v58 = vpop.f32.mrf.mxu1 }
0x15a0   :  { %v4487_v60 = vadd.f32 %v4474_v25, %v9554_v10 }
0x15a1   :  { %v4478_v13 = vpop.f32.mrf.mxu1 }
0x15a2   :  { %v4479_v48 = vadd.f32 %v6582_v55, %v4478_v13  ;;  %v4490_v47 = vsel %vm263_vm2, %v4487_v60, 0.0 }
0x15a3   :  { %4491 = vadd.xlane.f32.xlu0 %v4490_v47  ;;  %v7652_v38 = vpop.f32.mrf.mxu1 }
0x15a4   :  { %v4488_v63 = vadd.f32 %v4479_v48, %v9560_v15  ;;  %v4753_v15 = vsel %vm270_vm3, %v10018_v62, 0.0 }
0x15a6   :  { %v4483_v42 = vpop.f32.mrf.mxu1  ;;  %v4493_v10 = vsel %vm263_vm2, %v4488_v63, 0.0 }
0x15a7   :  { %v4484_v26 = vadd.f32 %v6582_v55, %v4483_v42  ;;  %4494 = vadd.xlane.f32.xlu1 %v4493_v10  ;;  %v6516_v55 = vld [vmem:[%s10711_s5 + $0x20] sm:$0xff] }
0x15a8   :  { %v7655_v14 = vpop.f32.mrf.mxu1  ;;  %7663 = vmatpush3.msra.mxu0 %v6516_v55  ;;  %v6531_v55 = vld [vmem:[%s10712_s6 + $0xd8] sm:$0xff] }
0x15a9   :  { %v10024_v3 = vadd.f32 %v4484_v26, %v9543_v41  ;;  %v4750_v41 = vsel %vm263_vm2, %v10034_v9, 0.0  ;;  %7714 = vmatprep.subr.mxu0 %v8323_v1  ;;  %v6586_v14 = vld [vmem:[%s10707_s1 + $0x1d] ss:$0 sm:$0xff] }
0x15ab   :  { %4754 = vadd.xlane.f32.xlu1 %v4753_v15  ;;  %v4496_v11 = vsel %vm270_vm3, %v10024_v3, 0.0 }
0x15ac   :  { %4497 = vadd.xlane.f32.xlu0 %v4496_v11 }
0x15b0   :  { %4748 = vadd.xlane.f32.xlu0 %v4747_v30 }
0x15b4   :  { %4751 = vadd.xlane.f32.xlu0 %v4750_v41 }
0x162c   :  { %v4492_v39 = vpop.xlane.xlu0 %4491 }
0x162d   :  { %v4499_v51 = vmul.f32 0.03125, %v4492_v39  ;;  %v6587_v39 = vld [vmem:[%s10707_s1 + $0x1e] ss:$0 sm:$0xff] }
0x162f   :  { %v10040_v33 = vsub.f32 %v4487_v60, %v4499_v51 }
0x1630   :  { %v4495_v56 = vpop.xlane.xlu1 %4494 }
0x1631   :  { %v4500_v45 = vmul.f32 0.03125, %v4495_v56  ;;  %v4505_v21 = vmul.f32 %v10040_v33, %v10040_v33 }
0x1633   :  { %v10044_v43 = vsub.f32 %v4488_v63, %v4500_v45  ;;  %v4508_v59 = vsel %vm263_vm2, %v4505_v21, 0.0 }
0x1634   :  { %4509 = vadd.xlane.f32.xlu0 %v4508_v59  ;;  %v4755_v44 = vpop.xlane.xlu1 %4754 }
0x1635   :  { %v4498_v53 = vpop.xlane.xlu0 %4497  ;;  %v4506_v52 = vmul.f32 %v10044_v43, %v10044_v43  ;;  %v4758_v29 = vmul.f32 0.03125, %v4755_v44 }
0x1636   :  { %v4501_v4 = vmul.f32 0.03125, %v4498_v53 }
0x1637   :  { %v4511_v36 = vsel %vm263_vm2, %v4506_v52, 0.0  ;;  %v10056_v23 = vsub.f32 %v10018_v62, %v4758_v29  ;;  %v8275_v52 = vld [vmem:[%s10709_s3 + $0x30] sm:$0xff] }
0x1638   :  { %v10051_v19 = vsub.f32 %v10024_v3, %v4501_v4  ;;  %4512 = vadd.xlane.f32.xlu1 %v4511_v36  ;;  %v8276_v4 = vld [vmem:[%s10709_s3 + $0x28] sm:$0xff] }
0x1639   :  { %v4749_v7 = vpop.xlane.xlu0 %4748  ;;  %v4764_v35 = vmul.f32 %v10056_v23, %v10056_v23 }
0x163a   :  { %v4756_v34 = vmul.f32 0.03125, %v4749_v7  ;;  %v4507_v28 = vmul.f32 %v10051_v19, %v10051_v19 }
0x163b   :  { %v4771_v18 = vsel %vm270_vm3, %v4764_v35, 0.0 }
0x163c   :  { %v10059_v0 = vsub.f32 %v10028_v32, %v4756_v34  ;;  %v4514_v6 = vsel %vm270_vm3, %v4507_v28, 0.0  ;;  %v8278_v28 = vld [vmem:[%s10707_s1 + $0x19] ss:$0 sm:$0xff] }
0x163d   :  { %4515 = vadd.xlane.f32.xlu0 %v4514_v6  ;;  %v4752_v24 = vpop.xlane.xlu0 %4751 }
0x163e   :  { %v4757_v37 = vmul.f32 0.03125, %v4752_v24  ;;  %v4762_v27 = vmul.f32 %v10059_v0, %v10059_v0 }
0x1640   :  { %v10065_v57 = vsub.f32 %v10034_v9, %v4757_v37  ;;  %v4765_v22 = vsel %vm263_vm2, %v4762_v27, 0.0  ;;  %v8279_v37 = vld [vmem:[%s10707_s1 + $0x1a] ss:$0 sm:$0xff] }
0x1641   :  { %4766 = vadd.xlane.f32.xlu1 %v4765_v22 }
0x1642   :  { %v4763_v12 = vmul.f32 %v10065_v57, %v10065_v57 }
0x1644   :  { %v4768_v46 = vsel %vm263_vm2, %v4763_v12, 0.0 }
0x1645   :  { %4769 = vadd.xlane.f32.xlu0 %v4768_v46  ;;  %4772 = vadd.xlane.f32.xlu1 %v4771_v18 }
0x16bd   :  { %v4510_v54 = vpop.xlane.xlu0 %4509 }
0x16be   :  { %v4517_v25 = vmul.f32 0.03125, %v4510_v54  ;;  %v6530_v54 = vld [vmem:[%s10712_s6 + $0xd0] sm:$0xff] }
0x16c0   :  { %v4520_v58 = vadd.f32 1e-05, %v4517_v25  ;;  %v6529_v25 = vld [vmem:[%s10712_s6 + $0xc8] sm:$0xff] }
0x16c1   :  { %v4513_v60 = vpop.xlane.xlu1 %4512 }
0x16c2   :  { %8157 = vrsqrt.f32 %v4520_v58  ;;  %v4518_v13 = vmul.f32 0.03125, %v4513_v60  ;;  %v6528_v58 = vld [vmem:[%s10712_s6 + $0xc0] sm:$0xff]  ;;  %v6527_v60 = vld [vmem:[%s10712_s6 + $0xb8] sm:$0xff] }
0x16c4   :  { %v4521_v61 = vadd.f32 1e-05, %v4518_v13  ;;  %v6526_v13 = vld [vmem:[%s10712_s6 + $0xb0] sm:$0xff] }
0x16c6   :  { %8159 = vrsqrt.f32 %v4521_v61  ;;  %v4516_v48 = vpop.xlane.xlu0 %4515  ;;  %v6525_v61 = vld [vmem:[%s10712_s6 + $0xa8] sm:$0xff] }
0x16c7   :  { %v4519_v47 = vmul.f32 0.03125, %v4516_v48  ;;  %v6524_v48 = vld [vmem:[%s10712_s6 + $0xa0] sm:$0xff] }
0x16c9   :  { %v4522_v38 = vadd.f32 1e-05, %v4519_v47  ;;  %v6523_v47 = vld [vmem:[%s10712_s6 + $0x98] sm:$0xff] }
0x16ca   :  { %v4767_v63 = vpop.xlane.xlu1 %4766 }
0x16cb   :  { %8161 = vrsqrt.f32 %v4522_v38  ;;  %v4774_v5 = vmul.f32 0.03125, %v4767_v63  ;;  %v10200_v38 = vld [vmem:[%s10712_s6 + $0x90] sm:$0xff]  ;;  %v10207_v63 = vld [vmem:[%s10712_s6 + $0x88] sm:$0xff] }
0x16cd   :  { %v4777_v42 = vadd.f32 1e-05, %v4774_v5  ;;  %v10212_v5 = vld [vmem:[%s10712_s6 + $0x80] sm:$0xff] }
0x16ce   :  { %v4770_v10 = vpop.xlane.xlu0 %4769  ;;  %v4773_v40 = vpop.xlane.xlu1 %4772 }
0x16cf   :  { %v8158_v26 = vpop.eup %8157  ;;  %8163 = vrsqrt.f32 %v4777_v42  ;;  %v4775_v15 = vmul.f32 0.03125, %v4770_v10  ;;  %v4776_v20 = vmul.f32 0.03125, %v4773_v40  ;;  %v6588_v42 = vld [vmem:[%s10707_s1 + $0x1f] ss:$0 sm:$0xff] }
0x16d0   :  { %v4526_v11 = vmul.f32 %v8158_v26, %v10040_v33  ;;  %v8274_v33 = vld [vmem:[%s10709_s3 + $0x38] sm:$0xff] }
0x16d1   :  { %v4778_v30 = vadd.f32 1e-05, %v4775_v15  ;;  %v4779_v41 = vadd.f32 1e-05, %v4776_v20 }
0x16d2   :  { %v4533_v51 = vmul.f32 %v6586_v14, %v4526_v11 }
0x16d3   :  { %v8160_v56 = vpop.eup %8159  ;;  %8165 = vrsqrt.f32 %v4778_v30 }
0x16d4   :  { %8167 = vrsqrt.f32 %v4779_v41  ;;  %v4540_v45 = vadd.f32 %v6587_v39, %v4533_v51  ;;  %v4527_v21 = vmul.f32 %v8160_v56, %v10044_v43 }
0x16d6   :  { %7665 = vmatmul.mubr.msk.f32.vlgmr.msra.gmra.mxu0 %vm263_vm2, %v4540_v45  ;;  %v4534_v59 = vmul.f32 %v6586_v14, %v4527_v21 }
0x16d7   :  { %7715 = vmatpush3.msra.mxu0 %v8274_v33  ;;  %7667 = vmatprep.mubr.msk.f32.mxu0 %vm8324_vm0, %v8323_v1 }
0x16d8   :  { %v8162_v44 = vpop.eup %8161  ;;  %v4541_v53 = vadd.f32 %v6587_v39, %v4534_v59  ;;  %7716 = vmatprep.subr.mxu0 %v8323_v1 }
0x16d9   :  { %7717 = vmatpush3.msra.mxu0 %v8275_v52  ;;  %v4528_v43 = vmul.f32 %v8162_v44, %v10051_v19  ;;  %v8277_v19 = vld [vmem:[%s10709_s3 + $0x20] sm:$0xff] }
0x16da   :  { %7668 = vmatmul.mubr.msk.f32.gmra.mxu0 %vm263_vm2, %v4541_v53  ;;  %7718 = vmatprep.subr.mxu0 %v8323_v1 }
0x16db   :  { %7670 = vmatprep.mubr.msk.f32.mxu0 %vm8324_vm0, %v8323_v1  ;;  %7719 = vmatpush3.msra.mxu0 %v8276_v4  ;;  %v4535_v36 = vmul.f32 %v6586_v14, %v4528_v43 }
0x16dc   :  { %v8164_v29 = vpop.eup %8163  ;;  %7720 = vmatprep.subr.mxu0 %v8323_v1 }
0x16dd   :  { %v4783_v7 = vmul.f32 %v8164_v29, %v10059_v0  ;;  %v4542_v34 = vadd.f32 %v6587_v39, %v4535_v36  ;;  %7721 = vmatpush3.msra.mxu0 %v8277_v19 }
0x16de   :  { %7731 = vmatprep.subr.mxu0 %v8323_v1 }
0x16df   :  { %v4786_v6 = vmul.f32 %v8278_v28, %v4783_v7  ;;  %7671 = vmatmul.mubr.msk.f32.gmra.mxu0 %vm263_vm2, %v4542_v34 }
0x16e0   :  { %v8166_v24 = vpop.eup %8165  ;;  %7722 = vmatprep.mubr.msk.f32.mxu0 %vm8324_vm0, %v8323_v1 }
0x16e1   :  { %v8168_v0 = vpop.eup %8167  ;;  %v4789_v27 = vadd.f32 %v8279_v37, %v4786_v6  ;;  %v4784_v22 = vmul.f32 %v8166_v24, %v10065_v57  ;;  %v6534_v57 = vld [vmem:[%s10712_s6 + $0xf0] sm:$0xff] }
0x16e2   :  { %v4785_v35 = vmul.f32 %v8168_v0, %v10056_v23  ;;  %v10145_v23 = vld [vmem:[%s10712_s6 + $0xf8] sm:$0xff] }
0x16e3   :  { %7723 = vmatmul.mubr.msk.f32.vlgmr.msra.gmra.mxu0 %vm263_vm2, %v4789_v27  ;;  %v4787_v12 = vmul.f32 %v8278_v28, %v4784_v22  ;;  %7674 = vmatpush3.msra.mxu1 %v10145_v23 }
0x16e4   :  { %7725 = vmatprep.mubr.msk.f32.mxu0 %vm8324_vm0, %v8323_v1  ;;  %v4788_v18 = vmul.f32 %v8278_v28, %v4785_v35  ;;  %7675 = vmatprep.subr.mxu1 %v8323_v1  ;;  %v8280_v28 = vld [vmem:[%s10707_s1 + $0x1b] ss:$0 sm:$0xff] }
0x16e5   :  { %v4790_v46 = vadd.f32 %v8279_v37, %v4787_v12  ;;  %7676 = vmatpush3.msra.mxu1 %v6534_v57 }
0x16e6   :  { %v4791_v49 = vadd.f32 %v8279_v37, %v4788_v18  ;;  %7677 = vmatprep.subr.mxu1 %v8323_v1 }
0x16e7   :  { %7726 = vmatmul.mubr.msk.f32.gmra.mxu0 %vm263_vm2, %v4790_v46  ;;  %7678 = vmatpush3.msra.mxu1 %v6533_v17 }
0x16e8   :  { %7728 = vmatprep.mubr.msk.f32.mxu0 %vm8324_vm0, %v8323_v1  ;;  %7679 = vmatprep.subr.mxu1 %v8323_v1 }
0x16e9   :  { %7680 = vmatpush3.msra.mxu1 %v6532_v31 }
0x16ea   :  { %7681 = vmatprep.subr.mxu1 %v8323_v1 }
0x16eb   :  { %7729 = vmatmul.mubr.msk.f32.gmra.mxu0 %vm263_vm2, %v4791_v49  ;;  %7682 = vmatpush3.msra.mxu1 %v6531_v55 }
0x16ec   :  { %7737 = vmatprep.mubr.msk.f32.mxu0 %vm8324_vm0, %v8323_v1  ;;  %7683 = vmatprep.subr.mxu1 %v8323_v1 }
0x16ed   :  { %7684 = vmatpush3.msra.mxu1 %v6530_v54 }
0x16ee   :  { %7685 = vmatprep.subr.mxu1 %v8323_v1 }
0x16ef   :  { %7686 = vmatpush3.msra.mxu1 %v6529_v25 }
0x16f0   :  { %7687 = vmatprep.subr.mxu1 %v8323_v1 }
0x16f1   :  { %7688 = vmatpush3.msra.mxu1 %v6528_v58 }
0x16f2   :  { %7689 = vmatprep.subr.mxu1 %v8323_v1 }
0x16f3   :  { %7690 = vmatpush3.msra.mxu1 %v6527_v60 }
0x16f4   :  { %7691 = vmatprep.subr.mxu1 %v8323_v1 }
0x16f5   :  { %7692 = vmatpush3.msra.mxu1 %v6526_v13 }
0x16f6   :  { %7693 = vmatprep.subr.mxu1 %v8323_v1 }
0x16f7   :  { %7694 = vmatpush3.msra.mxu1 %v6525_v61 }
0x16f8   :  { %7695 = vmatprep.subr.mxu1 %v8323_v1 }
0x16f9   :  { %7696 = vmatpush3.msra.mxu1 %v6524_v48 }
0x16fa   :  { %7697 = vmatprep.subr.mxu1 %v8323_v1 }
0x16fb   :  { %7698 = vmatpush3.msra.mxu1 %v6523_v47 }
0x16fc   :  { %7699 = vmatprep.subr.mxu1 %v8323_v1 }
0x16fd   :  { %7700 = vmatpush3.msra.mxu1 %v10200_v38 }
0x16fe   :  { %7701 = vmatprep.subr.mxu1 %v8323_v1 }
0x16ff   :  { %7702 = vmatpush3.msra.mxu1 %v10207_v63 }
0x1700   :  { %7703 = vmatprep.subr.mxu1 %v8323_v1 }
0x1701   :  { %7704 = vmatpush3.msra.mxu1 %v10212_v5 }
0x1702   :  { %7746 = vmatprep.subr.mxu1 %v8323_v1 }
0x1796   :  { %v4622_v10 = vpop.f32.mrf.mxu0 }
0x1797   :  { %v4623_v40 = vadd.f32 %v6588_v42, %v4622_v10 }
0x1798   :  { %v7666_v26 = vpop.f32.mrf.mxu0 }
0x1799   :  { %v4636_v14 = vmul.f32 %v4623_v40, %v4623_v40 }
0x179a   :  { %v4627_v15 = vpop.f32.mrf.mxu0 }
0x179b   :  { %v4639_v20 = vmul.f32 %v4636_v14, %v4623_v40  ;;  %v4628_v11 = vadd.f32 %v6588_v42, %v4627_v15 }
0x179c   :  { %v7669_v30 = vpop.f32.mrf.mxu0 }
0x179d   :  { %v4642_v41 = vmul.f32 0.044715, %v4639_v20  ;;  %v4637_v39 = vmul.f32 %v4628_v11, %v4628_v11 }
0x179f   :  { %v4645_v51 = vadd.f32 %v4642_v41, %v4623_v40  ;;  %v4640_v56 = vmul.f32 %v4637_v39, %v4628_v11  ;;  %v4632_v45 = vpop.f32.mrf.mxu0 }
0x17a0   :  { %v4633_v21 = vadd.f32 %v6588_v42, %v4632_v45 }
0x17a1   :  { %v4648_v59 = vmul.f32 0.7978846, %v4645_v51  ;;  %v4643_v33 = vmul.f32 0.044715, %v4640_v56  ;;  %v7672_v44 = vpop.f32.mrf.mxu0 }
0x17a2   :  { %v4638_v53 = vmul.f32 %v4633_v21, %v4633_v21 }
0x17a3   :  { %8169 = vtanh.f32 %v4648_v59  ;;  %v4646_v52 = vadd.f32 %v4643_v33, %v4628_v11  ;;  %v4867_v43 = vpop.f32.mrf.mxu0 }
0x17a4   :  { %v4641_v4 = vmul.f32 %v4638_v53, %v4633_v21  ;;  %v10228_v27 = vadd.f32 %v8280_v28, %v4867_v43 }
0x17a5   :  { %v4649_v36 = vmul.f32 0.7978846, %v4646_v52  ;;  %v7724_v29 = vpop.f32.mrf.mxu0 }
0x17a6   :  { %v4644_v7 = vmul.f32 0.044715, %v4641_v4 }
0x17a7   :  { %8171 = vtanh.f32 %v4649_v36  ;;  %v4872_v34 = vpop.f32.mrf.mxu0 }
0x17a8   :  { %v4647_v19 = vadd.f32 %v4644_v7, %v4633_v21  ;;  %v10224_v6 = vadd.f32 %v8280_v28, %v4872_v34 }
0x17a9   :  { %v7727_v24 = vpop.f32.mrf.mxu0 }
0x17aa   :  { %v4650_v0 = vmul.f32 0.7978846, %v4647_v19  ;;  %4886 = vrot.lane.b32.xlu1 %v10224_v6, %s8325_s29 }
0x17ab   :  { %v4877_v37 = vpop.f32.mrf.mxu0 }
0x17ac   :  { %8173 = vtanh.f32 %v4650_v0  ;;  %v10230_v22 = vadd.f32 %v8280_v28, %v4877_v37 }
0x17ad   :  { %v7730_v35 = vpop.f32.mrf.mxu0 }
0x17ae   :  { %4884 = vrot.lane.b32.xlu1 %v10228_v27, %s8325_s29  ;;  %4888 = vrot.lane.b32.xlu0 %v10230_v22, %s8325_s29 }
0x17b0   :  { %v8170_v12 = vpop.eup %8169 }
0x17b1   :  { %v4654_v46 = vadd.f32 1.0, %v8170_v12 }
0x17b2   :  { %5124 = vrot.lane.b32.xlu1 %v10230_v22, %s8326_s0  ;;  %5122 = vrot.lane.b32.xlu0 %v10224_v6, %s8326_s0 }
0x17b3   :  { %v4657_v18 = vmul.f32 0.5, %v4654_v46 }
0x17b4   :  { %v8172_v49 = vpop.eup %8171 }
0x17b5   :  { %v4660_v57 = vmul.f32 %v4657_v18, %v4623_v40  ;;  %v4655_v17 = vadd.f32 1.0, %v8172_v49 }
0x17b6   :  { %5120 = vrot.lane.b32.xlu1 %v10228_v27, %s8326_s0  ;;  %5114 = vrot.lane.b32.xlu0 %v10228_v27, %s8327_s30 }
0x17b7   :  { %7706 = vmatmul.mubr.f32.vlgmr.msra.gmra.mxu1 %v4660_v57  ;;  %v4658_v31 = vmul.f32 0.5, %v4655_v17 }
0x17b8   :  { %7708 = vmatprep.mubr.msk.f32.mxu1 %vm8324_vm0, %v8323_v1 }
0x17b9   :  { %v8174_v55 = vpop.eup %8173  ;;  %v4661_v54 = vmul.f32 %v4658_v31, %v4628_v11 }
0x17ba   :  { %5360 = vrot.lane.b32.xlu1 %v10230_v22, %s8328_s9  ;;  %5116 = vrot.lane.b32.xlu0 %v10224_v6, %s8327_s30  ;;  %v4656_v25 = vadd.f32 1.0, %v8174_v55 }
0x17bb   :  { %7709 = vmatmul.mubr.f32.gmra.mxu1 %v4661_v54 }
0x17bc   :  { %7711 = vmatprep.mubr.msk.f32.mxu1 %vm8324_vm0, %v8323_v1  ;;  %v4659_v58 = vmul.f32 0.5, %v4656_v25 }
0x17be   :  { %5358 = vrot.lane.b32.xlu1 %v10224_v6, %s8328_s9  ;;  %5118 = vrot.lane.b32.xlu0 %v10230_v22, %s8327_s30  ;;  %v4662_v60 = vmul.f32 %v4659_v58, %v4633_v21 }
0x17c0   :  { %7712 = vmatmul.mubr.f32.gmra.mxu1 %v4662_v60 }
0x17c1   :  { %7752 = vmatprep.mubr.msk.f32.mxu1 %vm8324_vm0, %v8323_v1 }
0x17c2   :  { %5356 = vrot.lane.b32.xlu1 %v10228_v27, %s8328_s9  ;;  %5350 = vrot.lane.b32.xlu0 %v10228_v27, %s8329_s10 }
0x17c6   :  { %5596 = vrot.lane.b32.xlu1 %v10230_v22, %s8330_s11  ;;  %5352 = vrot.lane.b32.xlu0 %v10224_v6, %s8329_s10 }
0x17ca   :  { %5594 = vrot.lane.b32.xlu1 %v10224_v6, %s8330_s11  ;;  %5354 = vrot.lane.b32.xlu0 %v10230_v22, %s8329_s10 }
0x17ce   :  { %5592 = vrot.lane.b32.xlu1 %v10228_v27, %s8330_s11  ;;  %5586 = vrot.lane.b32.xlu0 %v10228_v27, %s8331_s12 }
0x17d2   :  { %5588 = vrot.lane.b32.xlu1 %v10224_v6, %s8331_s12  ;;  %5590 = vrot.lane.b32.xlu0 %v10230_v22, %s8331_s12 }
0x17d6   :  { %5015 = vrot.lane.b32.xlu1 %v10228_v27, %s8332_s13  ;;  %5017 = vrot.lane.b32.xlu0 %v10224_v6, %s8332_s13 }
0x17da   :  { %5019 = vrot.lane.b32.xlu1 %v10230_v22, %s8332_s13 }
0x17de   :  { %5255 = vrot.lane.b32.xlu1 %v10230_v22, %s8333_s14 }
0x181c   :  { %v4887_v13 = vpop.permute.xlu1 %4886 }
0x1820   :  { %v4885_v61 = vpop.permute.xlu1 %4884  ;;  %v4889_v48 = vpop.permute.xlu0 %4888 }
0x1821   :  { %7732 = vmatpush3.xpose.msk.msra.mxu0 %vm421_vm4, %v4889_v48 }
0x1822   :  { %7733 = vmatprep.subr.mxu0 %v8323_v1 }
0x1824   :  { %v5125_v47 = vpop.permute.xlu1 %5124  ;;  %v5123_v42 = vpop.permute.xlu0 %5122 }
0x1825   :  { %7734 = vmatpush3.xpose.msk.msra.mxu0 %vm421_vm4, %v4887_v13 }
0x1826   :  { %7735 = vmatprep.subr.mxu0 %v8323_v1 }
0x1828   :  { %v5121_v10 = vpop.permute.xlu1 %5120  ;;  %v5115_v40 = vpop.permute.xlu0 %5114 }
0x1829   :  { %7736 = vmatpush3.xpose.msk.msra.mxu0 %vm421_vm4, %v4885_v61 }
0x182a   :  { %7761 = vmatprep.subr.mxu0 %v8323_v1 }
0x182c   :  { %v5361_v26 = vpop.permute.xlu1 %5360  ;;  %7738 = vmatmul.mubr.msk.f32.vlgmr.msra.gmra.mxu0 %vm421_vm4, %v10228_v27  ;;  %v5117_v14 = vpop.permute.xlu0 %5116 }
0x182d   :  { %7762 = vmatpush3.xpose.msk.msra.mxu0 %vm421_vm4, %v5125_v47  ;;  %7740 = vmatprep.mubr.msk.f32.mxu0 %vm8324_vm0, %v8323_v1 }
0x182e   :  { %7763 = vmatprep.subr.mxu0 %v8323_v1 }
0x1830   :  { %v5359_v15 = vpop.permute.xlu1 %5358  ;;  %7741 = vmatmul.mubr.msk.f32.gmra.mxu0 %vm421_vm4, %v10224_v6  ;;  %v5119_v20 = vpop.permute.xlu0 %5118 }
0x1831   :  { %7764 = vmatpush3.xpose.msk.msra.mxu0 %vm421_vm4, %v5123_v42  ;;  %7743 = vmatprep.mubr.msk.f32.mxu0 %vm8324_vm0, %v8323_v1 }
0x1832   :  { %7765 = vmatprep.subr.mxu0 %v8323_v1 }
0x1834   :  { %v5357_v11 = vpop.permute.xlu1 %5356  ;;  %7744 = vmatmul.mubr.msk.f32.gmra.mxu0 %vm421_vm4, %v10230_v22  ;;  %v5351_v30 = vpop.permute.xlu0 %5350 }
0x1835   :  { %7766 = vmatpush3.xpose.msk.msra.mxu0 %vm421_vm4, %v5121_v10  ;;  %7767 = vmatprep.mubr.msk.f32.mxu0 %vm8324_vm0, %v8323_v1 }
0x1836   :  { %7791 = vmatprep.subr.mxu0 %v8323_v1 }
0x1838   :  { %v5597_v41 = vpop.permute.xlu1 %5596  ;;  %7768 = vmatmul.mubr.msk.f32.vlgmr.msra.gmra.mxu0 %vm421_vm4, %v5115_v40  ;;  %v5353_v39 = vpop.permute.xlu0 %5352 }
0x1839   :  { %7792 = vmatpush3.xpose.msk.msra.mxu0 %vm421_vm4, %v5361_v26  ;;  %7770 = vmatprep.mubr.msk.f32.mxu0 %vm8324_vm0, %v8323_v1 }
0x183a   :  { %7793 = vmatprep.subr.mxu0 %v8323_v1 }
0x183c   :  { %v5595_v51 = vpop.permute.xlu1 %5594  ;;  %7771 = vmatmul.mubr.msk.f32.gmra.mxu0 %vm421_vm4, %v5117_v14  ;;  %v5355_v56 = vpop.permute.xlu0 %5354 }
0x183d   :  { %7794 = vmatpush3.xpose.msk.msra.mxu0 %vm421_vm4, %v5359_v15  ;;  %7773 = vmatprep.mubr.msk.f32.mxu0 %vm8324_vm0, %v8323_v1 }
0x183e   :  { %7795 = vmatprep.subr.mxu0 %v8323_v1 }
0x1840   :  { %v5593_v45 = vpop.permute.xlu1 %5592  ;;  %7774 = vmatmul.mubr.msk.f32.gmra.mxu0 %vm421_vm4, %v5119_v20  ;;  %v5587_v21 = vpop.permute.xlu0 %5586 }
0x1841   :  { %7796 = vmatpush3.xpose.msk.msra.mxu0 %vm421_vm4, %v5357_v11  ;;  %7797 = vmatprep.mubr.msk.f32.mxu0 %vm8324_vm0, %v8323_v1 }
0x1842   :  { %7821 = vmatprep.subr.mxu0 %v8323_v1 }
0x1844   :  { %v5589_v59 = vpop.permute.xlu1 %5588  ;;  %7798 = vmatmul.mubr.msk.f32.vlgmr.msra.gmra.mxu0 %vm421_vm4, %v5351_v30  ;;  %v5591_v33 = vpop.permute.xlu0 %5590 }
0x1845   :  { %7822 = vmatpush3.xpose.msk.msra.mxu0 %vm421_vm4, %v5597_v41  ;;  %7800 = vmatprep.mubr.msk.f32.mxu0 %vm8324_vm0, %v8323_v1 }
0x1846   :  { %7823 = vmatprep.subr.mxu0 %v8323_v1 }
0x1848   :  { %v5016_v44 = vpop.permute.xlu1 %5015  ;;  %7801 = vmatmul.mubr.msk.f32.gmra.mxu0 %vm421_vm4, %v5353_v39  ;;  %v5018_v52 = vpop.permute.xlu0 %5017 }
0x1849   :  { %7824 = vmatpush3.xpose.msk.msra.mxu0 %vm421_vm4, %v5595_v51  ;;  %7803 = vmatprep.mubr.msk.f32.mxu0 %vm8324_vm0, %v8323_v1 }
0x184a   :  { %7825 = vmatprep.subr.mxu0 %v8323_v1 }
0x184c   :  { %v5020_v53 = vpop.permute.xlu1 %5019  ;;  %7804 = vmatmul.mubr.msk.f32.gmra.mxu0 %vm421_vm4, %v5355_v56 }
0x184d   :  { %7747 = vmatpush3.msk.msra.mxu1 %vm566_vm5, %v5020_v53  ;;  %7826 = vmatpush3.xpose.msk.msra.mxu0 %vm421_vm4, %v5593_v45 }
0x184e   :  { %7748 = vmatprep.subr.mxu1 %v8323_v1  ;;  %7827 = vmatprep.mubr.msk.f32.mxu0 %vm8324_vm0, %v8323_v1 }
0x184f   :  { %7749 = vmatpush3.msra.mxu1 %v5018_v52  ;;  %7851 = vmatprep.subr.mxu0 %v8323_v1 }
0x1850   :  { %7750 = vmatprep.subr.mxu1 %v8323_v1  ;;  %7828 = vmatmul.mubr.msk.f32.vlgmr.msra.gmra.mxu0 %vm421_vm4, %v5587_v21  ;;  %v10402_v39 = vpop.permute.xlu1 %5255 }
0x1851   :  { %7751 = vmatpush3.msra.mxu1 %v5016_v44  ;;  %7830 = vmatprep.mubr.msk.f32.mxu0 %vm8324_vm0, %v8323_v1 }
0x1852   :  { %7776 = vmatprep.subr.mxu1 %v8323_v1  ;;  %7852 = vmatpush3.msra.mxu0 %v9955_v8 }
0x1853   :  { %7853 = vmatprep.subr.mxu0 %v8323_v1 }
0x1854   :  { %7831 = vmatmul.mubr.msk.f32.gmra.mxu0 %vm421_vm4, %v5589_v59 }
0x1855   :  { %7833 = vmatprep.mubr.msk.f32.mxu0 %vm8324_vm0, %v8323_v1  ;;  %7854 = vmatpush3.msra.mxu0 %v9965_v16 }
0x1856   :  { %7855 = vmatprep.subr.mxu0 %v8323_v1 }
0x1857   :  { %7856 = vmatpush3.msra.mxu0 %v9970_v2 }
0x1858   :  { %7834 = vmatmul.mubr.msk.f32.gmra.mxu0 %vm421_vm4, %v5591_v33  ;;  %7857 = vmatprep.subr.mxu0 %v8323_v1 }
0x1859   :  { %7858 = vmatpush3.msra.mxu0 %v9979_v50  ;;  %7859 = vmatprep.mubr.msk.f32.mxu0 %vm8324_vm0, %v8323_v1 }
0x185a   :  { %7885 = vmatprep.subr.mxu0 %v8323_v1 }
0x1877   :  { %v4729_v8 = vpop.f32.mrf.mxu1 }
0x1879   :  { %v7707_v43 = vpop.f32.mrf.mxu1 }
0x187b   :  { %v4733_v4 = vpop.f32.mrf.mxu1 }
0x187d   :  { %v7710_v36 = vpop.f32.mrf.mxu1 }
0x1880   :  { %v10361_v16 = vpop.f32.mrf.mxu1 }
0x1882   :  { %v7713_v29 = vpop.f32.mrf.mxu1 }
0x18ec   :  { %v4968_v7 = vpop.f32.mrf.mxu0 }
0x18ed   :  { %v4982_v2 = vsel %vm514_vm6, %v4968_v7, -inf }
0x18ee   :  { %4983 = vmax.xlane.f32.xlu1 %v4982_v2  ;;  %v7739_v34 = vpop.f32.mrf.mxu0 }
0x18f0   :  { %v4973_v19 = vpop.f32.mrf.mxu0 }
0x18f1   :  { %v4985_v50 = vsel %vm514_vm6, %v4973_v19, -inf }
0x18f2   :  { %4986 = vmax.xlane.f32.xlu0 %v4985_v50  ;;  %v7742_v28 = vpop.f32.mrf.mxu0 }
0x18f4   :  { %v10365_v24 = vpop.f32.mrf.mxu0 }
0x18f5   :  { %v4988_v0 = vsel %vm521_vm7, %v10365_v24, -inf }
0x18f6   :  { %4989 = vmax.xlane.f32.xlu0 %v4988_v0  ;;  %v7745_v37 = vpop.f32.mrf.mxu0 }
0x18f8   :  { %v10369_v35 = vpop.f32.mrf.mxu0 }
0x18f9   :  { %v5218_v12 = vsel %vm514_vm6, %v10369_v35, -inf }
0x18fa   :  { %5219 = vmax.xlane.f32.xlu0 %v5218_v12  ;;  %v7769_v46 = vpop.f32.mrf.mxu0 }
0x18fc   :  { %v5209_v18 = vpop.f32.mrf.mxu0 }
0x18fd   :  { %v5221_v49 = vsel %vm514_vm6, %v5209_v18, -inf }
0x18fe   :  { %5222 = vmax.xlane.f32.xlu1 %v5221_v49  ;;  %v7772_v57 = vpop.f32.mrf.mxu0 }
0x1900   :  { %v10374_v17 = vpop.f32.mrf.mxu0 }
0x1901   :  { %v5224_v31 = vsel %vm521_vm7, %v10374_v17, -inf }
0x1902   :  { %5225 = vmax.xlane.f32.xlu0 %v5224_v31  ;;  %v7775_v55 = vpop.f32.mrf.mxu0 }
0x1904   :  { %v10378_v54 = vpop.f32.mrf.mxu0 }
0x1905   :  { %v5454_v25 = vsel %vm514_vm6, %v10378_v54, -inf }
0x1906   :  { %5455 = vmax.xlane.f32.xlu1 %v5454_v25  ;;  %v7799_v58 = vpop.f32.mrf.mxu0 }
0x1908   :  { %v10382_v60 = vpop.f32.mrf.mxu0 }
0x1909   :  { %v5457_v13 = vsel %vm514_vm6, %v10382_v60, -inf }
0x190a   :  { %5458 = vmax.xlane.f32.xlu0 %v5457_v13  ;;  %v7802_v61 = vpop.f32.mrf.mxu0 }
0x190c   :  { %v5450_v48 = vpop.f32.mrf.mxu0 }
0x190d   :  { %v5460_v47 = vsel %vm521_vm7, %v5450_v48, -inf }
0x190e   :  { %5461 = vmax.xlane.f32.xlu1 %v5460_v47  ;;  %v7805_v42 = vpop.f32.mrf.mxu0 }
0x1910   :  { %v5676_v10 = vpop.f32.mrf.mxu0 }
0x1911   :  { %v5690_v40 = vsel %vm514_vm6, %v5676_v10, -inf }
0x1912   :  { %5691 = vmax.xlane.f32.xlu0 %v5690_v40  ;;  %v7829_v26 = vpop.f32.mrf.mxu0 }
0x1914   :  { %v10388_v14 = vpop.f32.mrf.mxu0 }
0x1915   :  { %v5693_v30 = vsel %vm514_vm6, %v10388_v14, -inf }
0x1916   :  { %v7832_v15 = vpop.f32.mrf.mxu0 }
0x1918   :  { %v10390_v20 = vpop.f32.mrf.mxu0 }
0x1919   :  { %v5696_v41 = vsel %vm521_vm7, %v10390_v20, -inf }
0x191a   :  { %v7835_v11 = vpop.f32.mrf.mxu0 }
0x191f   :  { %5251 = vrot.lane.b32.xlu1 %v10228_v27, %s8333_s14 }
0x1923   :  { %5491 = vrot.lane.b32.xlu1 %v10230_v22, %s8334_s15 }
0x1928   :  { %5253 = vrot.lane.b32.xlu0 %v10224_v6, %s8333_s14 }
0x1947   :  { %5694 = vmax.xlane.f32.xlu1 %v5693_v30  ;;  %5697 = vmax.xlane.f32.xlu0 %v5696_v41 }
0x1977   :  { %v4984_v51 = vpop.xlane.xlu1 %4983 }
0x1978   :  { %v4991_v56 = vsub.f32 %v4968_v7, %v4984_v51 }
0x197a   :  { %v4994_v45 = vmul.f32 1.442695, %v4991_v56 }
0x197b   :  { %v4987_v21 = vpop.xlane.xlu0 %4986 }
0x197c   :  { %8175 = vpow2.f32 %v4994_v45  ;;  %v4992_v59 = vsub.f32 %v4973_v19, %v4987_v21 }
0x197e   :  { %v4996_v33 = vmul.f32 1.442695, %v4992_v59 }
0x197f   :  { %v4990_v43 = vpop.xlane.xlu0 %4989 }
0x1980   :  { %8177 = vpow2.f32 %v4996_v33  ;;  %v4993_v4 = vsub.f32 %v10365_v24, %v4990_v43 }
0x1982   :  { %v4998_v2 = vmul.f32 1.442695, %v4993_v4 }
0x1983   :  { %v5220_v36 = vpop.xlane.xlu0 %5219 }
0x1984   :  { %v5227_v7 = vsub.f32 %v10369_v35, %v5220_v36  ;;  %8179 = vpow2.f32 %v4998_v2 }
0x1986   :  { %v5230_v50 = vmul.f32 1.442695, %v5227_v7 }
0x1987   :  { %v5223_v29 = vpop.xlane.xlu1 %5222 }
0x1988   :  { %v5228_v34 = vsub.f32 %v5209_v18, %v5223_v29  ;;  %8181 = vpow2.f32 %v5230_v50 }
0x1989   :  { %v10404_v44 = vpop.eup %8175 }
0x198a   :  { %v5000_v53 = vsel %vm514_vm6, %v10404_v44, 0.0  ;;  %v5232_v28 = vmul.f32 1.442695, %v5228_v34 }
0x198b   :  { %5001 = vadd.xlane.f32.xlu1 %v5000_v53  ;;  %v5226_v19 = vpop.xlane.xlu0 %5225 }
0x198c   :  { %v5229_v0 = vsub.f32 %v10374_v17, %v5226_v19  ;;  %8183 = vpow2.f32 %v5232_v28 }
0x198d   :  { %v10408_v52 = vpop.eup %8177 }
0x198e   :  { %v5003_v8 = vsel %vm514_vm6, %v10408_v52, 0.0  ;;  %v5234_v12 = vmul.f32 1.442695, %v5229_v0 }
0x198f   :  { %5004 = vadd.xlane.f32.xlu0 %v5003_v8  ;;  %v5456_v37 = vpop.xlane.xlu1 %5455 }
0x1990   :  { %v5463_v46 = vsub.f32 %v10378_v54, %v5456_v37  ;;  %8185 = vpow2.f32 %v5234_v12 }
0x1991   :  { %v10420_v25 = vpop.eup %8179 }
0x1992   :  { %v5466_v57 = vmul.f32 1.442695, %v5463_v46  ;;  %v5006_v13 = vsel %vm521_vm7, %v10420_v25, 0.0 }
0x1993   :  { %v5459_v49 = vpop.xlane.xlu0 %5458 }
0x1994   :  { %8187 = vpow2.f32 %v5466_v57  ;;  %v5464_v33 = vsub.f32 %v10382_v60, %v5459_v49 }
0x1995   :  { %v10422_v58 = vpop.eup %8181 }
0x1996   :  { %v5468_v43 = vmul.f32 1.442695, %v5464_v33 }
0x1997   :  { %v5462_v24 = vpop.xlane.xlu1 %5461 }
0x1998   :  { %v5465_v31 = vsub.f32 %v5450_v48, %v5462_v24  ;;  %v5236_v48 = vsel %vm514_vm6, %v10422_v58, 0.0 }
0x1999   :  { %v10426_v61 = vpop.eup %8183 }
0x199a   :  { %v5470_v18 = vmul.f32 1.442695, %v5465_v31  ;;  %v5239_v54 = vsel %vm514_vm6, %v10426_v61, 0.0 }
0x199b   :  { %v5692_v35 = vpop.xlane.xlu0 %5691  ;;  %v5252_v21 = vpop.permute.xlu1 %5251 }
0x199c   :  { %5487 = vrot.lane.b32.xlu1 %v10228_v27, %s8334_s15  ;;  %v5699_v55 = vsub.f32 %v5676_v10, %v5692_v35  ;;  %8189 = vpow2.f32 %v5470_v18 }
0x199d   :  { %v10432_v47 = vpop.eup %8185 }
0x199e   :  { %v5702_v17 = vmul.f32 1.442695, %v5699_v55  ;;  %v5242_v42 = vsel %vm521_vm7, %v10432_v47, 0.0 }
0x199f   :  { %v5254_v15 = vpop.permute.xlu0 %5253  ;;  %v5492_v59 = vpop.permute.xlu1 %5491 }
0x19a0   :  { %8191 = vpow2.f32 %v5702_v17 }
0x19a1   :  { %v10436_v10 = vpop.eup %8187 }
0x19a2   :  { %v5472_v40 = vsel %vm514_vm6, %v10436_v10, 0.0 }
0x19a5   :  { %5489 = vrot.lane.b32.xlu0 %v10224_v6, %s8334_s15 }
0x19a9   :  { %v10440_v26 = vpop.eup %8189 }
0x19aa   :  { %v5478_v11 = vsel %vm521_vm7, %v10440_v26, 0.0 }
0x19ad   :  { %v10444_v30 = vpop.eup %8191 }
0x19ae   :  { %v5708_v45 = vsel %vm514_vm6, %v10444_v30, 0.0 }
0x19c0   :  { %5007 = vadd.xlane.f32.xlu1 %v5006_v13 }
0x19c4   :  { %5240 = vadd.xlane.f32.xlu1 %v5239_v54  ;;  %5237 = vadd.xlane.f32.xlu0 %v5236_v48 }
0x19c8   :  { %5243 = vadd.xlane.f32.xlu0 %v5242_v42 }
0x19cc   :  { %5473 = vadd.xlane.f32.xlu0 %v5472_v40 }
0x19d0   :  { %5479 = vadd.xlane.f32.xlu0 %v5478_v11  ;;  %v5698_v41 = vpop.xlane.xlu0 %5697  ;;  %v5695_v53 = vpop.xlane.xlu1 %5694 }
0x19d1   :  { %v5701_v51 = vsub.f32 %v10390_v20, %v5698_v41  ;;  %v5700_v4 = vsub.f32 %v10388_v14, %v5695_v53  ;;  %v8284_v53 = vld [vmem:[%s10711_s5 + $0x20] sm:$0xff] }
0x19d3   :  { %v5706_v56 = vmul.f32 1.442695, %v5701_v51  ;;  %v5704_v36 = vmul.f32 1.442695, %v5700_v4 }
0x19d4   :  { %5709 = vadd.xlane.f32.xlu0 %v5708_v45  ;;  %v8281_v45 = vld [vmem:[%s10711_s5 + $0x38] sm:$0xff] }
0x19d5   :  { %5727 = vrot.lane.b32.xlu1 %v10230_v22, %s8335_s16  ;;  %8193 = vpow2.f32 %v5706_v56 }
0x19d6   :  { %8195 = vpow2.f32 %v5468_v43 }
0x19d7   :  { %8197 = vpow2.f32 %v5704_v36 }
0x19e2   :  { %v10452_v8 = vpop.eup %8193 }
0x19e3   :  { %v5714_v20 = vsel %vm521_vm7, %v10452_v8, 0.0  ;;  %v10457_v29 = vpop.eup %8195 }
0x19e4   :  { %5715 = vadd.xlane.f32.xlu0 %v5714_v20  ;;  %v5475_v22 = vsel %vm514_vm6, %v10457_v29, 0.0  ;;  %v10461_v7 = vpop.eup %8197 }
0x19e5   :  { %v5711_v60 = vsel %vm514_vm6, %v10461_v7, 0.0 }
0x19f9   :  { %5476 = vadd.xlane.f32.xlu1 %v5475_v22 }
0x19fa   :  { %5723 = vrot.lane.b32.xlu0 %v10228_v27, %s8335_s16 }
0x19fd   :  { %5712 = vadd.xlane.f32.xlu1 %v5711_v60 }
0x1a0e   :  { %5725 = vrot.lane.b32.xlu1 %v10224_v6, %s8335_s16 }
0x1a14   :  { %v5002_v14 = vpop.xlane.xlu1 %5001 }
0x1a15   :  { %8199 = vrcp.f32 %v5002_v14 }
0x1a18   :  { %v5005_v2 = vpop.xlane.xlu0 %5004  ;;  %v5488_v27 = vpop.permute.xlu1 %5487 }
0x1a19   :  { %8201 = vrcp.f32 %v5005_v2 }
0x1a22   :  { %v8200_v34 = vpop.eup %8199 }
0x1a23   :  { %v5010_v19 = vmul.f32 %v8200_v34, %v10404_v44 }
0x1a25   :  { %7753 = vmatmul.mubr.msk.f32.vlgmr.msra.gmra.mxu1 %vm514_vm6, %v5010_v19 }
0x1a26   :  { %v8202_v50 = vpop.eup %8201  ;;  %7777 = vmatpush3.msk.msra.mxu1 %vm566_vm5, %v10402_v39  ;;  %7755 = vmatprep.mubr.msk.f32.mxu1 %vm8324_vm0, %v8323_v1  ;;  %v5490_v39 = vpop.permute.xlu0 %5489 }
0x1a27   :  { %7778 = vmatprep.subr.mxu1 %v8323_v1  ;;  %v5012_v6 = vmul.f32 %v8202_v50, %v10408_v52 }
0x1a28   :  { %7779 = vmatpush3.msra.mxu1 %v5254_v15 }
0x1a29   :  { %7780 = vmatprep.subr.mxu1 %v8323_v1  ;;  %7756 = vmatmul.mubr.msk.f32.gmra.mxu1 %vm514_vm6, %v5012_v6 }
0x1a2a   :  { %7781 = vmatpush3.msra.mxu1 %v5252_v21  ;;  %7758 = vmatprep.mubr.msk.f32.mxu1 %vm8324_vm0, %v8323_v1 }
0x1a2b   :  { %7806 = vmatprep.subr.mxu1 %v8323_v1 }
0x1a49   :  { %v5008_v44 = vpop.xlane.xlu1 %5007 }
0x1a4a   :  { %8203 = vrcp.f32 %v5008_v44 }
0x1a4d   :  { %v5238_v28 = vpop.xlane.xlu0 %5237  ;;  %v5241_v0 = vpop.xlane.xlu1 %5240 }
0x1a4e   :  { %8205 = vrcp.f32 %v5238_v28 }
0x1a4f   :  { %8207 = vrcp.f32 %v5241_v0 }
0x1a51   :  { %v5244_v52 = vpop.xlane.xlu0 %5243 }
0x1a52   :  { %8209 = vrcp.f32 %v5244_v52 }
0x1a55   :  { %v5474_v37 = vpop.xlane.xlu0 %5473 }
0x1a56   :  { %8211 = vrcp.f32 %v5474_v37 }
0x1a57   :  { %v8204_v12 = vpop.eup %8203 }
0x1a58   :  { %v5014_v46 = vmul.f32 %v8204_v12, %v10420_v25 }
0x1a59   :  { %v5480_v17 = vpop.xlane.xlu0 %5479 }
0x1a5a   :  { %7759 = vmatmul.mubr.msk.f32.gmra.mxu1 %vm514_vm6, %v5014_v46 }
0x1a5b   :  { %7782 = vmatprep.mubr.msk.f32.mxu1 %vm8324_vm0, %v8323_v1  ;;  %v8206_v49 = vpop.eup %8205 }
0x1a5c   :  { %v5246_v24 = vmul.f32 %v8206_v49, %v10422_v58  ;;  %v8208_v57 = vpop.eup %8207  ;;  %v5728_v58 = vpop.permute.xlu1 %5727 }
0x1a5d   :  { %v5248_v31 = vmul.f32 %v8208_v57, %v10426_v61  ;;  %v5710_v13 = vpop.xlane.xlu0 %5709 }
0x1a5e   :  { %7783 = vmatmul.mubr.msk.f32.vlgmr.msra.gmra.mxu1 %vm514_vm6, %v5246_v24 }
0x1a5f   :  { %7807 = vmatpush3.msk.msra.mxu1 %vm566_vm5, %v5492_v59  ;;  %7785 = vmatprep.mubr.msk.f32.mxu1 %vm8324_vm0, %v8323_v1  ;;  %v8210_v35 = vpop.eup %8209  ;;  %v8283_v59 = vld [vmem:[%s10711_s5 + $0x28] sm:$0xff] }
0x1a60   :  { %7808 = vmatprep.subr.mxu1 %v8323_v1  ;;  %v5250_v18 = vmul.f32 %v8210_v35, %v10432_v47 }
0x1a61   :  { %7809 = vmatpush3.msra.mxu1 %v5490_v39 }
0x1a62   :  { %7810 = vmatprep.subr.mxu1 %v8323_v1  ;;  %7786 = vmatmul.mubr.msk.f32.gmra.mxu1 %vm514_vm6, %v5248_v31 }
0x1a63   :  { %7811 = vmatpush3.msra.mxu1 %v5488_v27  ;;  %7788 = vmatprep.mubr.msk.f32.mxu1 %vm8324_vm0, %v8323_v1  ;;  %v8212_v55 = vpop.eup %8211 }
0x1a64   :  { %7836 = vmatprep.subr.mxu1 %v8323_v1  ;;  %v5482_v25 = vmul.f32 %v8212_v55, %v10436_v10 }
0x1a66   :  { %7789 = vmatmul.mubr.msk.f32.gmra.mxu1 %vm514_vm6, %v5250_v18 }
0x1a67   :  { %7812 = vmatprep.mubr.msk.f32.mxu1 %vm8324_vm0, %v8323_v1 }
0x1a6a   :  { %7813 = vmatmul.mubr.msk.f32.vlgmr.msra.gmra.mxu1 %vm514_vm6, %v5482_v25 }
0x1a6b   :  { %7837 = vmatpush3.msk.msra.mxu1 %vm566_vm5, %v5728_v58  ;;  %7815 = vmatprep.mubr.msk.f32.mxu1 %vm8324_vm0, %v8323_v1 }
0x1a6c   :  { %7838 = vmatprep.subr.mxu1 %v8323_v1 }
0x1a6d   :  { %v5716_v54 = vpop.xlane.xlu0 %5715 }
0x1a71   :  { %v5724_v42 = vpop.permute.xlu0 %5723 }
0x1a82   :  { %v5477_v61 = vpop.xlane.xlu1 %5476 }
0x1a83   :  { %8213 = vrcp.f32 %v5477_v61 }
0x1a84   :  { %8215 = vrcp.f32 %v5480_v17 }
0x1a85   :  { %8217 = vrcp.f32 %v5710_v13 }
0x1a86   :  { %v5713_v48 = vpop.xlane.xlu1 %5712 }
0x1a87   :  { %8219 = vrcp.f32 %v5713_v48  ;;  %v8285_v48 = vld [vmem:[%s10712_s6 + $0xf0] sm:$0xff] }
0x1a88   :  { %8221 = vrcp.f32 %v5716_v54 }
0x1a8a   :  { %v5726_v47 = vpop.permute.xlu1 %5725 }
0x1a8b   :  { %7839 = vmatpush3.msra.mxu1 %v5726_v47 }
0x1a8c   :  { %7840 = vmatprep.subr.mxu1 %v8323_v1 }
0x1a8d   :  { %7841 = vmatpush3.msra.mxu1 %v5724_v42 }
0x1a8e   :  { %7868 = vmatprep.subr.mxu1 %v8323_v1 }
0x1a90   :  { %v8214_v10 = vpop.eup %8213 }
0x1a91   :  { %v5484_v40 = vmul.f32 %v8214_v10, %v10457_v29  ;;  %v8216_v15 = vpop.eup %8215 }
0x1a92   :  { %v5486_v11 = vmul.f32 %v8216_v15, %v10440_v26  ;;  %v8218_v41 = vpop.eup %8217  ;;  %v8287_v15 = vld [vmem:[%s10712_s6 + $0xe0] sm:$0xff] }
0x1a93   :  { %7816 = vmatmul.mubr.msk.f32.gmra.mxu1 %vm514_vm6, %v5484_v40  ;;  %v5718_v51 = vmul.f32 %v8218_v41, %v10444_v30  ;;  %v8282_v30 = vld [vmem:[%s10711_s5 + $0x30] sm:$0xff]  ;;  %v8288_v41 = vld [vmem:[%s10712_s6 + $0xd8] sm:$0xff] }
0x1a94   :  { %7818 = vmatprep.mubr.msk.f32.mxu1 %vm8324_vm0, %v8323_v1  ;;  %v8220_v56 = vpop.eup %8219 }
0x1a95   :  { %v5720_v26 = vmul.f32 %v8220_v56, %v10461_v7  ;;  %v8222_v21 = vpop.eup %8221  ;;  %v8290_v56 = vld [vmem:[%s10712_s6 + $0xc8] sm:$0xff] }
0x1a96   :  { %v5722_v33 = vmul.f32 %v8222_v21, %v10452_v8  ;;  %v8293_v21 = vld [vmem:[%s10712_s6 + $0xb0] sm:$0xff] }
0x1a97   :  { %7819 = vmatmul.mubr.msk.f32.gmra.mxu1 %vm514_vm6, %v5486_v11 }
0x1a98   :  { %7842 = vmatprep.mubr.msk.f32.mxu1 %vm8324_vm0, %v8323_v1 }
0x1a9b   :  { %7843 = vmatmul.mubr.msk.f32.vlgmr.msra.gmra.mxu1 %vm514_vm6, %v5718_v51  ;;  %v8289_v51 = vld [vmem:[%s10712_s6 + $0xd0] sm:$0xff] }
0x1a9c   :  { %7845 = vmatprep.mubr.msk.f32.mxu1 %vm8324_vm0, %v8323_v1  ;;  %7869 = vmatpush3.msra.mxu1 %v8281_v45  ;;  %v8291_v45 = vld [vmem:[%s10712_s6 + $0xc0] sm:$0xff] }
0x1a9d   :  { %7870 = vmatprep.subr.mxu1 %v8323_v1 }
0x1a9e   :  { %7871 = vmatpush3.msra.mxu1 %v8282_v30  ;;  %v8294_v30 = vld [vmem:[%s10712_s6 + $0xa8] sm:$0xff] }
0x1a9f   :  { %7846 = vmatmul.mubr.msk.f32.gmra.mxu1 %vm514_vm6, %v5720_v26  ;;  %7872 = vmatprep.subr.mxu1 %v8323_v1  ;;  %v8292_v26 = vld [vmem:[%s10712_s6 + $0xb8] sm:$0xff] }
0x1aa0   :  { %7848 = vmatprep.mubr.msk.f32.mxu1 %vm8324_vm0, %v8323_v1  ;;  %7873 = vmatpush3.msra.mxu1 %v8283_v59  ;;  %v8295_v59 = vld [vmem:[%s10712_s6 + $0xa0] sm:$0xff] }
0x1aa1   :  { %7874 = vmatprep.subr.mxu1 %v8323_v1 }
0x1aa2   :  { %7875 = vmatpush3.msra.mxu1 %v8284_v53 }
0x1aa3   :  { %7849 = vmatmul.mubr.msk.f32.gmra.mxu1 %vm514_vm6, %v5722_v33  ;;  %7926 = vmatprep.subr.mxu1 %v8323_v1  ;;  %v8296_v33 = vld [vmem:[%s10712_s6 + $0x98] sm:$0xff] }
0x1aa4   :  { %7876 = vmatprep.mubr.msk.f32.mxu1 %vm8324_vm0, %v8323_v1 }
0x1ae5   :  { %v5100_v43 = vpop.f32.mrf.mxu1 }
0x1ae7   :  { %v7754_v4 = vpop.f32.mrf.mxu1 }
0x1ae9   :  { %v5105_v20 = vpop.f32.mrf.mxu1 }
0x1aeb   :  { %v7757_v36 = vpop.f32.mrf.mxu1 }
0x1b1a   :  { %v5110_v29 = vpop.f32.mrf.mxu1 }
0x1b1c   :  { %v7760_v8 = vpop.f32.mrf.mxu1 }
0x1b1e   :  { %v5336_v22 = vpop.f32.mrf.mxu1 }
0x1b1f   :  { %5825 = vrot.lane.b32.xlu1 %v5336_v22, %s8336_s17 }
0x1b20   :  { %v7784_v7 = vpop.f32.mrf.mxu1 }
0x1b22   :  { %v5341_v60 = vpop.f32.mrf.mxu1 }
0x1b23   :  { %5827 = vrot.lane.b32.xlu0 %v5341_v60, %s8336_s17 }
0x1b24   :  { %v7787_v14 = vpop.f32.mrf.mxu1 }
0x1b26   :  { %v5346_v2 = vpop.f32.mrf.mxu1 }
0x1b28   :  { %v7790_v34 = vpop.f32.mrf.mxu1 }
0x1b2a   :  { %v5572_v19 = vpop.f32.mrf.mxu1 }
0x1b2b   :  { %5837 = vrot.lane.b32.xlu0 %v5572_v19, %s8337_s18 }
0x1b2c   :  { %v7814_v50 = vpop.f32.mrf.mxu1 }
0x1b53   :  { %v5577_v6 = vpop.f32.mrf.mxu1 }
0x1b54   :  { %5839 = vrot.lane.b32.xlu1 %v5577_v6, %s8337_s18 }
0x1b55   :  { %v7817_v27 = vpop.f32.mrf.mxu1 }
0x1b57   :  { %v5582_v39 = vpop.f32.mrf.mxu1 }
0x1b59   :  { %v7820_v44 = vpop.f32.mrf.mxu1 }
0x1b5b   :  { %v5808_v28 = vpop.f32.mrf.mxu1 }
0x1b5c   :  { %5849 = vrot.lane.b32.xlu1 %v5808_v28, %s8338_s26 }
0x1b5d   :  { %v7844_v0 = vpop.f32.mrf.mxu1 }
0x1b5f   :  { %v5813_v52 = vpop.f32.mrf.mxu1 }
0x1b60   :  { %5829 = vrot.lane.b32.xlu1 %v5346_v2, %s8336_s17  ;;  %5851 = vrot.lane.b32.xlu0 %v5813_v52, %s8338_s26 }
0x1b61   :  { %v7847_v37 = vpop.f32.mrf.mxu1 }
0x1b63   :  { %v5818_v12 = vpop.f32.mrf.mxu1 }
0x1b64   :  { %5841 = vrot.lane.b32.xlu0 %v5582_v39, %s8337_s18  ;;  %5853 = vrot.lane.b32.xlu1 %v5818_v12, %s8338_s26 }
0x1b65   :  { %v7850_v46 = vpop.f32.mrf.mxu1 }
0x1b91   :  { %v5826_v49 = vpop.permute.xlu1 %5825 }
0x1b92   :  { %v5858_v35 = vsel %vm421_vm4, %v5100_v43, %v5826_v49  ;;  %v8297_v43 = vld [vmem:[%s10707_s1 + $0x1c] ss:$0 sm:$0xff] }
0x1b95   :  { %v5828_v24 = vpop.permute.xlu0 %5827 }
0x1b96   :  { %v5859_v58 = vsel %vm421_vm4, %v5105_v20, %v5828_v24 }
0x1b9d   :  { %v5838_v31 = vpop.permute.xlu0 %5837 }
0x1b9e   :  { %v5861_v18 = vsel %vm1396_vm8, %v5858_v35, %v5838_v31 }
0x1bc6   :  { %v5840_v57 = vpop.permute.xlu1 %5839 }
0x1bc7   :  { %v5862_v17 = vsel %vm1396_vm8, %v5859_v58, %v5840_v57 }
0x1bce   :  { %v5850_v55 = vpop.permute.xlu1 %5849 }
0x1bcf   :  { %v5864_v25 = vsel %vm1400_vm9, %v5861_v18, %v5850_v55 }
0x1bd0   :  { %7860 = vmatmul.mubr.msk.f32.vlgmr.msra.gmra.mxu0 %vm263_vm2, %v5864_v25 }
0x1bd1   :  { %7862 = vmatprep.mubr.msk.f32.mxu0 %vm8324_vm0, %v8323_v1  ;;  %7886 = vmatpush3.msra.mxu0 %v10145_v23  ;;  %v8286_v23 = vld [vmem:[%s10712_s6 + $0xe8] sm:$0xff] }
0x1bd2   :  { %v5830_v13 = vpop.permute.xlu1 %5829  ;;  %v5852_v61 = vpop.permute.xlu0 %5851  ;;  %7887 = vmatprep.subr.mxu0 %v8323_v1 }
0x1bd3   :  { %v5865_v54 = vsel %vm1400_vm9, %v5862_v17, %v5852_v61  ;;  %7888 = vmatpush3.msra.mxu0 %v8285_v48  ;;  %v5860_v47 = vsel %vm421_vm4, %v5110_v29, %v5830_v13  ;;  %v8298_v61 = vld [vmem:[%s10707_s1 + $0x1d] ss:$0 sm:$0xff] }
0x1bd4   :  { %7863 = vmatmul.mubr.msk.f32.gmra.mxu0 %vm263_vm2, %v5865_v54  ;;  %7889 = vmatprep.subr.mxu0 %v8323_v1 }
0x1bd5   :  { %7865 = vmatprep.mubr.msk.f32.mxu0 %vm8324_vm0, %v8323_v1  ;;  %7890 = vmatpush3.msra.mxu0 %v8286_v23  ;;  %v8299_v23 = vld [vmem:[%s10707_s1 + $0x1e] ss:$0 sm:$0xff] }
0x1bd6   :  { %v5854_v42 = vpop.permute.xlu1 %5853  ;;  %v5842_v10 = vpop.permute.xlu0 %5841  ;;  %7891 = vmatprep.subr.mxu0 %v8323_v1 }
0x1bd7   :  { %v5863_v40 = vsel %vm1396_vm8, %v5860_v47, %v5842_v10  ;;  %7892 = vmatpush3.msra.mxu0 %v8287_v15  ;;  %v6203_v10 = vld [vmem:[%s10713_s7 + $0x18] sm:$0xff]  ;;  %v6202_v15 = vld [vmem:[%s10713_s7 + $0x10] sm:$0xff] }
0x1bd8   :  { %v5866_v11 = vsel %vm1400_vm9, %v5863_v40, %v5854_v42  ;;  %7893 = vmatprep.subr.mxu0 %v8323_v1 }
0x1bd9   :  { %7866 = vmatmul.mubr.msk.f32.gmra.mxu0 %vm263_vm2, %v5866_v11 }
0x1bda   :  { %7894 = vmatpush3.msra.mxu0 %v8288_v41  ;;  %7917 = vmatprep.mubr.msk.f32.mxu0 %vm8324_vm0, %v8323_v1 }
0x1bdb   :  { %7895 = vmatprep.subr.mxu0 %v8323_v1 }
0x1bdc   :  { %7896 = vmatpush3.msra.mxu0 %v8289_v51  ;;  %v6201_v51 = vld [vmem:[%s10713_s7 + $0x8] sm:$0xff] }
0x1bdd   :  { %7897 = vmatprep.subr.mxu0 %v8323_v1 }
0x1bde   :  { %7898 = vmatpush3.msra.mxu0 %v8290_v56 }
0x1bdf   :  { %7899 = vmatprep.subr.mxu0 %v8323_v1 }
0x1be0   :  { %7900 = vmatpush3.msra.mxu0 %v8291_v45  ;;  %v6200_v45 = vld [vmem:[%s10713_s7] sm:$0xff] }
0x1be1   :  { %7901 = vmatprep.subr.mxu0 %v8323_v1 }
0x1be2   :  { %7902 = vmatpush3.msra.mxu0 %v8292_v26 }
0x1be3   :  { %7903 = vmatprep.subr.mxu0 %v8323_v1 }
0x1be4   :  { %7904 = vmatpush3.msra.mxu0 %v8293_v21  ;;  %v4741_v21 = vadd.f32 %v10361_v16, %v10024_v3  ;;  %v8300_v16 = vld [vmem:[%s10707_s1 + $0x1f] ss:$0 sm:$0xff] }
0x1be5   :  { %7905 = vmatprep.subr.mxu0 %v8323_v1 }
0x1be6   :  { %7906 = vmatpush3.msra.mxu0 %v8294_v30 }
0x1be7   :  { %7907 = vmatprep.subr.mxu0 %v8323_v1 }
0x1be8   :  { %7908 = vmatpush3.msra.mxu0 %v8295_v59  ;;  %v10676_v59 = vld [vmem:[%s10707_s1 + $0x20] ss:$0 sm:$0xff]  ;;  %s8339_s1 = smov [#allocation2]  }
0x1be9   :  { %7909 = vmatprep.subr.mxu0 %v8323_v1  ;;  %s6385_s4 = sshll.u32 %s8339_s1, 4  ;;  %s6386_s4 = int_to_ptr.vmem [resolvable:$true] %s6385_s4 }
0x1bea   :  { %7910 = vmatpush3.msra.mxu0 %v8296_v33  ;;  %v4746_v33 = vadd.f32 %v10676_v59, %v4741_v21  ;;  %s8301_s19 = scalar_lea.vmem %s6386_s4, 32  ;;  %p8306_p1 = scmp.lt.s32.totalorder %s6386_s4, %s6386_s4 }
0x1beb   :  { %7911 = vmatprep.subr.mxu0 %v8323_v1  ;;  %p8302_p0 = scmp.ne.s32.totalorder %s6386_s4, %s8301_s19  ;;  %p8307_p2 = scmp.lt.s32.totalorder %s8301_s19, %s8301_s19 }
0x1bec   :  { %7912 = vmatpush3.msra.mxu0 %v10200_v38 }
0x1bed   :  { %7913 = vmatprep.subr.mxu0 %v8323_v1  ;;  %p8308_p3 = por %p8307_p2, %p8306_p1 }
0x1bee   :  { %7914 = vmatpush3.msra.mxu0 %v10207_v63 }
0x1bef   :  { %7915 = vmatprep.subr.mxu0 %v8323_v1  ;;  %p8309_p4 = pnand %p8308_p3, %p8302_p0 }
0x1bf0   :  { %7916 = vmatpush3.msra.mxu0 %v10212_v5 }
0x1c90   :  { %v5942_v53 = vpop.f32.mrf.mxu0 }
0x1c91   :  { %v5943_v4 = vadd.f32 %v8297_v43, %v5942_v53 }
0x1c92   :  { %v7861_v20 = vpop.f32.mrf.mxu0 }
0x1c93   :  { %v5956_v36 = vadd.f32 %v5943_v4, %v10028_v32 }
0x1c94   :  { %v5947_v29 = vpop.f32.mrf.mxu0 }
0x1c95   :  { %v5948_v8 = vadd.f32 %v8297_v43, %v5947_v29  ;;  %v5959_v38 = vsel %vm263_vm2, %v5956_v36, 0.0 }
0x1c96   :  { %5960 = vadd.xlane.f32.xlu0 %v5959_v38  ;;  %v7864_v22 = vpop.f32.mrf.mxu0 }
0x1c97   :  { %v5957_v63 = vadd.f32 %v5948_v8, %v10034_v9 }
0x1c99   :  { %v5952_v7 = vpop.f32.mrf.mxu0  ;;  %v5962_v5 = vsel %vm263_vm2, %v5957_v63, 0.0 }
0x1c9a   :  { %v5953_v60 = vadd.f32 %v8297_v43, %v5952_v7  ;;  %5963 = vadd.xlane.f32.xlu1 %v5962_v5 }
0x1c9b   :  { %v7867_v14 = vpop.f32.mrf.mxu0 }
0x1c9c   :  { %v10636_v2 = vadd.f32 %v5953_v60, %v10018_v62 }
0x1c9e   :  { %v5965_v32 = vsel %vm270_vm3, %v10636_v2, 0.0 }
0x1c9f   :  { %5966 = vadd.xlane.f32.xlu0 %v5965_v32 }
0x1d1f   :  { %v5961_v34 = vpop.xlane.xlu0 %5960 }
0x1d20   :  { %v5968_v19 = vmul.f32 0.03125, %v5961_v34 }
0x1d22   :  { %v5971_v50 = vsub.f32 %v5956_v36, %v5968_v19 }
0x1d23   :  { %v5964_v6 = vpop.xlane.xlu1 %5963 }
0x1d24   :  { %v5969_v27 = vmul.f32 0.03125, %v5964_v6  ;;  %v5974_v39 = vmul.f32 %v5971_v50, %v5971_v50 }
0x1d26   :  { %v5972_v9 = vsub.f32 %v5957_v63, %v5969_v27  ;;  %v5977_v44 = vsel %vm263_vm2, %v5974_v39, 0.0 }
0x1d27   :  { %5978 = vadd.xlane.f32.xlu0 %v5977_v44 }
0x1d28   :  { %v5967_v28 = vpop.xlane.xlu0 %5966  ;;  %v5975_v0 = vmul.f32 %v5972_v9, %v5972_v9 }
0x1d29   :  { %v5970_v52 = vmul.f32 0.03125, %v5967_v28 }
0x1d2a   :  { %v5980_v62 = vsel %vm263_vm2, %v5975_v0, 0.0 }
0x1d2b   :  { %v5973_v37 = vsub.f32 %v10636_v2, %v5970_v52  ;;  %5981 = vadd.xlane.f32.xlu0 %v5980_v62 }
0x1d2d   :  { %v5976_v12 = vmul.f32 %v5973_v37, %v5973_v37 }
0x1d2f   :  { %v5983_v46 = vsel %vm270_vm3, %v5976_v12, 0.0 }
0x1d30   :  { %5984 = vadd.xlane.f32.xlu1 %v5983_v46 }
0x1db0   :  { %v5979_v49 = vpop.xlane.xlu0 %5978 }
0x1db1   :  { %v5986_v24 = vmul.f32 0.03125, %v5979_v49 }
0x1db3   :  { %v5989_v57 = vadd.f32 1e-05, %v5986_v24 }
0x1db4   :  { %v5982_v31 = vpop.xlane.xlu0 %5981 }
0x1db5   :  { %8223 = vrsqrt.f32 %v5989_v57  ;;  %v5987_v35 = vmul.f32 0.03125, %v5982_v31 }
0x1db7   :  { %v5990_v18 = vadd.f32 1e-05, %v5987_v35 }
0x1db9   :  { %8225 = vrsqrt.f32 %v5990_v18  ;;  %v5985_v55 = vpop.xlane.xlu1 %5984 }
0x1dba   :  { %v5988_v25 = vmul.f32 0.03125, %v5985_v55 }
0x1dbc   :  { %v5991_v58 = vadd.f32 1e-05, %v5988_v25 }
0x1dbe   :  { %8227 = vrsqrt.f32 %v5991_v58 }
0x1dc2   :  { %v8224_v17 = vpop.eup %8223 }
0x1dc3   :  { %v5995_v13 = vmul.f32 %v8224_v17, %v5971_v50 }
0x1dc5   :  { %v5998_v54 = vmul.f32 %v8298_v61, %v5995_v13 }
0x1dc6   :  { %v8226_v48 = vpop.eup %8225 }
0x1dc7   :  { %v6001_v47 = vadd.f32 %v8299_v23, %v5998_v54  ;;  %v5996_v42 = vmul.f32 %v8226_v48, %v5972_v9 }
0x1dc9   :  { %7877 = vmatmul.mubr.msk.f32.vlgmr.msra.gmra.mxu1 %vm263_vm2, %v6001_v47  ;;  %v5999_v40 = vmul.f32 %v8298_v61, %v5996_v42 }
0x1dca   :  { %7879 = vmatprep.mubr.msk.f32.mxu1 %vm8324_vm0, %v8323_v1  ;;  %7927 = vmatpush3.msra.mxu1 %v6203_v10 }
0x1dcb   :  { %v8228_v11 = vpop.eup %8227  ;;  %v6002_v41 = vadd.f32 %v8299_v23, %v5999_v40  ;;  %7928 = vmatprep.subr.mxu1 %v8323_v1 }
0x1dcc   :  { %v5997_v56 = vmul.f32 %v8228_v11, %v5973_v37  ;;  %7929 = vmatpush3.msra.mxu1 %v6202_v15 }
0x1dcd   :  { %7880 = vmatmul.mubr.msk.f32.gmra.mxu1 %vm263_vm2, %v6002_v41  ;;  %7930 = vmatprep.subr.mxu1 %v8323_v1 }
0x1dce   :  { %7882 = vmatprep.mubr.msk.f32.mxu1 %vm8324_vm0, %v8323_v1  ;;  %v6000_v26 = vmul.f32 %v8298_v61, %v5997_v56  ;;  %7931 = vmatpush3.msra.mxu1 %v6201_v51 }
0x1dcf   :  { %7932 = vmatprep.subr.mxu1 %v8323_v1 }
0x1dd0   :  { %v6003_v30 = vadd.f32 %v8299_v23, %v6000_v26  ;;  %7933 = vmatpush3.msra.mxu1 %v6200_v45 }
0x1dd1   :  { %7937 = vmatprep.subr.mxu1 %v8323_v1 }
0x1dd2   :  { %7883 = vmatmul.mubr.msk.f32.gmra.mxu1 %vm263_vm2, %v6003_v30 }
0x1dd3   :  { %7934 = vmatprep.mubr.msk.f32.mxu1 %vm8324_vm0, %v8323_v1 }
0x1dd6   :  { %7935 = vmatmul.mubr.msk.f32.vlgmr.msra.gmra.mxu1 %vm263_vm2, %v4746_v33 }
0x1dd7   :  { %7938 = vmatpush3.msra.mxu1 %v6203_v10  ;;  %7945 = vmatprep.mubr.msk.f32.mxu1 %vm8324_vm0, %v8323_v1 }
0x1dd8   :  { %7939 = vmatprep.subr.mxu1 %v8323_v1 }
0x1dd9   :  { %7940 = vmatpush3.msra.mxu1 %v6202_v15 }
0x1dda   :  { %7941 = vmatprep.subr.mxu1 %v8323_v1 }
0x1ddb   :  { %7942 = vmatpush3.msra.mxu1 %v6201_v51 }
0x1ddc   :  { %7943 = vmatprep.subr.mxu1 %v8323_v1 }
0x1ddd   :  { %7944 = vmatpush3.msra.mxu1 %v6200_v45 }
0x1e89   :  { %v6079_v3 = vpop.f32.mrf.mxu1 }
0x1e8a   :  { %v6080_v53 = vadd.f32 %v8300_v16, %v6079_v3 }
0x1e8b   :  { %v7878_v43 = vpop.f32.mrf.mxu1 }
0x1e8c   :  { %v6093_v4 = vmul.f32 %v6080_v53, %v6080_v53 }
0x1e8d   :  { %v6084_v20 = vpop.f32.mrf.mxu1 }
0x1e8e   :  { %v6096_v36 = vmul.f32 %v6093_v4, %v6080_v53  ;;  %v6085_v29 = vadd.f32 %v8300_v16, %v6084_v20 }
0x1e8f   :  { %v7881_v8 = vpop.f32.mrf.mxu1 }
0x1e90   :  { %v6099_v38 = vmul.f32 0.044715, %v6096_v36  ;;  %v6094_v22 = vmul.f32 %v6085_v29, %v6085_v29 }
0x1e92   :  { %v6102_v63 = vadd.f32 %v6099_v38, %v6080_v53  ;;  %v6097_v7 = vmul.f32 %v6094_v22, %v6085_v29  ;;  %v6089_v5 = vpop.f32.mrf.mxu1 }
0x1e93   :  { %v6090_v60 = vadd.f32 %v8300_v16, %v6089_v5 }
0x1e94   :  { %v6105_v14 = vmul.f32 0.7978846, %v6102_v63  ;;  %v6100_v32 = vmul.f32 0.044715, %v6097_v7  ;;  %v7884_v34 = vpop.f32.mrf.mxu1 }
0x1e95   :  { %v6095_v19 = vmul.f32 %v6090_v60, %v6090_v60 }
0x1e96   :  { %8229 = vtanh.f32 %v6105_v14  ;;  %v6103_v50 = vadd.f32 %v6100_v32, %v6085_v29  ;;  %v6273_v6 = vpop.f32.mrf.mxu1 }
0x1e97   :  { %v6098_v27 = vmul.f32 %v6095_v19, %v6090_v60  ;;  %v6277_v39 = vmul.f32 %v6273_v6, %v6273_v6 }
0x1e98   :  { %v6106_v9 = vmul.f32 0.7978846, %v6103_v50  ;;  %v7936_v44 = vpop.f32.mrf.mxu1 }
0x1e99   :  { %v6101_v28 = vmul.f32 0.044715, %v6098_v27  ;;  %v6279_v0 = vsel %vm6278_vm10, %v6277_v39, 0.0 }
0x1e9a   :  { %8231 = vtanh.f32 %v6106_v9  ;;  %6280 = vadd.xlane.f32.xlu0 %v6279_v0 }
0x1e9b   :  { %v6104_v52 = vadd.f32 %v6101_v28, %v6090_v60 }
0x1e9d   :  { %v6107_v62 = vmul.f32 0.7978846, %v6104_v52 }
0x1e9f   :  { %8233 = vtanh.f32 %v6107_v62 }
0x1ea3   :  { %v8230_v37 = vpop.eup %8229 }
0x1ea4   :  { %v6111_v12 = vadd.f32 1.0, %v8230_v37 }
0x1ea6   :  { %v6114_v46 = vmul.f32 0.5, %v6111_v12 }
0x1ea7   :  { %v8232_v49 = vpop.eup %8231 }
0x1ea8   :  { %v6117_v24 = vmul.f32 %v6114_v46, %v6080_v53  ;;  %v6112_v57 = vadd.f32 1.0, %v8232_v49 }
0x1eaa   :  { %7918 = vmatmul.mubr.f32.vlgmr.msra.gmra.mxu0 %v6117_v24  ;;  %v6115_v31 = vmul.f32 0.5, %v6112_v57 }
0x1eab   :  { %7920 = vmatprep.mubr.msk.f32.mxu0 %vm8324_vm0, %v8323_v1 }
0x1eac   :  { %v8234_v35 = vpop.eup %8233  ;;  %v6118_v18 = vmul.f32 %v6115_v31, %v6085_v29 }
0x1ead   :  { %v6113_v55 = vadd.f32 1.0, %v8234_v35 }
0x1eae   :  { %7921 = vmatmul.mubr.f32.gmra.mxu0 %v6118_v18 }
0x1eaf   :  { %7923 = vmatprep.mubr.msk.f32.mxu0 %vm8324_vm0, %v8323_v1  ;;  %v6116_v25 = vmul.f32 0.5, %v6113_v55 }
0x1eb1   :  { %v6119_v58 = vmul.f32 %v6116_v25, %v6090_v60 }
0x1eb3   :  { %7924 = vmatmul.mubr.f32.gmra.mxu0 %v6119_v58 }
0x1f23   :  { %v6281_v17 = vpop.xlane.xlu0 %6280 }
0x1f24   :  { %8235 = vrsqrt.f32 %v6281_v17  ;;  %vm6284_vm11 = vcmp.eq.f32.partialorder %v6281_v17, inf  ;;  %v6287_v54 = vand.u32 2147483648, %v6281_v17  ;;  %vm6286_vm12 = vcmp.eq.f32.partialorder %v6281_v17, 0.0 }
0x1f31   :  { %v8236_v13 = vpop.eup %8235 }
0x1f32   :  { %v6283_v61 = vmul.f32 %v8236_v13, %v6281_v17 }
0x1f34   :  { %v6285_v48 = vsel %vm6284_vm11, %v6281_v17, %v6283_v61 }
0x1f35   :  { %v6288_v23 = vsel %vm6286_vm12, %v6287_v54, %v6285_v48 }
0x1f36   :  { %8237 = vrcp.f32 %v6288_v23 }
0x1f43   :  { %v8238_v47 = vpop.eup %8237 }
0x1f44   :  { %v6290_v42 = vmul.f32 %v8238_v47, %v6273_v6 }
0x1f46   :  { %6291 = vst.msk [vmem:[#allocation2] sm:$0x1] %vm6278_vm10, %v6290_v42 }
0x1f6a   :  { %v6186_v10 = vpop.f32.mrf.mxu0 }
0x1f6c   :  { %v7919_v40 = vpop.f32.mrf.mxu0 }
0x1f6e   :  { %v6190_v1 = vpop.f32.mrf.mxu0 }
0x1f70   :  { %v7922_v15 = vpop.f32.mrf.mxu0 }
0x1f73   :  { %v6194_v11 = vpop.f32.mrf.mxu0 }
0x1f74   :  { %v6198_v41 = vadd.f32 %v6194_v11, %v10636_v2 }
0x1f75   :  { %v7925_v51 = vpop.f32.mrf.mxu0 }
0x1f76   :  { %v6199_v56 = vadd.f32 %v10676_v59, %v6198_v41 }
0x1f78   :  { %7946 = vmatmul.mubr.msk.f32.vlgmr.msra.gmra.mxu1 %vm263_vm2, %v6199_v56 }
0x2038   :  { %v6361_v45 = vpop.f32.mrf.mxu1 }
0x2039   :  { %v6365_v26 = vmul.f32 %v6361_v45, %v6361_v45 }
0x203a   :  { %v7947_v21 = vpop.f32.mrf.mxu1 }
0x203b   :  { %v6366_v30 = vsel %vm6278_vm10, %v6365_v26, 0.0 }
0x203c   :  { %6367 = vadd.xlane.f32.xlu1 %v6366_v30 }
0x20c5   :  { %v6368_v33 = vpop.xlane.xlu1 %6367 }
0x20c6   :  { %8239 = vrsqrt.f32 %v6368_v33  ;;  %vm6371_vm13 = vcmp.eq.f32.partialorder %v6368_v33, inf  ;;  %v6374_v53 = vand.u32 2147483648, %v6368_v33  ;;  %vm6373_vm14 = vcmp.eq.f32.partialorder %v6368_v33, 0.0 }
0x20d3   :  { %v8240_v3 = vpop.eup %8239 }
0x20d4   :  { %v6370_v16 = vmul.f32 %v8240_v3, %v6368_v33 }
0x20d6   :  { %v6372_v43 = vsel %vm6371_vm13, %v6368_v33, %v6370_v16 }
0x20d7   :  { %v6375_v2 = vsel %vm6373_vm14, %v6374_v53, %v6372_v43 }
0x20d8   :  { %8241 = vrcp.f32 %v6375_v2 }
0x20e5   :  { %v8242_v59 = vpop.eup %8241 }
0x20e6   :  { %v6377_v4 = vmul.f32 %v8242_v59, %v6361_v45 }
0x20e8   :  { %6378 = vst.msk [vmem:[#allocation2 + $0x1] sm:$0x1] %vm6278_vm10, %v6377_v4 }
0x20e9   :  { %8312 = shalt.err (!%p8309_p4)
}
0x20ea   :  { %6388 = dma.vmem_to_hbm [thread:$0]  %s6386_s4, 32, %s10714_s8, [#allocation3]  }
0x20eb   :  { %8321 = dma.done.wait [#allocation3], 32  }
0x20ec   :  { %8322 = vsyncadd [#allocation3], 4294967264 }
0x20ed   :  { %6392 = vsyncpa [#allocation3], 1 }

</bundles_post_ra>
